<compile_context>
chip_gen: v6e
topology: v6e:2x2x1
jax: 0.10.0
libtpu: 0.0.40
codegen_flags: <defaults>
</compile_context>

<pallas_src>
import jax
import jax.numpy as jnp
from jax.experimental import pallas as pl
from jax.experimental.pallas import tpu as pltpu

SEQ_LEN = 8          # x.unsqueeze(1).expand(-1, 8, -1)
K1, K2 = 3, 3        # conv kernel sizes (hard-coded 3 in the module)
C1, C2 = 256, 128    # conv output channels
L1 = SEQ_LEN - K1 + 1        # 6
L2 = L1 - K2 + 1             # 4
FC_PAD = 128                 # lane-dense padded output width
ALIGN = 16                   # batch-tile alignment (bf16 sublane tile)


def _round_up(n, m):
    return (n + m - 1) // m * m


# ---------------------------------------------------------------------------
# Pallas kernel
# ---------------------------------------------------------------------------
def _rcnn_kernel(x_ref,
                 wih_ref, whh_ref, blstm_ref,
                 w1xs_ref, b1_ref, w1h_ref,
                 w2_ref, b2_ref,
                 wfc_ref, bfc_ref,
                 out_ref,
                 hslab_ref, c1_ref):
    bf16 = jnp.bfloat16
    xb = x_ref[...].astype(bf16)              # (TB, Dp)  lane-padded input
    tb = xb.shape[0]
    sp = whh_ref.shape[0]                     # padded fused state width (mult of 128)

    # ---------------- fused bidirectional LSTM -----------------------------
    # Input is identical at every time step -> x-gate term is a constant.
    # Gate layout: 4 blocks of width sp, each [gate_fwd(H) | gate_bwd(H) | 0pad].
    gx = jnp.dot(xb, wih_ref[...], preferred_element_type=jnp.float32) + blstm_ref[...]
    whh = whh_ref[...]                        # (sp, 4*sp) block-diagonal, bf16
    h = jnp.zeros((tb, sp), jnp.float32)      # [h_f | h_b | 0]
    c = jnp.zeros((tb, sp), jnp.float32)
    for t in range(SEQ_LEN):
        g = gx + jnp.dot(h.astype(bf16), whh, preferred_element_type=jnp.float32)
        i_g = jax.nn.sigmoid(g[:, 0 * sp:1 * sp])
        f_g = jax.nn.sigmoid(g[:, 1 * sp:2 * sp])
        g_g = jnp.tanh(g[:, 2 * sp:3 * sp])
        o_g = jax.nn.sigmoid(g[:, 3 * sp:4 * sp])
        c = f_g * c + i_g * g_g
        h = o_g * jnp.tanh(c)
        h_bf = h.astype(bf16)
        # time-ordered copy (forward path of conv1)
        hslab_ref[t * tb:(t + 1) * tb, 0:sp] = h_bf
        # time-reversed copy (backward-output path of conv1)
        r = SEQ_LEN - 1 - t
        hslab_ref[r * tb:(r + 1) * tb, sp:2 * sp] = h_bf

    # ---------------- conv1: 3 row-offset matmuls + hoisted x-term ---------
    # x contribution is identical at every output position; bias folded in.
    xw1 = jnp.dot(xb, w1xs_ref[...], preferred_element_type=jnp.float32) + b1_ref[...]
    acc1 = jnp.concatenate([xw1] * L1, axis=0)                       # (L1*TB, C1) f32
    for k in range(K1):
        acc1 = acc1 + jnp.dot(hslab_ref[k * tb:(k + L1) * tb, :], w1h_ref[k],
                              preferred_element_type=jnp.float32)
    c1_ref[...] = jnp.maximum(acc1, 0.0).astype(bf16)                # (L1*TB, C1)

    # ---------------- conv2: 3 row-offset matmuls + ReLU + max-pool --------
    acc2 = jnp.dot(c1_ref[0:L2 * tb, :], w2_ref[0], preferred_element_type=jnp.float32)
    for k in range(1, K2):
        acc2 = acc2 + jnp.dot(c1_ref[k * tb:(k + L2) * tb, :], w2_ref[k],
                              preferred_element_type=jnp.float32)
    acc2 = jnp.maximum(acc2 + b2_ref[...], 0.0)                      # (L2*TB, C2)

    pooled = acc2[0:tb]
    for p in range(1, L2):
        pooled = jnp.maximum(pooled, acc2[p * tb:(p + 1) * tb])      # (TB, C2)

    # ---------------- FC (lane-dense, padded to 128 cols) ------------------
    logits = jnp.dot(pooled.astype(bf16), wfc_ref[...],
                     preferred_element_type=jnp.float32) + bfc_ref[...]
    out_ref[...] = logits.astype(out_ref.dtype)


# ---------------------------------------------------------------------------
# Wrapper: batch-tiled grid, weights resident in VMEM (constant index maps)
# ---------------------------------------------------------------------------
def rcnn_forward(x, params, *, block_b=256):
    B, Din = x.shape
    num_classes = params["num_classes"]
    Dp = params["wih"].shape[0]       # lane-padded input dim
    Sp = params["whh"].shape[0]       # lane-padded fused state width

    # Batch tile: multiple of 16 (bf16 sublane tile); sized so the grid has
    # >= 2 steps whenever B allows it (keeps both v7x TensorCores busy).
    block_b = max(_round_up(block_b, ALIGN), ALIGN)
    Bq = _round_up(B, ALIGN)
    TB = min(block_b, max(ALIGN, _round_up((Bq + 1) // 2, ALIGN)))
    Bp = _round_up(B, TB)

    # Pad batch (to tile) and feature dim (to 128 lanes) with zeros.
    xpad = jnp.zeros((Bp, Dp), x.dtype).at[:B, :Din].set(x)

    weights = (params["wih"], params["whh"], params["b_lstm"],
               params["w1xs"], params["b1"], params["w1h"],
               params["w2"], params["b2"],
               params["wfc"], params["bfc"])

    def wspec(a):
        nd = a.ndim
        return pl.BlockSpec(a.shape, lambda i, _n=nd: (0,) * _n)

    grid_n = Bp // TB
    flops_tile = (2 * TB * Dp * 4 * Sp                       # gx
                  + SEQ_LEN * 2 * TB * Sp * 4 * Sp           # recurrence
                  + 2 * TB * Dp * C1                         # xw1
                  + K1 * 2 * (L1 * TB) * (2 * Sp) * C1       # conv1
                  + K2 * 2 * (L2 * TB) * C1 * C2             # conv2
                  + 2 * TB * C2 * FC_PAD)                    # fc
    transc_tile = SEQ_LEN * TB * 5 * Sp
    w_bytes = sum(int(w.size) * w.dtype.itemsize for w in weights)
    bytes_tile = TB * Dp * 4 + TB * FC_PAD * 4 + w_bytes
    cost = pl.CostEstimate(flops=grid_n * flops_tile,
                           transcendentals=grid_n * transc_tile,
                           bytes_accessed=grid_n * bytes_tile)

    out = pl.pallas_call(
        _rcnn_kernel,
        out_shape=jax.ShapeDtypeStruct((Bp, FC_PAD), jnp.float32),
        grid=(grid_n,),
        in_specs=[pl.BlockSpec((TB, Dp), lambda i: (i, 0))] + [wspec(w) for w in weights],
        out_specs=pl.BlockSpec((TB, FC_PAD), lambda i: (i, 0)),
        scratch_shapes=[pltpu.VMEM((SEQ_LEN * TB, 2 * Sp), jnp.bfloat16),   # h slab
                        pltpu.VMEM((L1 * TB, C1), jnp.bfloat16)],           # conv1 slab
        compiler_params=pltpu.CompilerParams(
            dimension_semantics=("parallel",),
            vmem_limit_bytes=32 * 1024 * 1024),
        cost_estimate=cost,
    )(xpad, *weights)
    return out[:B, :num_classes]


# ---------------------------------------------------------------------------
# Deterministic parameter init (PyTorch layouts) + kernel-layout conversion
# ---------------------------------------------------------------------------
def init_raw_params(key, input_dim, hidden_dim, num_classes):
    ks = jax.random.split(key, 14)
    rnd = lambda k, shape: 0.1 * jax.random.normal(k, shape, jnp.float32)
    H4 = 4 * hidden_dim
    c_in = input_dim + 2 * hidden_dim
    return dict(
        w_ih_f=rnd(ks[0], (H4, input_dim)), w_hh_f=rnd(ks[1], (H4, hidden_dim)),
        b_ih_f=rnd(ks[2], (H4,)),           b_hh_f=rnd(ks[3], (H4,)),
        w_ih_b=rnd(ks[4], (H4, input_dim)), w_hh_b=rnd(ks[5], (H4, hidden_dim)),
        b_ih_b=rnd(ks[6], (H4,)),           b_hh_b=rnd(ks[7], (H4,)),
        w1=rnd(ks[8], (C1, c_in, K1)),      b1=rnd(ks[9], (C1,)),
        w2=rnd(ks[10], (C2, C1, K2)),       b2=rnd(ks[11], (C2,)),
        wfc=rnd(ks[12], (num_classes, C2)), bfc=rnd(ks[13], (num_classes,)),
    )


def to_kernel_params(raw, input_dim, hidden_dim, num_classes):
    H = hidden_dim
    Din = input_dim
    Dp = _round_up(Din, 128)          # lane-padded input dim
    Sp = _round_up(2 * H, 128)        # lane-padded fused state width
    bf16 = jnp.bfloat16

    # ---- fused, lane-padded LSTM weights -----------------------------------
    # Gate layout: 4 blocks of width Sp; within each block cols 0:H fwd, H:2H bwd,
    # rest zero-padded (so padded state columns stay exactly zero every step).
    wih = jnp.zeros((Dp, 4 * Sp), jnp.float32)
    whh = jnp.zeros((Sp, 4 * Sp), jnp.float32)
    b_lstm = jnp.zeros((1, 4 * Sp), jnp.float32)
    wih_f_t, wih_b_t = raw["w_ih_f"].T, raw["w_ih_b"].T   # (Din, 4H)
    whh_f_t, whh_b_t = raw["w_hh_f"].T, raw["w_hh_b"].T   # (H, 4H)
    bf_ = raw["b_ih_f"] + raw["b_hh_f"]
    bb_ = raw["b_ih_b"] + raw["b_hh_b"]
    for g in range(4):
        c0 = g * Sp
        wih = wih.at[:Din, c0:c0 + H].set(wih_f_t[:, g * H:(g + 1) * H])
        wih = wih.at[:Din, c0 + H:c0 + 2 * H].set(wih_b_t[:, g * H:(g + 1) * H])
        whh = whh.at[:H, c0:c0 + H].set(whh_f_t[:, g * H:(g + 1) * H])
        whh = whh.at[H:2 * H, c0 + H:c0 + 2 * H].set(whh_b_t[:, g * H:(g + 1) * H])
        b_lstm = b_lstm.at[0, c0:c0 + H].set(bf_[g * H:(g + 1) * H])
        b_lstm = b_lstm.at[0, c0 + H:c0 + 2 * H].set(bb_[g * H:(g + 1) * H])

    # ---- conv1: x-taps summed (x is time-constant); h-taps per tap k as a
    # (2*Sp, C1) block acting on [time-ordered fused h | time-reversed fused h].
    w1 = raw["w1"]                                                   # (C1, Din+2H, K1)
    w1xs = jnp.zeros((Dp, C1), jnp.float32)
    w1xs = w1xs.at[:Din].set(jnp.sum(w1[:, :Din, :], axis=2).T)
    w1h = jnp.zeros((K1, 2 * Sp, C1), jnp.float32)
    for k in range(K1):
        w1h = w1h.at[k, :H, :].set(w1[:, Din:Din + H, k].T)                   # fwd (time-ordered half)
        w1h = w1h.at[k, Sp + H:Sp + 2 * H, :].set(w1[:, Din + H:, k].T)       # bwd (time-reversed half)

    # ---- conv2: per-tap (C1, C2) blocks -------------------------------------
    w2 = jnp.stack([raw["w2"][:, :, k].T for k in range(K2)], axis=0)         # (K2, C1, C2)

    # ---- FC padded to 128 output columns (lane-dense stores) ----------------
    wfc = jnp.zeros((C2, FC_PAD), jnp.float32).at[:, :num_classes].set(raw["wfc"].T)
    bfc = jnp.zeros((1, FC_PAD), jnp.float32).at[:, :num_classes].set(raw["bfc"][None, :])

    return dict(
        wih=wih.astype(bf16), whh=whh.astype(bf16), b_lstm=b_lstm,
        w1xs=w1xs.astype(bf16), b1=raw["b1"][None, :],
        w1h=w1h.astype(bf16),
        w2=w2.astype(bf16), b2=raw["b2"][None, :],
        wfc=wfc.astype(bf16), bfc=bfc,
        num_classes=num_classes,
    )


# ---------------------------------------------------------------------------
# Pure-JAX f32 reference (scan LSTM + lax conv) for validation
# ---------------------------------------------------------------------------
def rcnn_reference(x, raw):
    B, Din = x.shape
    H = raw["w_hh_f"].shape[1]
    xs = jnp.broadcast_to(x[:, None, :], (B, SEQ_LEN, Din))

    def lstm_dir(w_ih, w_hh, b_ih, b_hh, reverse):
        def step(carry, xt):
            h, c = carry
            g = xt @ w_ih.T + b_ih + h @ w_hh.T + b_hh
            i = jax.nn.sigmoid(g[:, :H]); f = jax.nn.sigmoid(g[:, H:2 * H])
            gg = jnp.tanh(g[:, 2 * H:3 * H]); o = jax.nn.sigmoid(g[:, 3 * H:])
            c = f * c + i * gg
            h = o * jnp.tanh(c)
            return (h, c), h
        seq = jnp.transpose(xs, (1, 0, 2))
        if reverse:
            seq = seq[::-1]
        _, hs = jax.lax.scan(step, (jnp.zeros((B, H)), jnp.zeros((B, H))), seq)
        if reverse:
            hs = hs[::-1]
        return jnp.transpose(hs, (1, 0, 2))

    hf = lstm_dir(raw["w_ih_f"], raw["w_hh_f"], raw["b_ih_f"], raw["b_hh_f"], False)
    hb = lstm_dir(raw["w_ih_b"], raw["w_hh_b"], raw["b_ih_b"], raw["b_hh_b"], True)
    feat = jnp.transpose(jnp.concatenate([xs, hf, hb], axis=2), (0, 2, 1))  # (B, C, 8)

    def conv1d(inp, w, b):
        out = jax.lax.conv_general_dilated(
            inp, w, window_strides=(1,), padding="VALID",
            dimension_numbers=("NCH", "OIH", "NCH"))
        return out + b[None, :, None]

    c1 = jax.nn.relu(conv1d(feat, raw["w1"], raw["b1"]))
    c2 = jax.nn.relu(conv1d(c1, raw["w2"], raw["b2"]))
    pooled = jnp.max(c2, axis=2)
    return pooled @ raw["wfc"].T + raw["bfc"]


if __name__ == "__main__":
    B, input_dim, hidden_dim, num_classes = 2, 16, 32, 4
    key = jax.random.PRNGKey(0)
    kx, kp = jax.random.split(key)
    x = jax.random.normal(kx, (B, input_dim), jnp.float32)

    raw = init_raw_params(kp, input_dim, hidden_dim, num_classes)
    params = to_kernel_params(raw, input_dim, hidden_dim, num_classes)

    out = rcnn_forward(x, params)
    out = jax.block_until_ready(out)

    ref = rcnn_reference(x, raw)
    assert out.shape == (B, num_classes)
    # Kernel uses bf16 matmul operands (f32 accumulation/state); reference is pure f32.
    assert jnp.allclose(out, ref, rtol=5e-2, atol=5e-2), (out, ref)
    print("KERNEL_OK")
</pallas_src>

<mosaic_0001>
module attributes {stable_mosaic.version = 11 : i64} {
  func.func @_rcnn_kernel(%arg0: i32, %arg1: memref<16x128xf32, #tpu.memory_space<vmem>>, %arg2: memref<128x512xbf16, #tpu.memory_space<vmem>>, %arg3: memref<128x512xbf16, #tpu.memory_space<vmem>>, %arg4: memref<1x512xf32, #tpu.memory_space<vmem>>, %arg5: memref<128x256xbf16, #tpu.memory_space<vmem>>, %arg6: memref<1x256xf32, #tpu.memory_space<vmem>>, %arg7: memref<3x256x256xbf16, #tpu.memory_space<vmem>>, %arg8: memref<3x256x128xbf16, #tpu.memory_space<vmem>>, %arg9: memref<1x128xf32, #tpu.memory_space<vmem>>, %arg10: memref<128x128xbf16, #tpu.memory_space<vmem>>, %arg11: memref<1x128xf32, #tpu.memory_space<vmem>>, %arg12: memref<16x128xf32, #tpu.memory_space<vmem>>, %arg13: memref<128x256xbf16, #tpu.memory_space<vmem>>, %arg14: memref<96x256xbf16, #tpu.memory_space<vmem>>) attributes {dimension_semantics = [#tpu.dimension_semantics<parallel>], iteration_bounds = array<i64: 1>, scalar_prefetch = 0 : i64, scratch_operands = 2 : i64, tpu.core_type = #tpu.core_type<tc>, window_params = [{transform_indices = @transform_0, window_bounds = array<i64: 16, 128>}, {pipeline_mode = #tpu.pipeline_mode<synchronous>, transform_indices = @transform_1, window_bounds = array<i64: 128, 512>}, {pipeline_mode = #tpu.pipeline_mode<synchronous>, transform_indices = @transform_2, window_bounds = array<i64: 128, 512>}, {pipeline_mode = #tpu.pipeline_mode<synchronous>, transform_indices = @transform_3, window_bounds = array<i64: 1, 512>}, {pipeline_mode = #tpu.pipeline_mode<synchronous>, transform_indices = @transform_4, window_bounds = array<i64: 128, 256>}, {pipeline_mode = #tpu.pipeline_mode<synchronous>, transform_indices = @transform_5, window_bounds = array<i64: 1, 256>}, {pipeline_mode = #tpu.pipeline_mode<synchronous>, transform_indices = @transform_6, window_bounds = array<i64: 3, 256, 256>}, {pipeline_mode = #tpu.pipeline_mode<synchronous>, transform_indices = @transform_7, window_bounds = array<i64: 3, 256, 128>}, {pipeline_mode = #tpu.pipeline_mode<synchronous>, transform_indices = @transform_8, window_bounds = array<i64: 1, 128>}, {pipeline_mode = #tpu.pipeline_mode<synchronous>, transform_indices = @transform_9, window_bounds = array<i64: 128, 128>}, {pipeline_mode = #tpu.pipeline_mode<synchronous>, transform_indices = @transform_10, window_bounds = array<i64: 1, 128>}, {transform_indices = @transform_11, window_bounds = array<i64: 16, 128>}]} {
    %c0 = arith.constant 0 : index
    %c0_0 = arith.constant 0 : index
    %0 = vector.load %arg1[%c0, %c0_0] : memref<16x128xf32, #tpu.memory_space<vmem>>, vector<16x128xf32>
    %1 = arith.truncf %0 : vector<16x128xf32> to vector<16x128xbf16>
    %c0_1 = arith.constant 0 : index
    %c0_2 = arith.constant 0 : index
    %2 = vector.load %arg2[%c0_1, %c0_2] : memref<128x512xbf16, #tpu.memory_space<vmem>>, vector<128x512xbf16>
    %cst = arith.constant dense<0.000000e+00> : vector<16x512xf32>
    %3 = tpu.matmul %1, %2, %cst {dimension_numbers = #tpu.dot_dimension_numbers<[1], [0], [0], [1], [0, 0, 1, 1], [], []>} : vector<16x128xbf16>, vector<128x512xbf16>, vector<16x512xf32> -> vector<16x512xf32>
    %c0_3 = arith.constant 0 : index
    %c0_4 = arith.constant 0 : index
    %4 = vector.load %arg4[%c0_3, %c0_4] : memref<1x512xf32, #tpu.memory_space<vmem>>, vector<1x512xf32>
    %5 = vector.broadcast %4 : vector<1x512xf32> to vector<16x512xf32>
    %6 = arith.addf %3, %5 : vector<16x512xf32>
    %c0_5 = arith.constant 0 : index
    %c0_6 = arith.constant 0 : index
    %7 = vector.load %arg3[%c0_5, %c0_6] : memref<128x512xbf16, #tpu.memory_space<vmem>>, vector<128x512xbf16>
    %cst_7 = arith.constant 0.000000e+00 : f32
    %8 = vector.broadcast %cst_7 : f32 to vector<16x128xf32>
    %cst_8 = arith.constant 0.000000e+00 : f32
    %9 = vector.broadcast %cst_8 : f32 to vector<16x128xf32>
    %10 = arith.truncf %8 : vector<16x128xf32> to vector<16x128xbf16>
    %cst_9 = arith.constant dense<0.000000e+00> : vector<16x512xf32>
    %11 = tpu.matmul %10, %7, %cst_9 {dimension_numbers = #tpu.dot_dimension_numbers<[1], [0], [0], [1], [0, 0, 1, 1], [], []>} : vector<16x128xbf16>, vector<128x512xbf16>, vector<16x512xf32> -> vector<16x512xf32>
    %12 = arith.addf %6, %11 : vector<16x512xf32>
    %13 = vector.extract_strided_slice %12 {offsets = [0, 0], sizes = [16, 128], strides = [1, 1]} : vector<16x512xf32> to vector<16x128xf32>
    %14 = arith.negf %13 : vector<16x128xf32>
    %15 = math.exp %14 : vector<16x128xf32>
    %cst_10 = arith.constant 1.000000e+00 : f32
    %16 = vector.broadcast %cst_10 : f32 to vector<16x128xf32>
    %17 = arith.addf %16, %15 : vector<16x128xf32>
    %18 = arith.divf %16, %17 : vector<16x128xf32>
    %19 = vector.extract_strided_slice %12 {offsets = [0, 128], sizes = [16, 128], strides = [1, 1]} : vector<16x512xf32> to vector<16x128xf32>
    %20 = arith.negf %19 : vector<16x128xf32>
    %21 = math.exp %20 : vector<16x128xf32>
    %cst_11 = arith.constant 1.000000e+00 : f32
    %22 = vector.broadcast %cst_11 : f32 to vector<16x128xf32>
    %23 = arith.addf %22, %21 : vector<16x128xf32>
    %24 = arith.divf %22, %23 : vector<16x128xf32>
    %25 = vector.extract_strided_slice %12 {offsets = [0, 256], sizes = [16, 128], strides = [1, 1]} : vector<16x512xf32> to vector<16x128xf32>
    %26 = math.tanh %25 : vector<16x128xf32>
    %27 = vector.extract_strided_slice %12 {offsets = [0, 384], sizes = [16, 128], strides = [1, 1]} : vector<16x512xf32> to vector<16x128xf32>
    %28 = arith.negf %27 : vector<16x128xf32>
    %29 = math.exp %28 : vector<16x128xf32>
    %cst_12 = arith.constant 1.000000e+00 : f32
    %30 = vector.broadcast %cst_12 : f32 to vector<16x128xf32>
    %31 = arith.addf %30, %29 : vector<16x128xf32>
    %32 = arith.divf %30, %31 : vector<16x128xf32>
    %33 = arith.mulf %24, %9 : vector<16x128xf32>
    %34 = arith.mulf %18, %26 : vector<16x128xf32>
    %35 = arith.addf %33, %34 : vector<16x128xf32>
    %36 = math.tanh %35 : vector<16x128xf32>
    %37 = arith.mulf %32, %36 : vector<16x128xf32>
    %38 = arith.truncf %37 : vector<16x128xf32> to vector<16x128xbf16>
    %c0_13 = arith.constant 0 : index
    %c0_14 = arith.constant 0 : index
    %39 = vector.load %arg13[%c0_13, %c0_14] : memref<128x256xbf16, #tpu.memory_space<vmem>>, vector<16x128xbf16>
    tpu.vector_store %arg13[%c0_13, %c0_14], %38 {strides = array<i32>} : memref<128x256xbf16, #tpu.memory_space<vmem>>, vector<16x128xbf16>,
    %c112 = arith.constant 112 : index
    %c128 = arith.constant 128 : index
    %40 = vector.load %arg13[%c112, %c128] : memref<128x256xbf16, #tpu.memory_space<vmem>>, vector<16x128xbf16>
    tpu.vector_store %arg13[%c112, %c128], %38 {strides = array<i32>} : memref<128x256xbf16, #tpu.memory_space<vmem>>, vector<16x128xbf16>,
    %41 = arith.truncf %37 : vector<16x128xf32> to vector<16x128xbf16>
    %cst_15 = arith.constant dense<0.000000e+00> : vector<16x512xf32>
    %42 = tpu.matmul %41, %7, %cst_15 {dimension_numbers = #tpu.dot_dimension_numbers<[1], [0], [0], [1], [0, 0, 1, 1], [], []>} : vector<16x128xbf16>, vector<128x512xbf16>, vector<16x512xf32> -> vector<16x512xf32>
    %43 = arith.addf %6, %42 : vector<16x512xf32>
    %44 = vector.extract_strided_slice %43 {offsets = [0, 0], sizes = [16, 128], strides = [1, 1]} : vector<16x512xf32> to vector<16x128xf32>
    %45 = arith.negf %44 : vector<16x128xf32>
    %46 = math.exp %45 : vector<16x128xf32>
    %cst_16 = arith.constant 1.000000e+00 : f32
    %47 = vector.broadcast %cst_16 : f32 to vector<16x128xf32>
    %48 = arith.addf %47, %46 : vector<16x128xf32>
    %49 = arith.divf %47, %48 : vector<16x128xf32>
    %50 = vector.extract_strided_slice %43 {offsets = [0, 128], sizes = [16, 128], strides = [1, 1]} : vector<16x512xf32> to vector<16x128xf32>
    %51 = arith.negf %50 : vector<16x128xf32>
    %52 = math.exp %51 : vector<16x128xf32>
    %cst_17 = arith.constant 1.000000e+00 : f32
    %53 = vector.broadcast %cst_17 : f32 to vector<16x128xf32>
    %54 = arith.addf %53, %52 : vector<16x128xf32>
    %55 = arith.divf %53, %54 : vector<16x128xf32>
    %56 = vector.extract_strided_slice %43 {offsets = [0, 256], sizes = [16, 128], strides = [1, 1]} : vector<16x512xf32> to vector<16x128xf32>
    %57 = math.tanh %56 : vector<16x128xf32>
    %58 = vector.extract_strided_slice %43 {offsets = [0, 384], sizes = [16, 128], strides = [1, 1]} : vector<16x512xf32> to vector<16x128xf32>
    %59 = arith.negf %58 : vector<16x128xf32>
    %60 = math.exp %59 : vector<16x128xf32>
    %cst_18 = arith.constant 1.000000e+00 : f32
    %61 = vector.broadcast %cst_18 : f32 to vector<16x128xf32>
    %62 = arith.addf %61, %60 : vector<16x128xf32>
    %63 = arith.divf %61, %62 : vector<16x128xf32>
    %64 = arith.mulf %55, %35 : vector<16x128xf32>
    %65 = arith.mulf %49, %57 : vector<16x128xf32>
    %66 = arith.addf %64, %65 : vector<16x128xf32>
    %67 = math.tanh %66 : vector<16x128xf32>
    %68 = arith.mulf %63, %67 : vector<16x128xf32>
    %69 = arith.truncf %68 : vector<16x128xf32> to vector<16x128xbf16>
    %c16 = arith.constant 16 : index
    %c0_19 = arith.constant 0 : index
    %70 = vector.load %arg13[%c16, %c0_19] : memref<128x256xbf16, #tpu.memory_space<vmem>>, vector<16x128xbf16>
    tpu.vector_store %arg13[%c16, %c0_19], %69 {strides = array<i32>} : memref<128x256xbf16, #tpu.memory_space<vmem>>, vector<16x128xbf16>,
    %c96 = arith.constant 96 : index
    %c128_20 = arith.constant 128 : index
    %71 = vector.load %arg13[%c96, %c128_20] : memref<128x256xbf16, #tpu.memory_space<vmem>>, vector<16x128xbf16>
    tpu.vector_store %arg13[%c96, %c128_20], %69 {strides = array<i32>} : memref<128x256xbf16, #tpu.memory_space<vmem>>, vector<16x128xbf16>,
    %72 = arith.truncf %68 : vector<16x128xf32> to vector<16x128xbf16>
    %cst_21 = arith.constant dense<0.000000e+00> : vector<16x512xf32>
    %73 = tpu.matmul %72, %7, %cst_21 {dimension_numbers = #tpu.dot_dimension_numbers<[1], [0], [0], [1], [0, 0, 1, 1], [], []>} : vector<16x128xbf16>, vector<128x512xbf16>, vector<16x512xf32> -> vector<16x512xf32>
    %74 = arith.addf %6, %73 : vector<16x512xf32>
    %75 = vector.extract_strided_slice %74 {offsets = [0, 0], sizes = [16, 128], strides = [1, 1]} : vector<16x512xf32> to vector<16x128xf32>
    %76 = arith.negf %75 : vector<16x128xf32>
    %77 = math.exp %76 : vector<16x128xf32>
    %cst_22 = arith.constant 1.000000e+00 : f32
    %78 = vector.broadcast %cst_22 : f32 to vector<16x128xf32>
    %79 = arith.addf %78, %77 : vector<16x128xf32>
    %80 = arith.divf %78, %79 : vector<16x128xf32>
    %81 = vector.extract_strided_slice %74 {offsets = [0, 128], sizes = [16, 128], strides = [1, 1]} : vector<16x512xf32> to vector<16x128xf32>
    %82 = arith.negf %81 : vector<16x128xf32>
    %83 = math.exp %82 : vector<16x128xf32>
    %cst_23 = arith.constant 1.000000e+00 : f32
    %84 = vector.broadcast %cst_23 : f32 to vector<16x128xf32>
    %85 = arith.addf %84, %83 : vector<16x128xf32>
    %86 = arith.divf %84, %85 : vector<16x128xf32>
    %87 = vector.extract_strided_slice %74 {offsets = [0, 256], sizes = [16, 128], strides = [1, 1]} : vector<16x512xf32> to vector<16x128xf32>
    %88 = math.tanh %87 : vector<16x128xf32>
    %89 = vector.extract_strided_slice %74 {offsets = [0, 384], sizes = [16, 128], strides = [1, 1]} : vector<16x512xf32> to vector<16x128xf32>
    %90 = arith.negf %89 : vector<16x128xf32>
    %91 = math.exp %90 : vector<16x128xf32>
    %cst_24 = arith.constant 1.000000e+00 : f32
    %92 = vector.broadcast %cst_24 : f32 to vector<16x128xf32>
    %93 = arith.addf %92, %91 : vector<16x128xf32>
    %94 = arith.divf %92, %93 : vector<16x128xf32>
    %95 = arith.mulf %86, %66 : vector<16x128xf32>
    %96 = arith.mulf %80, %88 : vector<16x128xf32>
    %97 = arith.addf %95, %96 : vector<16x128xf32>
    %98 = math.tanh %97 : vector<16x128xf32>
    %99 = arith.mulf %94, %98 : vector<16x128xf32>
    %100 = arith.truncf %99 : vector<16x128xf32> to vector<16x128xbf16>
    %c32 = arith.constant 32 : index
    %c0_25 = arith.constant 0 : index
    %101 = vector.load %arg13[%c32, %c0_25] : memref<128x256xbf16, #tpu.memory_space<vmem>>, vector<16x128xbf16>
    tpu.vector_store %arg13[%c32, %c0_25], %100 {strides = array<i32>} : memref<128x256xbf16, #tpu.memory_space<vmem>>, vector<16x128xbf16>,
    %c80 = arith.constant 80 : index
    %c128_26 = arith.constant 128 : index
    %102 = vector.load %arg13[%c80, %c128_26] : memref<128x256xbf16, #tpu.memory_space<vmem>>, vector<16x128xbf16>
    tpu.vector_store %arg13[%c80, %c128_26], %100 {strides = array<i32>} : memref<128x256xbf16, #tpu.memory_space<vmem>>, vector<16x128xbf16>,
    %103 = arith.truncf %99 : vector<16x128xf32> to vector<16x128xbf16>
    %cst_27 = arith.constant dense<0.000000e+00> : vector<16x512xf32>
    %104 = tpu.matmul %103, %7, %cst_27 {dimension_numbers = #tpu.dot_dimension_numbers<[1], [0], [0], [1], [0, 0, 1, 1], [], []>} : vector<16x128xbf16>, vector<128x512xbf16>, vector<16x512xf32> -> vector<16x512xf32>
    %105 = arith.addf %6, %104 : vector<16x512xf32>
    %106 = vector.extract_strided_slice %105 {offsets = [0, 0], sizes = [16, 128], strides = [1, 1]} : vector<16x512xf32> to vector<16x128xf32>
    %107 = arith.negf %106 : vector<16x128xf32>
    %108 = math.exp %107 : vector<16x128xf32>
    %cst_28 = arith.constant 1.000000e+00 : f32
    %109 = vector.broadcast %cst_28 : f32 to vector<16x128xf32>
    %110 = arith.addf %109, %108 : vector<16x128xf32>
    %111 = arith.divf %109, %110 : vector<16x128xf32>
    %112 = vector.extract_strided_slice %105 {offsets = [0, 128], sizes = [16, 128], strides = [1, 1]} : vector<16x512xf32> to vector<16x128xf32>
    %113 = arith.negf %112 : vector<16x128xf32>
    %114 = math.exp %113 : vector<16x128xf32>
    %cst_29 = arith.constant 1.000000e+00 : f32
    %115 = vector.broadcast %cst_29 : f32 to vector<16x128xf32>
    %116 = arith.addf %115, %114 : vector<16x128xf32>
    %117 = arith.divf %115, %116 : vector<16x128xf32>
    %118 = vector.extract_strided_slice %105 {offsets = [0, 256], sizes = [16, 128], strides = [1, 1]} : vector<16x512xf32> to vector<16x128xf32>
    %119 = math.tanh %118 : vector<16x128xf32>
    %120 = vector.extract_strided_slice %105 {offsets = [0, 384], sizes = [16, 128], strides = [1, 1]} : vector<16x512xf32> to vector<16x128xf32>
    %121 = arith.negf %120 : vector<16x128xf32>
    %122 = math.exp %121 : vector<16x128xf32>
    %cst_30 = arith.constant 1.000000e+00 : f32
    %123 = vector.broadcast %cst_30 : f32 to vector<16x128xf32>
    %124 = arith.addf %123, %122 : vector<16x128xf32>
    %125 = arith.divf %123, %124 : vector<16x128xf32>
    %126 = arith.mulf %117, %97 : vector<16x128xf32>
    %127 = arith.mulf %111, %119 : vector<16x128xf32>
    %128 = arith.addf %126, %127 : vector<16x128xf32>
    %129 = math.tanh %128 : vector<16x128xf32>
    %130 = arith.mulf %125, %129 : vector<16x128xf32>
    %131 = arith.truncf %130 : vector<16x128xf32> to vector<16x128xbf16>
    %c48 = arith.constant 48 : index
    %c0_31 = arith.constant 0 : index
    %132 = vector.load %arg13[%c48, %c0_31] : memref<128x256xbf16, #tpu.memory_space<vmem>>, vector<16x128xbf16>
    tpu.vector_store %arg13[%c48, %c0_31], %131 {strides = array<i32>} : memref<128x256xbf16, #tpu.memory_space<vmem>>, vector<16x128xbf16>,
    %c64 = arith.constant 64 : index
    %c128_32 = arith.constant 128 : index
    %133 = vector.load %arg13[%c64, %c128_32] : memref<128x256xbf16, #tpu.memory_space<vmem>>, vector<16x128xbf16>
    tpu.vector_store %arg13[%c64, %c128_32], %131 {strides = array<i32>} : memref<128x256xbf16, #tpu.memory_space<vmem>>, vector<16x128xbf16>,
    %134 = arith.truncf %130 : vector<16x128xf32> to vector<16x128xbf16>
    %cst_33 = arith.constant dense<0.000000e+00> : vector<16x512xf32>
    %135 = tpu.matmul %134, %7, %cst_33 {dimension_numbers = #tpu.dot_dimension_numbers<[1], [0], [0], [1], [0, 0, 1, 1], [], []>} : vector<16x128xbf16>, vector<128x512xbf16>, vector<16x512xf32> -> vector<16x512xf32>
    %136 = arith.addf %6, %135 : vector<16x512xf32>
    %137 = vector.extract_strided_slice %136 {offsets = [0, 0], sizes = [16, 128], strides = [1, 1]} : vector<16x512xf32> to vector<16x128xf32>
    %138 = arith.negf %137 : vector<16x128xf32>
    %139 = math.exp %138 : vector<16x128xf32>
    %cst_34 = arith.constant 1.000000e+00 : f32
    %140 = vector.broadcast %cst_34 : f32 to vector<16x128xf32>
    %141 = arith.addf %140, %139 : vector<16x128xf32>
    %142 = arith.divf %140, %141 : vector<16x128xf32>
    %143 = vector.extract_strided_slice %136 {offsets = [0, 128], sizes = [16, 128], strides = [1, 1]} : vector<16x512xf32> to vector<16x128xf32>
    %144 = arith.negf %143 : vector<16x128xf32>
    %145 = math.exp %144 : vector<16x128xf32>
    %cst_35 = arith.constant 1.000000e+00 : f32
    %146 = vector.broadcast %cst_35 : f32 to vector<16x128xf32>
    %147 = arith.addf %146, %145 : vector<16x128xf32>
    %148 = arith.divf %146, %147 : vector<16x128xf32>
    %149 = vector.extract_strided_slice %136 {offsets = [0, 256], sizes = [16, 128], strides = [1, 1]} : vector<16x512xf32> to vector<16x128xf32>
    %150 = math.tanh %149 : vector<16x128xf32>
    %151 = vector.extract_strided_slice %136 {offsets = [0, 384], sizes = [16, 128], strides = [1, 1]} : vector<16x512xf32> to vector<16x128xf32>
    %152 = arith.negf %151 : vector<16x128xf32>
    %153 = math.exp %152 : vector<16x128xf32>
    %cst_36 = arith.constant 1.000000e+00 : f32
    %154 = vector.broadcast %cst_36 : f32 to vector<16x128xf32>
    %155 = arith.addf %154, %153 : vector<16x128xf32>
    %156 = arith.divf %154, %155 : vector<16x128xf32>
    %157 = arith.mulf %148, %128 : vector<16x128xf32>
    %158 = arith.mulf %142, %150 : vector<16x128xf32>
    %159 = arith.addf %157, %158 : vector<16x128xf32>
    %160 = math.tanh %159 : vector<16x128xf32>
    %161 = arith.mulf %156, %160 : vector<16x128xf32>
    %162 = arith.truncf %161 : vector<16x128xf32> to vector<16x128xbf16>
    %c64_37 = arith.constant 64 : index
    %c0_38 = arith.constant 0 : index
    %163 = vector.load %arg13[%c64_37, %c0_38] : memref<128x256xbf16, #tpu.memory_space<vmem>>, vector<16x128xbf16>
    tpu.vector_store %arg13[%c64_37, %c0_38], %162 {strides = array<i32>} : memref<128x256xbf16, #tpu.memory_space<vmem>>, vector<16x128xbf16>,
    %c48_39 = arith.constant 48 : index
    %c128_40 = arith.constant 128 : index
    %164 = vector.load %arg13[%c48_39, %c128_40] : memref<128x256xbf16, #tpu.memory_space<vmem>>, vector<16x128xbf16>
    tpu.vector_store %arg13[%c48_39, %c128_40], %162 {strides = array<i32>} : memref<128x256xbf16, #tpu.memory_space<vmem>>, vector<16x128xbf16>,
    %165 = arith.truncf %161 : vector<16x128xf32> to vector<16x128xbf16>
    %cst_41 = arith.constant dense<0.000000e+00> : vector<16x512xf32>
    %166 = tpu.matmul %165, %7, %cst_41 {dimension_numbers = #tpu.dot_dimension_numbers<[1], [0], [0], [1], [0, 0, 1, 1], [], []>} : vector<16x128xbf16>, vector<128x512xbf16>, vector<16x512xf32> -> vector<16x512xf32>
    %167 = arith.addf %6, %166 : vector<16x512xf32>
    %168 = vector.extract_strided_slice %167 {offsets = [0, 0], sizes = [16, 128], strides = [1, 1]} : vector<16x512xf32> to vector<16x128xf32>
    %169 = arith.negf %168 : vector<16x128xf32>
    %170 = math.exp %169 : vector<16x128xf32>
    %cst_42 = arith.constant 1.000000e+00 : f32
    %171 = vector.broadcast %cst_42 : f32 to vector<16x128xf32>
    %172 = arith.addf %171, %170 : vector<16x128xf32>
    %173 = arith.divf %171, %172 : vector<16x128xf32>
    %174 = vector.extract_strided_slice %167 {offsets = [0, 128], sizes = [16, 128], strides = [1, 1]} : vector<16x512xf32> to vector<16x128xf32>
    %175 = arith.negf %174 : vector<16x128xf32>
    %176 = math.exp %175 : vector<16x128xf32>
    %cst_43 = arith.constant 1.000000e+00 : f32
    %177 = vector.broadcast %cst_43 : f32 to vector<16x128xf32>
    %178 = arith.addf %177, %176 : vector<16x128xf32>
    %179 = arith.divf %177, %178 : vector<16x128xf32>
    %180 = vector.extract_strided_slice %167 {offsets = [0, 256], sizes = [16, 128], strides = [1, 1]} : vector<16x512xf32> to vector<16x128xf32>
    %181 = math.tanh %180 : vector<16x128xf32>
    %182 = vector.extract_strided_slice %167 {offsets = [0, 384], sizes = [16, 128], strides = [1, 1]} : vector<16x512xf32> to vector<16x128xf32>
    %183 = arith.negf %182 : vector<16x128xf32>
    %184 = math.exp %183 : vector<16x128xf32>
    %cst_44 = arith.constant 1.000000e+00 : f32
    %185 = vector.broadcast %cst_44 : f32 to vector<16x128xf32>
    %186 = arith.addf %185, %184 : vector<16x128xf32>
    %187 = arith.divf %185, %186 : vector<16x128xf32>
    %188 = arith.mulf %179, %159 : vector<16x128xf32>
    %189 = arith.mulf %173, %181 : vector<16x128xf32>
    %190 = arith.addf %188, %189 : vector<16x128xf32>
    %191 = math.tanh %190 : vector<16x128xf32>
    %192 = arith.mulf %187, %191 : vector<16x128xf32>
    %193 = arith.truncf %192 : vector<16x128xf32> to vector<16x128xbf16>
    %c80_45 = arith.constant 80 : index
    %c0_46 = arith.constant 0 : index
    %194 = vector.load %arg13[%c80_45, %c0_46] : memref<128x256xbf16, #tpu.memory_space<vmem>>, vector<16x128xbf16>
    tpu.vector_store %arg13[%c80_45, %c0_46], %193 {strides = array<i32>} : memref<128x256xbf16, #tpu.memory_space<vmem>>, vector<16x128xbf16>,
    %c32_47 = arith.constant 32 : index
    %c128_48 = arith.constant 128 : index
    %195 = vector.load %arg13[%c32_47, %c128_48] : memref<128x256xbf16, #tpu.memory_space<vmem>>, vector<16x128xbf16>
    tpu.vector_store %arg13[%c32_47, %c128_48], %193 {strides = array<i32>} : memref<128x256xbf16, #tpu.memory_space<vmem>>, vector<16x128xbf16>,
    %196 = arith.truncf %192 : vector<16x128xf32> to vector<16x128xbf16>
    %cst_49 = arith.constant dense<0.000000e+00> : vector<16x512xf32>
    %197 = tpu.matmul %196, %7, %cst_49 {dimension_numbers = #tpu.dot_dimension_numbers<[1], [0], [0], [1], [0, 0, 1, 1], [], []>} : vector<16x128xbf16>, vector<128x512xbf16>, vector<16x512xf32> -> vector<16x512xf32>
    %198 = arith.addf %6, %197 : vector<16x512xf32>
    %199 = vector.extract_strided_slice %198 {offsets = [0, 0], sizes = [16, 128], strides = [1, 1]} : vector<16x512xf32> to vector<16x128xf32>
    %200 = arith.negf %199 : vector<16x128xf32>
    %201 = math.exp %200 : vector<16x128xf32>
    %cst_50 = arith.constant 1.000000e+00 : f32
    %202 = vector.broadcast %cst_50 : f32 to vector<16x128xf32>
    %203 = arith.addf %202, %201 : vector<16x128xf32>
    %204 = arith.divf %202, %203 : vector<16x128xf32>
    %205 = vector.extract_strided_slice %198 {offsets = [0, 128], sizes = [16, 128], strides = [1, 1]} : vector<16x512xf32> to vector<16x128xf32>
    %206 = arith.negf %205 : vector<16x128xf32>
    %207 = math.exp %206 : vector<16x128xf32>
    %cst_51 = arith.constant 1.000000e+00 : f32
    %208 = vector.broadcast %cst_51 : f32 to vector<16x128xf32>
    %209 = arith.addf %208, %207 : vector<16x128xf32>
    %210 = arith.divf %208, %209 : vector<16x128xf32>
    %211 = vector.extract_strided_slice %198 {offsets = [0, 256], sizes = [16, 128], strides = [1, 1]} : vector<16x512xf32> to vector<16x128xf32>
    %212 = math.tanh %211 : vector<16x128xf32>
    %213 = vector.extract_strided_slice %198 {offsets = [0, 384], sizes = [16, 128], strides = [1, 1]} : vector<16x512xf32> to vector<16x128xf32>
    %214 = arith.negf %213 : vector<16x128xf32>
    %215 = math.exp %214 : vector<16x128xf32>
    %cst_52 = arith.constant 1.000000e+00 : f32
    %216 = vector.broadcast %cst_52 : f32 to vector<16x128xf32>
    %217 = arith.addf %216, %215 : vector<16x128xf32>
    %218 = arith.divf %216, %217 : vector<16x128xf32>
    %219 = arith.mulf %210, %190 : vector<16x128xf32>
    %220 = arith.mulf %204, %212 : vector<16x128xf32>
    %221 = arith.addf %219, %220 : vector<16x128xf32>
    %222 = math.tanh %221 : vector<16x128xf32>
    %223 = arith.mulf %218, %222 : vector<16x128xf32>
    %224 = arith.truncf %223 : vector<16x128xf32> to vector<16x128xbf16>
    %c96_53 = arith.constant 96 : index
    %c0_54 = arith.constant 0 : index
    %225 = vector.load %arg13[%c96_53, %c0_54] : memref<128x256xbf16, #tpu.memory_space<vmem>>, vector<16x128xbf16>
    tpu.vector_store %arg13[%c96_53, %c0_54], %224 {strides = array<i32>} : memref<128x256xbf16, #tpu.memory_space<vmem>>, vector<16x128xbf16>,
    %c16_55 = arith.constant 16 : index
    %c128_56 = arith.constant 128 : index
    %226 = vector.load %arg13[%c16_55, %c128_56] : memref<128x256xbf16, #tpu.memory_space<vmem>>, vector<16x128xbf16>
    tpu.vector_store %arg13[%c16_55, %c128_56], %224 {strides = array<i32>} : memref<128x256xbf16, #tpu.memory_space<vmem>>, vector<16x128xbf16>,
    %227 = arith.truncf %223 : vector<16x128xf32> to vector<16x128xbf16>
    %cst_57 = arith.constant dense<0.000000e+00> : vector<16x512xf32>
    %228 = tpu.matmul %227, %7, %cst_57 {dimension_numbers = #tpu.dot_dimension_numbers<[1], [0], [0], [1], [0, 0, 1, 1], [], []>} : vector<16x128xbf16>, vector<128x512xbf16>, vector<16x512xf32> -> vector<16x512xf32>
    %229 = arith.addf %6, %228 : vector<16x512xf32>
    %230 = vector.extract_strided_slice %229 {offsets = [0, 0], sizes = [16, 128], strides = [1, 1]} : vector<16x512xf32> to vector<16x128xf32>
    %231 = arith.negf %230 : vector<16x128xf32>
    %232 = math.exp %231 : vector<16x128xf32>
    %cst_58 = arith.constant 1.000000e+00 : f32
    %233 = vector.broadcast %cst_58 : f32 to vector<16x128xf32>
    %234 = arith.addf %233, %232 : vector<16x128xf32>
    %235 = arith.divf %233, %234 : vector<16x128xf32>
    %236 = vector.extract_strided_slice %229 {offsets = [0, 128], sizes = [16, 128], strides = [1, 1]} : vector<16x512xf32> to vector<16x128xf32>
    %237 = arith.negf %236 : vector<16x128xf32>
    %238 = math.exp %237 : vector<16x128xf32>
    %cst_59 = arith.constant 1.000000e+00 : f32
    %239 = vector.broadcast %cst_59 : f32 to vector<16x128xf32>
    %240 = arith.addf %239, %238 : vector<16x128xf32>
    %241 = arith.divf %239, %240 : vector<16x128xf32>
    %242 = vector.extract_strided_slice %229 {offsets = [0, 256], sizes = [16, 128], strides = [1, 1]} : vector<16x512xf32> to vector<16x128xf32>
    %243 = math.tanh %242 : vector<16x128xf32>
    %244 = vector.extract_strided_slice %229 {offsets = [0, 384], sizes = [16, 128], strides = [1, 1]} : vector<16x512xf32> to vector<16x128xf32>
    %245 = arith.negf %244 : vector<16x128xf32>
    %246 = math.exp %245 : vector<16x128xf32>
    %cst_60 = arith.constant 1.000000e+00 : f32
    %247 = vector.broadcast %cst_60 : f32 to vector<16x128xf32>
    %248 = arith.addf %247, %246 : vector<16x128xf32>
    %249 = arith.divf %247, %248 : vector<16x128xf32>
    %250 = arith.mulf %241, %221 : vector<16x128xf32>
    %251 = arith.mulf %235, %243 : vector<16x128xf32>
    %252 = arith.addf %250, %251 : vector<16x128xf32>
    %253 = math.tanh %252 : vector<16x128xf32>
    %254 = arith.mulf %249, %253 : vector<16x128xf32>
    %255 = arith.truncf %254 : vector<16x128xf32> to vector<16x128xbf16>
    %c112_61 = arith.constant 112 : index
    %c0_62 = arith.constant 0 : index
    %256 = vector.load %arg13[%c112_61, %c0_62] : memref<128x256xbf16, #tpu.memory_space<vmem>>, vector<16x128xbf16>
    tpu.vector_store %arg13[%c112_61, %c0_62], %255 {strides = array<i32>} : memref<128x256xbf16, #tpu.memory_space<vmem>>, vector<16x128xbf16>,
    %c0_63 = arith.constant 0 : index
    %c128_64 = arith.constant 128 : index
    %257 = vector.load %arg13[%c0_63, %c128_64] : memref<128x256xbf16, #tpu.memory_space<vmem>>, vector<16x128xbf16>
    tpu.vector_store %arg13[%c0_63, %c128_64], %255 {strides = array<i32>} : memref<128x256xbf16, #tpu.memory_space<vmem>>, vector<16x128xbf16>,
    %c0_65 = arith.constant 0 : index
    %c0_66 = arith.constant 0 : index
    %258 = vector.load %arg5[%c0_65, %c0_66] : memref<128x256xbf16, #tpu.memory_space<vmem>>, vector<128x256xbf16>
    %cst_67 = arith.constant dense<0.000000e+00> : vector<16x256xf32>
    %259 = tpu.matmul %1, %258, %cst_67 {dimension_numbers = #tpu.dot_dimension_numbers<[1], [0], [0], [1], [0, 0, 1, 1], [], []>} : vector<16x128xbf16>, vector<128x256xbf16>, vector<16x256xf32> -> vector<16x256xf32>
    %c0_68 = arith.constant 0 : index
    %c0_69 = arith.constant 0 : index
    %260 = vector.load %arg6[%c0_68, %c0_69] : memref<1x256xf32, #tpu.memory_space<vmem>>, vector<1x256xf32>
    %261 = vector.broadcast %260 : vector<1x256xf32> to vector<16x256xf32>
    %262 = arith.addf %259, %261 : vector<16x256xf32>
    %263 = tpu.concatenate %262, %262, %262, %262, %262, %262 in 0 : vector<16x256xf32>, vector<16x256xf32>, vector<16x256xf32>, vector<16x256xf32>, vector<16x256xf32>, vector<16x256xf32> -> vector<96x256xf32>
    %c0_70 = arith.constant 0 : index
    %c0_71 = arith.constant 0 : index
    %264 = vector.load %arg13[%c0_70, %c0_71] : memref<128x256xbf16, #tpu.memory_space<vmem>>, vector<96x256xbf16>
    %c0_72 = arith.constant 0 : index
    %c0_73 = arith.constant 0 : index
    %c0_74 = arith.constant 0 : index
    %265 = vector.load %arg7[%c0_72, %c0_73, %c0_74] : memref<3x256x256xbf16, #tpu.memory_space<vmem>>, vector<1x256x256xbf16>
    %266 = vector.shape_cast %265 : vector<1x256x256xbf16> to vector<256x256xbf16>
    %cst_75 = arith.constant dense<0.000000e+00> : vector<96x256xf32>
    %267 = tpu.matmul %264, %266, %cst_75 {dimension_numbers = #tpu.dot_dimension_numbers<[1], [0], [0], [1], [0, 0, 1, 1], [], []>} : vector<96x256xbf16>, vector<256x256xbf16>, vector<96x256xf32> -> vector<96x256xf32>
    %268 = arith.addf %263, %267 : vector<96x256xf32>
    %c16_76 = arith.constant 16 : index
    %c0_77 = arith.constant 0 : index
    %269 = vector.load %arg13[%c16_76, %c0_77] : memref<128x256xbf16, #tpu.memory_space<vmem>>, vector<96x256xbf16>
    %c1 = arith.constant 1 : index
    %c0_78 = arith.constant 0 : index
    %c0_79 = arith.constant 0 : index
    %270 = vector.load %arg7[%c1, %c0_78, %c0_79] : memref<3x256x256xbf16, #tpu.memory_space<vmem>>, vector<1x256x256xbf16>
    %271 = vector.shape_cast %270 : vector<1x256x256xbf16> to vector<256x256xbf16>
    %cst_80 = arith.constant dense<0.000000e+00> : vector<96x256xf32>
    %272 = tpu.matmul %269, %271, %cst_80 {dimension_numbers = #tpu.dot_dimension_numbers<[1], [0], [0], [1], [0, 0, 1, 1], [], []>} : vector<96x256xbf16>, vector<256x256xbf16>, vector<96x256xf32> -> vector<96x256xf32>
    %273 = arith.addf %268, %272 : vector<96x256xf32>
    %c32_81 = arith.constant 32 : index
    %c0_82 = arith.constant 0 : index
    %274 = vector.load %arg13[%c32_81, %c0_82] : memref<128x256xbf16, #tpu.memory_space<vmem>>, vector<96x256xbf16>
    %c2 = arith.constant 2 : index
    %c0_83 = arith.constant 0 : index
    %c0_84 = arith.constant 0 : index
    %275 = vector.load %arg7[%c2, %c0_83, %c0_84] : memref<3x256x256xbf16, #tpu.memory_space<vmem>>, vector<1x256x256xbf16>
    %276 = vector.shape_cast %275 : vector<1x256x256xbf16> to vector<256x256xbf16>
    %cst_85 = arith.constant dense<0.000000e+00> : vector<96x256xf32>
    %277 = tpu.matmul %274, %276, %cst_85 {dimension_numbers = #tpu.dot_dimension_numbers<[1], [0], [0], [1], [0, 0, 1, 1], [], []>} : vector<96x256xbf16>, vector<256x256xbf16>, vector<96x256xf32> -> vector<96x256xf32>
    %278 = arith.addf %273, %277 : vector<96x256xf32>
    %cst_86 = arith.constant 0.000000e+00 : f32
    %279 = vector.broadcast %cst_86 : f32 to vector<96x256xf32>
    %280 = arith.maximumf %278, %279 : vector<96x256xf32>
    %281 = arith.truncf %280 : vector<96x256xf32> to vector<96x256xbf16>
    %c0_87 = arith.constant 0 : index
    %c0_88 = arith.constant 0 : index
    %282 = vector.load %arg14[%c0_87, %c0_88] : memref<96x256xbf16, #tpu.memory_space<vmem>>, vector<96x256xbf16>
    tpu.vector_store %arg14[%c0_87, %c0_88], %281 {strides = array<i32>} : memref<96x256xbf16, #tpu.memory_space<vmem>>, vector<96x256xbf16>,
    %c0_89 = arith.constant 0 : index
    %c0_90 = arith.constant 0 : index
    %283 = vector.load %arg14[%c0_89, %c0_90] : memref<96x256xbf16, #tpu.memory_space<vmem>>, vector<64x256xbf16>
    %c0_91 = arith.constant 0 : index
    %c0_92 = arith.constant 0 : index
    %c0_93 = arith.constant 0 : index
    %284 = vector.load %arg8[%c0_91, %c0_92, %c0_93] : memref<3x256x128xbf16, #tpu.memory_space<vmem>>, vector<1x256x128xbf16>
    %285 = vector.shape_cast %284 : vector<1x256x128xbf16> to vector<256x128xbf16>
    %cst_94 = arith.constant dense<0.000000e+00> : vector<64x128xf32>
    %286 = tpu.matmul %283, %285, %cst_94 {dimension_numbers = #tpu.dot_dimension_numbers<[1], [0], [0], [1], [0, 0, 1, 1], [], []>} : vector<64x256xbf16>, vector<256x128xbf16>, vector<64x128xf32> -> vector<64x128xf32>
    %c16_95 = arith.constant 16 : index
    %c0_96 = arith.constant 0 : index
    %287 = vector.load %arg14[%c16_95, %c0_96] : memref<96x256xbf16, #tpu.memory_space<vmem>>, vector<64x256xbf16>
    %c1_97 = arith.constant 1 : index
    %c0_98 = arith.constant 0 : index
    %c0_99 = arith.constant 0 : index
    %288 = vector.load %arg8[%c1_97, %c0_98, %c0_99] : memref<3x256x128xbf16, #tpu.memory_space<vmem>>, vector<1x256x128xbf16>
    %289 = vector.shape_cast %288 : vector<1x256x128xbf16> to vector<256x128xbf16>
    %cst_100 = arith.constant dense<0.000000e+00> : vector<64x128xf32>
    %290 = tpu.matmul %287, %289, %cst_100 {dimension_numbers = #tpu.dot_dimension_numbers<[1], [0], [0], [1], [0, 0, 1, 1], [], []>} : vector<64x256xbf16>, vector<256x128xbf16>, vector<64x128xf32> -> vector<64x128xf32>
    %291 = arith.addf %286, %290 : vector<64x128xf32>
    %c32_101 = arith.constant 32 : index
    %c0_102 = arith.constant 0 : index
    %292 = vector.load %arg14[%c32_101, %c0_102] : memref<96x256xbf16, #tpu.memory_space<vmem>>, vector<64x256xbf16>
    %c2_103 = arith.constant 2 : index
    %c0_104 = arith.constant 0 : index
    %c0_105 = arith.constant 0 : index
    %293 = vector.load %arg8[%c2_103, %c0_104, %c0_105] : memref<3x256x128xbf16, #tpu.memory_space<vmem>>, vector<1x256x128xbf16>
    %294 = vector.shape_cast %293 : vector<1x256x128xbf16> to vector<256x128xbf16>
    %cst_106 = arith.constant dense<0.000000e+00> : vector<64x128xf32>
    %295 = tpu.matmul %292, %294, %cst_106 {dimension_numbers = #tpu.dot_dimension_numbers<[1], [0], [0], [1], [0, 0, 1, 1], [], []>} : vector<64x256xbf16>, vector<256x128xbf16>, vector<64x128xf32> -> vector<64x128xf32>
    %296 = arith.addf %291, %295 : vector<64x128xf32>
    %c0_107 = arith.constant 0 : index
    %c0_108 = arith.constant 0 : index
    %297 = vector.load %arg9[%c0_107, %c0_108] : memref<1x128xf32, #tpu.memory_space<vmem>>, vector<1x128xf32>
    %298 = vector.broadcast %297 : vector<1x128xf32> to vector<64x128xf32>
    %299 = arith.addf %296, %298 : vector<64x128xf32>
    %cst_109 = arith.constant 0.000000e+00 : f32
    %300 = vector.broadcast %cst_109 : f32 to vector<64x128xf32>
    %301 = arith.maximumf %299, %300 : vector<64x128xf32>
    %302 = vector.extract_strided_slice %301 {offsets = [0, 0], sizes = [16, 128], strides = [1, 1]} : vector<64x128xf32> to vector<16x128xf32>
    %303 = vector.extract_strided_slice %301 {offsets = [16, 0], sizes = [16, 128], strides = [1, 1]} : vector<64x128xf32> to vector<16x128xf32>
    %304 = arith.maximumf %302, %303 : vector<16x128xf32>
    %305 = vector.extract_strided_slice %301 {offsets = [32, 0], sizes = [16, 128], strides = [1, 1]} : vector<64x128xf32> to vector<16x128xf32>
    %306 = arith.maximumf %304, %305 : vector<16x128xf32>
    %307 = vector.extract_strided_slice %301 {offsets = [48, 0], sizes = [16, 128], strides = [1, 1]} : vector<64x128xf32> to vector<16x128xf32>
    %308 = arith.maximumf %306, %307 : vector<16x128xf32>
    %309 = arith.truncf %308 : vector<16x128xf32> to vector<16x128xbf16>
    %c0_110 = arith.constant 0 : index
    %c0_111 = arith.constant 0 : index
    %310 = vector.load %arg10[%c0_110, %c0_111] : memref<128x128xbf16, #tpu.memory_space<vmem>>, vector<128x128xbf16>
    %cst_112 = arith.constant dense<0.000000e+00> : vector<16x128xf32>
    %311 = tpu.matmul %309, %310, %cst_112 {dimension_numbers = #tpu.dot_dimension_numbers<[1], [0], [0], [1], [0, 0, 1, 1], [], []>} : vector<16x128xbf16>, vector<128x128xbf16>, vector<16x128xf32> -> vector<16x128xf32>
    %c0_113 = arith.constant 0 : index
    %c0_114 = arith.constant 0 : index
    %312 = vector.load %arg11[%c0_113, %c0_114] : memref<1x128xf32, #tpu.memory_space<vmem>>, vector<1x128xf32>
    %313 = vector.broadcast %312 : vector<1x128xf32> to vector<16x128xf32>
    %314 = arith.addf %311, %313 : vector<16x128xf32>
    %c0_115 = arith.constant 0 : index
    %c0_116 = arith.constant 0 : index
    %315 = vector.load %arg12[%c0_115, %c0_116] : memref<16x128xf32, #tpu.memory_space<vmem>>, vector<16x128xf32>
    tpu.vector_store %arg12[%c0_115, %c0_116], %314 {strides = array<i32>} : memref<16x128xf32, #tpu.memory_space<vmem>>, vector<16x128xf32>,
    return
  }
  func.func @transform_0(%arg0: i32) -> (i32, i32) {
    %c0_i32 = arith.constant 0 : i32
    %c0_i32_0 = arith.constant 0 : i32
    return %arg0, %c0_i32 : i32, i32
  }
  func.func @transform_1(%arg0: i32) -> (i32, i32) {
    %c0_i32 = arith.constant 0 : i32
    %c0_i32_0 = arith.constant 0 : i32
    %c0_i32_1 = arith.constant 0 : i32
    return %c0_i32, %c0_i32_0 : i32, i32
  }
  func.func @transform_2(%arg0: i32) -> (i32, i32) {
    %c0_i32 = arith.constant 0 : i32
    %c0_i32_0 = arith.constant 0 : i32
    %c0_i32_1 = arith.constant 0 : i32
    return %c0_i32, %c0_i32_0 : i32, i32
  }
  func.func @transform_3(%arg0: i32) -> (i32, i32) {
    %c0_i32 = arith.constant 0 : i32
    %c0_i32_0 = arith.constant 0 : i32
    %c0_i32_1 = arith.constant 0 : i32
    return %c0_i32, %c0_i32_0 : i32, i32
  }
  func.func @transform_4(%arg0: i32) -> (i32, i32) {
    %c0_i32 = arith.constant 0 : i32
    %c0_i32_0 = arith.constant 0 : i32
    %c0_i32_1 = arith.constant 0 : i32
    return %c0_i32, %c0_i32_0 : i32, i32
  }
  func.func @transform_5(%arg0: i32) -> (i32, i32) {
    %c0_i32 = arith.constant 0 : i32
    %c0_i32_0 = arith.constant 0 : i32
    %c0_i32_1 = arith.constant 0 : i32
    return %c0_i32, %c0_i32_0 : i32, i32
  }
  func.func @transform_6(%arg0: i32) -> (i32, i32, i32) {
    %c0_i32 = arith.constant 0 : i32
    %c0_i32_0 = arith.constant 0 : i32
    %c0_i32_1 = arith.constant 0 : i32
    %c0_i32_2 = arith.constant 0 : i32
    return %c0_i32, %c0_i32_0, %c0_i32_1 : i32, i32, i32
  }
  func.func @transform_7(%arg0: i32) -> (i32, i32, i32) {
    %c0_i32 = arith.constant 0 : i32
    %c0_i32_0 = arith.constant 0 : i32
    %c0_i32_1 = arith.constant 0 : i32
    %c0_i32_2 = arith.constant 0 : i32
    return %c0_i32, %c0_i32_0, %c0_i32_1 : i32, i32, i32
  }
  func.func @transform_8(%arg0: i32) -> (i32, i32) {
    %c0_i32 = arith.constant 0 : i32
    %c0_i32_0 = arith.constant 0 : i32
    %c0_i32_1 = arith.constant 0 : i32
    return %c0_i32, %c0_i32_0 : i32, i32
  }
  func.func @transform_9(%arg0: i32) -> (i32, i32) {
    %c0_i32 = arith.constant 0 : i32
    %c0_i32_0 = arith.constant 0 : i32
    %c0_i32_1 = arith.constant 0 : i32
    return %c0_i32, %c0_i32_0 : i32, i32
  }
  func.func @transform_10(%arg0: i32) -> (i32, i32) {
    %c0_i32 = arith.constant 0 : i32
    %c0_i32_0 = arith.constant 0 : i32
    %c0_i32_1 = arith.constant 0 : i32
    return %c0_i32, %c0_i32_0 : i32, i32
  }
  func.func @transform_11(%arg0: i32) -> (i32, i32) {
    %c0_i32 = arith.constant 0 : i32
    %c0_i32_0 = arith.constant 0 : i32
    return %arg0, %c0_i32 : i32, i32
  }
}

</mosaic_0001>

<bundles_post_ra>
// kernel: tpu_custom_call.1
= control target key start
LH: loop header
LB: loop body
LE: loop exit
PB: predicated region body
PF: predicated region fallthrough
CT: control target
= control target key end

     0   :  { %16 = vsyncpa [#allocation5], 0  ;;  %s6402_s0 = inlined_call_operand.hbm [shape: f32[16,128], index: 0, kind: input, shape index: {}]   ;;  %s6403_s1 = inlined_call_operand.hbm [shape: bf16[128,512], index: 1, kind: input, shape index: {}]   ;;  %s6404_s2 = inlined_call_operand.hbm [shape: bf16[128,512], index: 2, kind: input, shape index: {}]   ;;  %s6405_s3 = inlined_call_operand.vmem [shape: f32[1,512], index: 3, kind: input, shape index: {}]   ;;  %s6406_s4 = inlined_call_operand.hbm [shape: bf16[128,256], index: 4, kind: input, shape index: {}]   ;;  %s6407_s5 = inlined_call_operand.vmem [shape: f32[1,256], index: 5, kind: input, shape index: {}]   ;;  %s6408_s6 = inlined_call_operand.hbm [shape: bf16[3,256,256], index: 6, kind: input, shape index: {}]   ;;  %s6409_s7 = inlined_call_operand.hbm [shape: bf16[3,256,128], index: 7, kind: input, shape index: {}]   ;;  %s6410_s8 = inlined_call_operand.vmem [shape: f32[1,128], index: 8, kind: input, shape index: {}]   ;;  %s6411_s9 = inlined_call_operand.hbm [shape: bf16[128,128], index: 9, kind: input, shape index: {}]   ;;  %s6412_s10 = inlined_call_operand.vmem [shape: f32[1,128], index: 10, kind: input, shape index: {}]   ;;  %s6413_s11 = inlined_call_operand.hbm [shape: f32[16,128], index: 11, kind: output, shape index: {}]  }
   0x1   :  { %17 = vsyncpa [#allocation8], 0 }
   0x2   :  { %18 = vsyncpa [#allocation11], 0 }
   0x3   :  { %19 = vsyncpa [#allocation14], 0 }
   0x4   :  { %20 = vsyncpa [#allocation6], 0  ;;  %s5499_s17 = smov [#allocation7]  }
   0x5   :  { %s38_s18 = sshll.u32 %s5499_s17, 4  ;;  %s39_s18 = int_to_ptr.vmem [resolvable:$true] %s38_s18 }
   0x6   :  { %s5337_s19 = scalar_lea.vmem %s39_s18, 4096  ;;  %p5342_p1 = scmp.lt.s32.totalorder %s39_s18, %s39_s18 }
   0x7   :  { %p5338_p0 = scmp.ne.s32.totalorder %s39_s18, %s5337_s19  ;;  %p5343_p2 = scmp.lt.s32.totalorder %s5337_s19, %s5337_s19 }
   0x9   :  { %p5344_p3 = por %p5343_p2, %p5342_p1 }
   0xb   :  { %p5345_p4 = pnand %p5344_p3, %p5338_p0 }
   0xd   :  { %5348 = shalt.err (!%p5345_p4)
}
   0xe   :  { %s5500_s20 = smov 256   ;;  %s5501_s21 = smov 16  }
   0xf   :  { %44 = dma.hbm_to_vmem [thread:$0]  %s6403_s1, 4096, %s39_s18, [#allocation8], %s5500_s20, %s5500_s20, %s5501_s21  }
  0x10   :  { %s5502_s24 = smov [#allocation10]   ;;  %s5503_s26 = smov [#allocation13]  }
  0x11   :  { %s64_s25 = sshll.u32 %s5502_s24, 4  ;;  %s90_s27 = sshll.u32 %s5503_s26, 4  ;;  %s65_s25 = int_to_ptr.vmem [resolvable:$true] %s64_s25  ;;  %s91_s27 = int_to_ptr.vmem [resolvable:$true] %s90_s27 }
  0x12   :  { %s5357_s28 = scalar_lea.vmem %s65_s25, 2048  ;;  %p5362_p6 = scmp.lt.s32.totalorder %s65_s25, %s65_s25 }
  0x13   :  { %p5358_p5 = scmp.ne.s32.totalorder %s65_s25, %s5357_s28  ;;  %p5363_p7 = scmp.lt.s32.totalorder %s5357_s28, %s5357_s28 }
  0x15   :  { %p5364_p8 = por %p5363_p7, %p5362_p6 }
  0x17   :  { %p5365_p9 = pnand %p5364_p8, %p5358_p5 }
  0x19   :  { %5368 = shalt.err (!%p5365_p9)
}
  0x1a   :  { %s5504_s29 = smov 128   ;;  %s5505_s30 = smov 8  }
  0x1b   :  { %70 = dma.hbm_to_vmem [thread:$0]  %s6406_s4, 2048, %s65_s25, [#allocation11], %s5504_s29, %s5504_s29, %s5505_s30  }
  0x1c   :  { %s5377_s1 = scalar_lea.vmem %s91_s27, 6144  ;;  %p5382_p11 = scmp.lt.s32.totalorder %s91_s27, %s91_s27 }
  0x1d   :  { %p5378_p10 = scmp.ne.s32.totalorder %s91_s27, %s5377_s1  ;;  %p5383_p12 = scmp.lt.s32.totalorder %s5377_s1, %s5377_s1 }
  0x1f   :  { %p5384_p13 = por %p5383_p12, %p5382_p11 }
  0x21   :  { %p5385_p0 = pnand %p5384_p13, %p5378_p10 }
  0x23   :  { %5388 = shalt.err (!%p5385_p0)
}
  0x24   :  { %s5506_s14 = smov 64   ;;  %s5507_s15 = smov 4  }
  0x25   :  { %96 = dma.hbm_to_vmem [thread:$0]  %s6409_s7, 6144, %s91_s27, [#allocation14], %s5506_s14, %s5506_s14, %s5507_s15  }
  0x26   :  { %s5508_s18 = smov [#allocation4]   ;;  %s5509_s4 = smov [#allocation9]  }
  0x27   :  { %s26_s19 = sshll.u32 %s5508_s18, 4  ;;  %s50_s22 = sshll.u32 %s5509_s4, 4  ;;  %s27_s19 = int_to_ptr.vmem [resolvable:$true] %s26_s19  ;;  %s51_s22 = int_to_ptr.vmem [resolvable:$true] %s50_s22 }
  0x28   :  { %s5397_s23 = scalar_lea.vmem %s27_s19, 256  ;;  %p5402_p2 = scmp.lt.s32.totalorder %s27_s19, %s27_s19 }
  0x29   :  { %p5398_p1 = scmp.ne.s32.totalorder %s27_s19, %s5397_s23  ;;  %p5403_p3 = scmp.lt.s32.totalorder %s5397_s23, %s5397_s23 }
  0x2b   :  { %p5404_p4 = por %p5403_p3, %p5402_p2 }
  0x2d   :  { %p5405_p5 = pnand %p5404_p4, %p5398_p1 }
  0x2f   :  { %5408 = shalt.err (!%p5405_p5)
}
  0x30   :  { %32 = dma.hbm_to_vmem [thread:$0]  %s6402_s0, 256, %s27_s19, [#allocation5], %s5504_s29, %s5504_s29, %s5505_s30  }
  0x31   :  { %s5417_s7 = scalar_lea.vmem %s51_s22, 4096  ;;  %p5422_p7 = scmp.lt.s32.totalorder %s51_s22, %s51_s22 }
  0x32   :  { %p5418_p6 = scmp.ne.s32.totalorder %s51_s22, %s5417_s7  ;;  %p5423_p8 = scmp.lt.s32.totalorder %s5417_s7, %s5417_s7 }
  0x34   :  { %p5424_p9 = por %p5423_p8, %p5422_p7 }
  0x36   :  { %p5425_p10 = pnand %p5424_p9, %p5418_p6 }
  0x38   :  { %5428 = shalt.err (!%p5425_p10)
}
  0x39   :  { %56 = dma.hbm_to_vmem [thread:$0]  %s6404_s2, 4096, %s51_s22, [#allocation8], %s5500_s20, %s5500_s20, %s5501_s21  }
  0x3a   :  { %s5510_s28 = smov [#allocation12]   ;;  %s5511_s13 = smov [#allocation15]  }
  0x3b   :  { %s78_s12 = sshll.u32 %s5510_s28, 4  ;;  %s104_s0 = sshll.u32 %s5511_s13, 4  ;;  %s79_s12 = int_to_ptr.vmem [resolvable:$true] %s78_s12  ;;  %s105_s0 = int_to_ptr.vmem [resolvable:$true] %s104_s0 }
  0x3c   :  { %s5437_s1 = scalar_lea.vmem %s79_s12, 12288  ;;  %p5442_p12 = scmp.lt.s32.totalorder %s79_s12, %s79_s12 }
  0x3d   :  { %p5438_p11 = scmp.ne.s32.totalorder %s79_s12, %s5437_s1  ;;  %p5443_p13 = scmp.lt.s32.totalorder %s5437_s1, %s5437_s1 }
  0x3f   :  { %p5444_p0 = por %p5443_p13, %p5442_p12 }
  0x41   :  { %p5445_p1 = pnand %p5444_p0, %p5438_p11 }
  0x43   :  { %5448 = shalt.err (!%p5445_p1)
}
  0x44   :  { %84 = dma.hbm_to_vmem [thread:$0]  %s6408_s6, 12288, %s79_s12, [#allocation11], %s5504_s29, %s5504_s29, %s5505_s30  }
  0x45   :  { %s5457_s2 = scalar_lea.vmem %s105_s0, 1024  ;;  %p5462_p3 = scmp.lt.s32.totalorder %s105_s0, %s105_s0 }
  0x46   :  { %p5458_p2 = scmp.ne.s32.totalorder %s105_s0, %s5457_s2  ;;  %p5463_p4 = scmp.lt.s32.totalorder %s5457_s2, %s5457_s2 }
  0x48   :  { %p5464_p5 = por %p5463_p4, %p5462_p3 }
  0x4a   :  { %p5465_p6 = pnand %p5464_p5, %p5458_p2 }
  0x4c   :  { %5468 = shalt.err (!%p5465_p6)
}
  0x4d   :  { %110 = dma.hbm_to_vmem [thread:$0]  %s6411_s9, 1024, %s105_s0, [#allocation14], %s5506_s14, %s5506_s14, %s5507_s15  }
  0x4e   :  { %5489 = dma.done.wait [#allocation5], 256  }
  0x4f   :  { %5490 = vsyncadd [#allocation5], 4294967040 }
  0x50   :  { %5491 = dma.done.wait [#allocation8], 8192  }
  0x51   :  { %5492 = vsyncadd [#allocation8], 4294959104 }
  0x52   :  { %5493 = dma.done.wait [#allocation11], 14336  }
  0x53   :  { %5494 = vsyncadd [#allocation11], 4294952960 }
  0x54   :  { %5495 = dma.done.wait [#allocation14], 7168  }
  0x55   :  { %5496 = vsyncadd [#allocation14], 4294960128  ;;  %v5512_v0 = vmov 0   ;;  %v4697_v1 = vld [vmem:[#allocation7 + $0xe4] ss:$16 sps:$4 sm:$0xff]   ;;  %v136_v34 = vld [vmem:[#allocation4 + $0x8] sm:$0xff] }
  0x56   :  { %384 = vmatprep.mubr.bf16.mxu0 %v5512_v0  ;;  %427 = vmatprep.mubr.bf16.mxu1 %v5512_v0  ;;  %v4699_v2 = vld [vmem:[#allocation7 + $0xec] ss:$16 sps:$4 sm:$0xff]   ;;  %v4701_v3 = vld [vmem:[#allocation7 + $0xe0] ss:$16 sps:$4 sm:$0xff]   ;;  %v4702_v4 = vld [vmem:[#allocation7 + $0xe8] ss:$16 sps:$4 sm:$0xff]  }
  0x57   :  { %352 = vmatprep.subr.bf16.mxu0 %v4697_v1  ;;  %395 = vmatprep.subr.bf16.mxu1 %v4699_v2  ;;  %v4703_v5 = vld [vmem:[#allocation7 + $0xc4] ss:$16 sps:$4 sm:$0xff]   ;;  %v4705_v6 = vld [vmem:[#allocation7 + $0xcc] ss:$16 sps:$4 sm:$0xff]   ;;  %v4707_v7 = vld [vmem:[#allocation7 + $0xc0] ss:$16 sps:$4 sm:$0xff]  }
  0x58   :  { %353 = vmatpush1.bf16.msra.mxu0 %v4701_v3  ;;  %396 = vmatpush1.bf16.msra.mxu1 %v4702_v4  ;;  %v4708_v8 = vld [vmem:[#allocation7 + $0xc8] ss:$16 sps:$4 sm:$0xff]   ;;  %v4709_v9 = vld [vmem:[#allocation7 + $0xa4] ss:$16 sps:$4 sm:$0xff]   ;;  %v4711_v10 = vld [vmem:[#allocation7 + $0xac] ss:$16 sps:$4 sm:$0xff]  }
  0x59   :  { %354 = vmatprep.subr.bf16.mxu0 %v4703_v5  ;;  %397 = vmatprep.subr.bf16.mxu1 %v4705_v6  ;;  %v4713_v11 = vld [vmem:[#allocation7 + $0xa0] ss:$16 sps:$4 sm:$0xff]   ;;  %v4714_v12 = vld [vmem:[#allocation7 + $0xa8] ss:$16 sps:$4 sm:$0xff]   ;;  %v4715_v13 = vld [vmem:[#allocation7 + $0x84] ss:$16 sps:$4 sm:$0xff]   ;;  %v172_v5 = vlaneseq }
  0x5a   :  { %v4717_v14 = vld [vmem:[#allocation7 + $0x8c] ss:$16 sps:$4 sm:$0xff]   ;;  %v4719_v15 = vld [vmem:[#allocation7 + $0x80] ss:$16 sps:$4 sm:$0xff]   ;;  %v4720_v16 = vld [vmem:[#allocation7 + $0x88] ss:$16 sps:$4 sm:$0xff]  }
  0x5b   :  { %v4721_v17 = vld [vmem:[#allocation7 + $0x64] ss:$16 sps:$4 sm:$0xff]   ;;  %v4723_v18 = vld [vmem:[#allocation7 + $0x6c] ss:$16 sps:$4 sm:$0xff]   ;;  %v4725_v19 = vld [vmem:[#allocation7 + $0x60] ss:$16 sps:$4 sm:$0xff]  }
  0x5c   :  { %355 = vmatpush1.bf16.msra.mxu0 %v4707_v7  ;;  %398 = vmatpush1.bf16.msra.mxu1 %v4708_v8  ;;  %v4726_v20 = vld [vmem:[#allocation7 + $0x68] ss:$16 sps:$4 sm:$0xff]   ;;  %v4727_v21 = vld [vmem:[#allocation7 + $0x44] ss:$16 sps:$4 sm:$0xff]   ;;  %v4729_v22 = vld [vmem:[#allocation7 + $0x4c] ss:$16 sps:$4 sm:$0xff]  }
  0x5d   :  { %356 = vmatprep.subr.bf16.mxu0 %v4709_v9  ;;  %399 = vmatprep.subr.bf16.mxu1 %v4711_v10  ;;  %v4731_v23 = vld [vmem:[#allocation7 + $0x40] ss:$16 sps:$4 sm:$0xff]   ;;  %v4732_v24 = vld [vmem:[#allocation7 + $0x48] ss:$16 sps:$4 sm:$0xff]   ;;  %v4733_v25 = vld [vmem:[#allocation7 + $0x24] ss:$16 sps:$4 sm:$0xff]  }
  0x5e   :  { %v4735_v26 = vld [vmem:[#allocation7 + $0x2c] ss:$16 sps:$4 sm:$0xff]   ;;  %v4737_v27 = vld [vmem:[#allocation7 + $0x20] ss:$16 sps:$4 sm:$0xff]   ;;  %v4738_v28 = vld [vmem:[#allocation7 + $0x28] ss:$16 sps:$4 sm:$0xff]  }
  0x5f   :  { %v4739_v29 = vld [vmem:[#allocation7 + $0x4] ss:$16 sps:$4 sm:$0xff]   ;;  %v4741_v30 = vld [vmem:[#allocation7 + $0xc] ss:$16 sps:$4 sm:$0xff]   ;;  %v4743_v31 = vld [vmem:[#allocation7] ss:$16 sps:$4 sm:$0xff]  }
  0x60   :  { %357 = vmatpush1.bf16.msra.mxu0 %v4713_v11  ;;  %400 = vmatpush1.bf16.msra.mxu1 %v4714_v12  ;;  %v4744_v32 = vld [vmem:[#allocation7 + $0x8] ss:$16 sps:$4 sm:$0xff]   ;;  %v135_v33 = vld [vmem:[#allocation4] sm:$0xff]  ;;  %v5622_v36 = vld [vmem:[#allocation9 + $0xec] ss:$16 sps:$4 sm:$0xff]   ;;  %v5760_v7 = vshrl.u32 %v172_v5, 7 }
  0x61   :  { %358 = vmatprep.subr.bf16.mxu0 %v4715_v13  ;;  %401 = vmatprep.subr.bf16.mxu1 %v4717_v14  ;;  %v5620_v35 = vld [vmem:[#allocation9 + $0xe4] ss:$16 sps:$4 sm:$0xff]   ;;  %v5624_v37 = vpack.c.bf16 %v136_v34, %v135_v33  ;;  %v5626_v38 = vld [vmem:[#allocation9 + $0xe0] ss:$16 sps:$4 sm:$0xff]   ;;  %v5628_v39 = vld [vmem:[#allocation9 + $0xe8] ss:$16 sps:$4 sm:$0xff]  }
  0x62   :  { %v5630_v40 = vld [vmem:[#allocation9 + $0xc4] ss:$16 sps:$4 sm:$0xff]   ;;  %v5634_v41 = vld [vmem:[#allocation9 + $0xcc] ss:$16 sps:$4 sm:$0xff]   ;;  %v5638_v42 = vld [vmem:[#allocation9 + $0xc0] ss:$16 sps:$4 sm:$0xff]  }
  0x63   :  { %v5642_v43 = vld [vmem:[#allocation9 + $0xc8] ss:$16 sps:$4 sm:$0xff]   ;;  %v5646_v44 = vld [vmem:[#allocation9 + $0xa4] ss:$16 sps:$4 sm:$0xff]   ;;  %v5648_v45 = vld [vmem:[#allocation9 + $0xac] ss:$16 sps:$4 sm:$0xff]  }
  0x64   :  { %359 = vmatpush1.bf16.msra.mxu0 %v4719_v15  ;;  %402 = vmatpush1.bf16.msra.mxu1 %v4720_v16  ;;  %v5652_v46 = vld [vmem:[#allocation9 + $0xa0] ss:$16 sps:$4 sm:$0xff]   ;;  %v5656_v47 = vld [vmem:[#allocation9 + $0xa8] ss:$16 sps:$4 sm:$0xff]   ;;  %v5658_v48 = vld [vmem:[#allocation9 + $0x84] ss:$16 sps:$4 sm:$0xff]  }
  0x65   :  { %360 = vmatprep.subr.bf16.mxu0 %v4721_v17  ;;  %403 = vmatprep.subr.bf16.mxu1 %v4723_v18  ;;  %v5662_v49 = vld [vmem:[#allocation9 + $0x8c] ss:$16 sps:$4 sm:$0xff]   ;;  %v5664_v50 = vld [vmem:[#allocation9 + $0x80] ss:$16 sps:$4 sm:$0xff]   ;;  %v5666_v51 = vld [vmem:[#allocation9 + $0x88] ss:$16 sps:$4 sm:$0xff]  }
  0x66   :  { %v5668_v52 = vld [vmem:[#allocation9 + $0x64] ss:$16 sps:$4 sm:$0xff]   ;;  %v5670_v53 = vld [vmem:[#allocation9 + $0x6c] ss:$16 sps:$4 sm:$0xff]   ;;  %v5676_v54 = vld [vmem:[#allocation9 + $0x60] ss:$16 sps:$4 sm:$0xff]  }
  0x67   :  { %v5678_v55 = vld [vmem:[#allocation9 + $0x68] ss:$16 sps:$4 sm:$0xff]   ;;  %v5680_v56 = vld [vmem:[#allocation9 + $0x44] ss:$16 sps:$4 sm:$0xff]   ;;  %v5682_v57 = vld [vmem:[#allocation9 + $0x4c] ss:$16 sps:$4 sm:$0xff]  }
  0x68   :  { %361 = vmatpush1.bf16.msra.mxu0 %v4725_v19  ;;  %404 = vmatpush1.bf16.msra.mxu1 %v4726_v20  ;;  %v5688_v58 = vld [vmem:[#allocation9 + $0x40] ss:$16 sps:$4 sm:$0xff]   ;;  %v5690_v59 = vld [vmem:[#allocation9 + $0x48] ss:$16 sps:$4 sm:$0xff]   ;;  %v5692_v60 = vld [vmem:[#allocation9 + $0x24] ss:$16 sps:$4 sm:$0xff]  }
  0x69   :  { %362 = vmatprep.subr.bf16.mxu0 %v4727_v21  ;;  %405 = vmatprep.subr.bf16.mxu1 %v4729_v22  ;;  %v5694_v61 = vld [vmem:[#allocation9 + $0x2c] ss:$16 sps:$4 sm:$0xff]   ;;  %v5700_v62 = vld [vmem:[#allocation9 + $0x20] ss:$16 sps:$4 sm:$0xff]   ;;  %v5702_v63 = vld [vmem:[#allocation9 + $0x28] ss:$16 sps:$4 sm:$0xff]  }
  0x6a   :  { %v5704_v1 = vld [vmem:[#allocation9 + $0x4] ss:$16 sps:$4 sm:$0xff]   ;;  %v5706_v2 = vld [vmem:[#allocation9 + $0xc] ss:$16 sps:$4 sm:$0xff]   ;;  %v5712_v3 = vld [vmem:[#allocation9] ss:$16 sps:$4 sm:$0xff]  }
  0x6b   :  { %v5714_v4 = vld [vmem:[#allocation9 + $0x8] ss:$16 sps:$4 sm:$0xff]   ;;  %v174_v10 = vsub.s32 0, %v5760_v7  ;;  %v170_v12 = vld [vmem:[%s6405_s3] sm:$0xf]  ;;  %v6414_v13 = vsub.s32 1, %v5760_v7 }
  0x6c   :  { %363 = vmatpush1.bf16.msra.mxu0 %v4731_v23  ;;  %406 = vmatpush1.bf16.msra.mxu1 %v4732_v24  ;;  %vm5514_vm0 = vmmov 0   ;;  %s5515_s19 = smov [#allocation16]  }
  0x6d   :  { %364 = vmatprep.subr.bf16.mxu0 %v4733_v25  ;;  %407 = vmatprep.subr.bf16.mxu1 %v4735_v26  ;;  %v175_v15 = vrot.slane %v170_v12, %v174_v10  ;;  %v179_v17 = vrot.slane %v170_v12, %v6414_v13  ;;  %v186_v25 = vsub.s32 3, %v5760_v7  ;;  %s4112_s4 = sshll.u32 %s5515_s19, 4  ;;  %s4113_s4 = int_to_ptr.vmem [resolvable:$true] %s4112_s4 }
  0x6e   :  { %s5469_s22 = scalar_lea.vmem %s4113_s4, 256  ;;  %p5474_p8 = scmp.lt.s32.totalorder %s4113_s4, %s4113_s4 }
  0x6f   :  { %v187_v5 = vrot.slane %v170_v12, %v186_v25  ;;  %p5470_p7 = scmp.ne.s32.totalorder %s4113_s4, %s5469_s22  ;;  %p5475_p9 = scmp.lt.s32.totalorder %s5469_s22, %s5469_s22 }
  0x70   :  { %365 = vmatpush1.bf16.msra.mxu0 %v4737_v27  ;;  %408 = vmatpush1.bf16.msra.mxu1 %v4738_v28 }
  0x71   :  { %366 = vmatprep.subr.bf16.mxu0 %v4739_v29  ;;  %409 = vmatprep.subr.bf16.mxu1 %v4741_v30  ;;  %p5476_p10 = por %p5475_p9, %p5474_p8 }
  0x73   :  { %p5477_p11 = pnand %p5476_p10, %p5470_p7 }
  0x74   :  { %367 = vmatpush1.bf16.msra.mxu0 %v4743_v31  ;;  %410 = vmatpush1.bf16.msra.mxu1 %v4744_v32 }
  0x75   :  { %630 = vmatprep.subr.bf16.mxu0 %v5620_v35  ;;  %673 = vmatprep.subr.bf16.mxu1 %v5622_v36 }
  0x77   :  { %385 = vmatmul.mubr.bf16.vlgmr.msra.gmra.mxu0 %v5624_v37  ;;  %428 = vmatmul.mubr.bf16.vlgmr.msra.gmra.mxu1 %v5624_v37 }
  0x78   :  { %631 = vmatpush1.bf16.msra.mxu0 %v5626_v38  ;;  %674 = vmatpush1.bf16.msra.mxu1 %v5628_v39 }
  0x79   :  { %632 = vmatprep.subr.bf16.mxu0 %v5630_v40  ;;  %675 = vmatprep.subr.bf16.mxu1 %v5634_v41 }
  0x7a   :  { %662 = vmatprep.mubr.bf16.mxu0 %v5512_v0  ;;  %705 = vmatprep.mubr.bf16.mxu1 %v5512_v0 }
  0x7c   :  { %633 = vmatpush1.bf16.msra.mxu0 %v5638_v42  ;;  %676 = vmatpush1.bf16.msra.mxu1 %v5642_v43 }
  0x7d   :  { %634 = vmatprep.subr.bf16.mxu0 %v5646_v44  ;;  %677 = vmatprep.subr.bf16.mxu1 %v5648_v45 }
  0x80   :  { %635 = vmatpush1.bf16.msra.mxu0 %v5652_v46  ;;  %678 = vmatpush1.bf16.msra.mxu1 %v5656_v47 }
  0x81   :  { %636 = vmatprep.subr.bf16.mxu0 %v5658_v48  ;;  %679 = vmatprep.subr.bf16.mxu1 %v5662_v49 }
  0x84   :  { %637 = vmatpush1.bf16.msra.mxu0 %v5664_v50  ;;  %680 = vmatpush1.bf16.msra.mxu1 %v5666_v51 }
  0x85   :  { %638 = vmatprep.subr.bf16.mxu0 %v5668_v52  ;;  %681 = vmatprep.subr.bf16.mxu1 %v5670_v53 }
  0x88   :  { %639 = vmatpush1.bf16.msra.mxu0 %v5676_v54  ;;  %682 = vmatpush1.bf16.msra.mxu1 %v5678_v55 }
  0x89   :  { %640 = vmatprep.subr.bf16.mxu0 %v5680_v56  ;;  %683 = vmatprep.subr.bf16.mxu1 %v5682_v57 }
  0x8c   :  { %641 = vmatpush1.bf16.msra.mxu0 %v5688_v58  ;;  %684 = vmatpush1.bf16.msra.mxu1 %v5690_v59 }
  0x8d   :  { %642 = vmatprep.subr.bf16.mxu0 %v5692_v60  ;;  %685 = vmatprep.subr.bf16.mxu1 %v5694_v61 }
  0x90   :  { %643 = vmatpush1.bf16.msra.mxu0 %v5700_v62  ;;  %686 = vmatpush1.bf16.msra.mxu1 %v5702_v63 }
  0x91   :  { %644 = vmatprep.subr.bf16.mxu0 %v5704_v1  ;;  %687 = vmatprep.subr.bf16.mxu1 %v5706_v2 }
  0x94   :  { %645 = vmatpush1.bf16.msra.mxu0 %v5712_v3  ;;  %688 = vmatpush1.bf16.msra.mxu1 %v5714_v4 }
  0x95   :  { %784 = vmatprep.subr.bf16.mxu0 %v5620_v35  ;;  %827 = vmatprep.subr.bf16.mxu1 %v5622_v36 }
  0x97   :  { %663 = vmatmul.mubr.bf16.vlgmr.msra.gmra.mxu0 %v5512_v0  ;;  %706 = vmatmul.mubr.bf16.vlgmr.msra.gmra.mxu1 %v5512_v0 }
  0x98   :  { %785 = vmatpush1.bf16.msra.mxu0 %v5626_v38  ;;  %828 = vmatpush1.bf16.msra.mxu1 %v5628_v39 }
  0x99   :  { %786 = vmatprep.subr.bf16.mxu0 %v5630_v40  ;;  %829 = vmatprep.subr.bf16.mxu1 %v5634_v41 }
  0x9a   :  { %816 = vmatprep.mubr.bf16.mxu0 %v5512_v0  ;;  %859 = vmatprep.mubr.bf16.mxu1 %v5512_v0 }
  0x9c   :  { %787 = vmatpush1.bf16.msra.mxu0 %v5638_v42  ;;  %830 = vmatpush1.bf16.msra.mxu1 %v5642_v43 }
  0x9d   :  { %788 = vmatprep.subr.bf16.mxu0 %v5646_v44  ;;  %831 = vmatprep.subr.bf16.mxu1 %v5648_v45 }
  0xa0   :  { %789 = vmatpush1.bf16.msra.mxu0 %v5652_v46  ;;  %832 = vmatpush1.bf16.msra.mxu1 %v5656_v47 }
  0xa1   :  { %790 = vmatprep.subr.bf16.mxu0 %v5658_v48  ;;  %833 = vmatprep.subr.bf16.mxu1 %v5662_v49 }
  0xa4   :  { %791 = vmatpush1.bf16.msra.mxu0 %v5664_v50  ;;  %834 = vmatpush1.bf16.msra.mxu1 %v5666_v51 }
  0xa5   :  { %792 = vmatprep.subr.bf16.mxu0 %v5668_v52  ;;  %835 = vmatprep.subr.bf16.mxu1 %v5670_v53 }
  0xa8   :  { %793 = vmatpush1.bf16.msra.mxu0 %v5676_v54  ;;  %836 = vmatpush1.bf16.msra.mxu1 %v5678_v55 }
  0xa9   :  { %794 = vmatprep.subr.bf16.mxu0 %v5680_v56  ;;  %837 = vmatprep.subr.bf16.mxu1 %v5682_v57 }
  0xac   :  { %795 = vmatpush1.bf16.msra.mxu0 %v5688_v58  ;;  %838 = vmatpush1.bf16.msra.mxu1 %v5690_v59 }
  0xad   :  { %796 = vmatprep.subr.bf16.mxu0 %v5692_v60  ;;  %839 = vmatprep.subr.bf16.mxu1 %v5694_v61 }
  0xb0   :  { %797 = vmatpush1.bf16.msra.mxu0 %v5700_v62  ;;  %840 = vmatpush1.bf16.msra.mxu1 %v5702_v63 }
  0xb1   :  { %798 = vmatprep.subr.bf16.mxu0 %v5704_v1  ;;  %841 = vmatprep.subr.bf16.mxu1 %v5706_v2 }
  0xb4   :  { %799 = vmatpush1.bf16.msra.mxu0 %v5712_v3  ;;  %842 = vmatpush1.bf16.msra.mxu1 %v5714_v4 }
  0xb5   :  { %938 = vmatprep.subr.bf16.mxu0 %v5620_v35  ;;  %981 = vmatprep.subr.bf16.mxu1 %v5622_v36 }
 0x137   :  { %v386_v6 = vpop.f32.mrf.mxu0  ;;  %v429_v8 = vpop.f32.mrf.mxu1 }
 0x138   :  { %v5771_v19 = vadd.f32 %v386_v6, %v175_v15 }
 0x139   :  { %v388_v9 = vpop.f32.mrf.mxu0  ;;  %v431_v11 = vpop.f32.mrf.mxu1 }
 0x13a   :  { %v5773_v22 = vadd.f32 %v388_v9, %v179_v17 }
 0x13b   :  { %v390_v14 = vpop.f32.mrf.mxu0  ;;  %v433_v16 = vpop.f32.mrf.mxu1 }
 0x13c   :  { %v5777_v27 = vadd.f32 %v390_v14, %v175_v15  ;;  %v182_v14 = vsub.s32 2, %v5760_v7 }
 0x13d   :  { %v392_v18 = vpop.f32.mrf.mxu0  ;;  %v435_v20 = vpop.f32.mrf.mxu1 }
 0x13e   :  { %v5780_v31 = vadd.f32 %v392_v18, %v179_v17  ;;  %v183_v17 = vrot.slane %v170_v12, %v182_v14 }
 0x140   :  { %v5790_v25 = vadd.f32 %v429_v8, %v183_v17 }
 0x157   :  { %v664_v21 = vpop.f32.mrf.mxu0  ;;  %v707_v24 = vpop.f32.mrf.mxu1 }
 0x158   :  { %v716_v23 = vadd.f32 %v664_v21, %v5771_v19 }
 0x159   :  { %v666_v26 = vpop.f32.mrf.mxu0  ;;  %v709_v33 = vpop.f32.mrf.mxu1 }
 0x15a   :  { %v4191_v28 = vmul.f32 -1.442695, %v716_v23  ;;  %v717_v29 = vadd.f32 %v666_v26, %v5773_v22  ;;  %v5785_v26 = vadd.f32 %v431_v11, %v187_v5 }
 0x15b   :  { %v668_v30 = vpop.f32.mrf.mxu0  ;;  %v711_v15 = vpop.f32.mrf.mxu1 }
 0x15c   :  { %5041 = vpow2.f32 %v4191_v28  ;;  %v4193_v32 = vmul.f32 -1.442695, %v717_v29  ;;  %v720_v34 = vadd.f32 %v668_v30, %v5777_v27  ;;  %v719_v18 = vadd.f32 %v709_v33, %v5785_v26 }
 0x15d   :  { %v670_v6 = vpop.f32.mrf.mxu0  ;;  %v713_v28 = vpop.f32.mrf.mxu1  ;;  %v5788_v29 = vadd.f32 %v435_v20, %v187_v5 }
 0x15e   :  { %5043 = vpow2.f32 %v4193_v32  ;;  %v4192_v9 = vmul.f32 -1.442695, %v720_v34  ;;  %v721_v21 = vadd.f32 %v670_v6, %v5780_v31  ;;  %v4195_v30 = vmul.f32 -1.442695, %v719_v18 }
 0x15f   :  { %v723_v32 = vadd.f32 %v713_v28, %v5788_v29  ;;  %v718_v6 = vadd.f32 %v707_v24, %v5790_v25 }
 0x160   :  { %5045 = vpow2.f32 %v4192_v9  ;;  %v4194_v23 = vmul.f32 -1.442695, %v721_v21  ;;  %v5794_v21 = vadd.f32 %v433_v16, %v183_v17 }
 0x161   :  { %v4196_v11 = vmul.f32 -1.442695, %v723_v32 }
 0x162   :  { %5047 = vpow2.f32 %v4194_v23  ;;  %v722_v20 = vadd.f32 %v711_v15, %v5794_v21 }
 0x163   :  { %5049 = vpow2.f32 %v4195_v30 }
 0x169   :  { %v5042_v34 = vpop.eup %5041 }
 0x16a   :  { %v730_v9 = vadd.f32 1.0, %v5042_v34 }
 0x16b   :  { %v5044_v13 = vpop.eup %5043 }
 0x16c   :  { %5051 = vrcp.f32 %v730_v9  ;;  %v742_v12 = vadd.f32 1.0, %v5044_v13 }
 0x16d   :  { %v5046_v33 = vpop.eup %5045  ;;  %5053 = vtanh.f32 %v718_v6 }
 0x16e   :  { %5055 = vrcp.f32 %v742_v12  ;;  %v731_v8 = vadd.f32 1.0, %v5046_v33 }
 0x16f   :  { %v5048_v5 = vpop.eup %5047  ;;  %5057 = vpow2.f32 %v4196_v11 }
 0x170   :  { %5059 = vrcp.f32 %v731_v8  ;;  %v743_v14 = vadd.f32 1.0, %v5048_v5  ;;  %v5050_v24 = vpop.eup %5049 }
 0x171   :  { %5061 = vtanh.f32 %v722_v20  ;;  %v756_v18 = vadd.f32 1.0, %v5050_v24 }
 0x172   :  { %5063 = vrcp.f32 %v743_v14 }
 0x173   :  { %5065 = vrcp.f32 %v756_v18 }
 0x179   :  { %v5052_v23 = vpop.eup %5051 }
 0x17a   :  { %v5054_v16 = vpop.eup %5053 }
 0x17b   :  { %v5056_v17 = vpop.eup %5055  ;;  %v764_v13 = vmul.f32 %v5054_v16, %v5052_v23 }
 0x17c   :  { %v5058_v28 = vpop.eup %5057  ;;  %v762_v30 = vmul.f32 0.0, %v5056_v17 }
 0x17d   :  { %v5060_v32 = vpop.eup %5059  ;;  %v757_v9 = vadd.f32 1.0, %v5058_v28 }
 0x17e   :  { %v5062_v34 = vpop.eup %5061  ;;  %v5797_v6 = vadd.f32 %v764_v13, %v762_v30 }
 0x17f   :  { %v5064_v15 = vpop.eup %5063  ;;  %v765_v12 = vmul.f32 %v5062_v34, %v5060_v32 }
 0x180   :  { %5067 = vtanh.f32 %v5797_v6  ;;  %v763_v11 = vmul.f32 0.0, %v5064_v15  ;;  %v5066_v20 = vpop.eup %5065 }
 0x181   :  { %5069 = vrcp.f32 %v757_v9 }
 0x182   :  { %v5800_v33 = vadd.f32 %v765_v12, %v763_v11 }
 0x184   :  { %5071 = vtanh.f32 %v5800_v33 }
 0x18d   :  { %v5068_v8 = vpop.eup %5067 }
 0x18e   :  { %v770_v5 = vmul.f32 %v5068_v8, %v5066_v20  ;;  %v5070_v14 = vpop.eup %5069 }
 0x190   :  { %v4491_v24 = vpack.c.bf16 %v770_v5, %v770_v5 }
 0x191   :  { %v5072_v23 = vpop.eup %5071 }
 0x192   :  { %v771_v16 = vmul.f32 %v5072_v23, %v5070_v14  ;;  %780 = vst [vmem:[#allocation2] sm:$0xf] %v4491_v24  ;;  %782 = vst [vmem:[#allocation2 + $0x74] sm:$0xf] %v4491_v24 }
 0x194   :  { %v772_v17 = vpack.c.bf16 %v771_v16, %v770_v5  ;;  %v4492_v18 = vpack.c.bf16 %v771_v16, %v771_v16 }
 0x196   :  { %781 = vst [vmem:[#allocation2 + $0x8] sm:$0xf] %v4492_v18  ;;  %783 = vst [vmem:[#allocation2 + $0x7c] sm:$0xf] %v4492_v18  ;;  %817 = vmatmul.mubr.bf16.vlgmr.msra.gmra.mxu0 %v772_v17  ;;  %860 = vmatmul.mubr.bf16.vlgmr.msra.gmra.mxu1 %v772_v17 }
 0x197   :  { %939 = vmatpush1.bf16.msra.mxu0 %v5626_v38  ;;  %982 = vmatpush1.bf16.msra.mxu1 %v5628_v39 }
 0x198   :  { %940 = vmatprep.subr.bf16.mxu0 %v5630_v40  ;;  %983 = vmatprep.subr.bf16.mxu1 %v5634_v41 }
 0x199   :  { %970 = vmatprep.mubr.bf16.mxu0 %v5512_v0  ;;  %1013 = vmatprep.mubr.bf16.mxu1 %v5512_v0 }
 0x19b   :  { %941 = vmatpush1.bf16.msra.mxu0 %v5638_v42  ;;  %984 = vmatpush1.bf16.msra.mxu1 %v5642_v43 }
 0x19c   :  { %942 = vmatprep.subr.bf16.mxu0 %v5646_v44  ;;  %985 = vmatprep.subr.bf16.mxu1 %v5648_v45 }
 0x19f   :  { %943 = vmatpush1.bf16.msra.mxu0 %v5652_v46  ;;  %986 = vmatpush1.bf16.msra.mxu1 %v5656_v47 }
 0x1a0   :  { %944 = vmatprep.subr.bf16.mxu0 %v5658_v48  ;;  %987 = vmatprep.subr.bf16.mxu1 %v5662_v49 }
 0x1a3   :  { %945 = vmatpush1.bf16.msra.mxu0 %v5664_v50  ;;  %988 = vmatpush1.bf16.msra.mxu1 %v5666_v51 }
 0x1a4   :  { %946 = vmatprep.subr.bf16.mxu0 %v5668_v52  ;;  %989 = vmatprep.subr.bf16.mxu1 %v5670_v53 }
 0x1a7   :  { %947 = vmatpush1.bf16.msra.mxu0 %v5676_v54  ;;  %990 = vmatpush1.bf16.msra.mxu1 %v5678_v55 }
 0x1a8   :  { %948 = vmatprep.subr.bf16.mxu0 %v5680_v56  ;;  %991 = vmatprep.subr.bf16.mxu1 %v5682_v57 }
 0x1ab   :  { %949 = vmatpush1.bf16.msra.mxu0 %v5688_v58  ;;  %992 = vmatpush1.bf16.msra.mxu1 %v5690_v59 }
 0x1ac   :  { %950 = vmatprep.subr.bf16.mxu0 %v5692_v60  ;;  %993 = vmatprep.subr.bf16.mxu1 %v5694_v61 }
 0x1af   :  { %951 = vmatpush1.bf16.msra.mxu0 %v5700_v62  ;;  %994 = vmatpush1.bf16.msra.mxu1 %v5702_v63 }
 0x1b0   :  { %952 = vmatprep.subr.bf16.mxu0 %v5704_v1  ;;  %995 = vmatprep.subr.bf16.mxu1 %v5706_v2 }
 0x1b3   :  { %953 = vmatpush1.bf16.msra.mxu0 %v5712_v3  ;;  %996 = vmatpush1.bf16.msra.mxu1 %v5714_v4 }
 0x1b4   :  { %1092 = vmatprep.subr.bf16.mxu0 %v5620_v35  ;;  %1135 = vmatprep.subr.bf16.mxu1 %v5622_v36 }
 0x256   :  { %v818_v38 = vpop.f32.mrf.mxu0  ;;  %v861_v40 = vpop.f32.mrf.mxu1 }
 0x257   :  { %v870_v39 = vadd.f32 %v818_v38, %v5771_v19  ;;  %v872_v56 = vadd.f32 %v861_v40, %v5790_v25 }
 0x258   :  { %v820_v41 = vpop.f32.mrf.mxu0  ;;  %v863_v46 = vpop.f32.mrf.mxu1 }
 0x259   :  { %v4199_v42 = vmul.f32 -1.442695, %v870_v39  ;;  %v871_v43 = vadd.f32 %v820_v41, %v5773_v22  ;;  %v873_v51 = vadd.f32 %v863_v46, %v5785_v26 }
 0x25a   :  { %v822_v44 = vpop.f32.mrf.mxu0  ;;  %v865_v36 = vpop.f32.mrf.mxu1 }
 0x25b   :  { %5073 = vpow2.f32 %v4199_v42  ;;  %v4201_v45 = vmul.f32 -1.442695, %v871_v43  ;;  %v874_v47 = vadd.f32 %v822_v44, %v5777_v27  ;;  %v4203_v53 = vmul.f32 -1.442695, %v873_v51  ;;  %v5859_v51 = vld [vmem:[#allocation9 + $0xc4] ss:$16 sps:$4 sm:$0xff]  }
 0x25c   :  { %v824_v48 = vpop.f32.mrf.mxu0  ;;  %v867_v52 = vpop.f32.mrf.mxu1  ;;  %v876_v34 = vadd.f32 %v865_v36, %v5794_v21 }
 0x25d   :  { %5075 = vpow2.f32 %v4201_v45  ;;  %v4200_v49 = vmul.f32 -1.442695, %v874_v47  ;;  %v875_v35 = vadd.f32 %v824_v48, %v5780_v31  ;;  %v877_v54 = vadd.f32 %v867_v52, %v5788_v29  ;;  %v5862_v52 = vld [vmem:[#allocation9 + $0xcc] ss:$16 sps:$4 sm:$0xff]  }
 0x25f   :  { %5077 = vpow2.f32 %v4200_v49  ;;  %v4202_v50 = vmul.f32 -1.442695, %v875_v35  ;;  %v4204_v30 = vmul.f32 -1.442695, %v877_v54  ;;  %v5870_v54 = vld [vmem:[#allocation9 + $0xc8] ss:$16 sps:$4 sm:$0xff]  }
 0x261   :  { %5079 = vpow2.f32 %v4202_v50  ;;  %v5856_v50 = vld [vmem:[#allocation9 + $0xe8] ss:$16 sps:$4 sm:$0xff]  }
 0x262   :  { %5081 = vpow2.f32 %v4203_v53  ;;  %v5867_v53 = vld [vmem:[#allocation9 + $0xc0] ss:$16 sps:$4 sm:$0xff]  }
 0x268   :  { %v5074_v55 = vpop.eup %5073 }
 0x269   :  { %v884_v57 = vadd.f32 1.0, %v5074_v55  ;;  %v5873_v55 = vld [vmem:[#allocation9 + $0xa4] ss:$16 sps:$4 sm:$0xff]  }
 0x26a   :  { %v5076_v28 = vpop.eup %5075 }
 0x26b   :  { %5083 = vrcp.f32 %v884_v57  ;;  %v896_v13 = vadd.f32 1.0, %v5076_v28  ;;  %v5879_v57 = vld [vmem:[#allocation9 + $0xa0] ss:$16 sps:$4 sm:$0xff]   ;;  %v5882_v28 = vld [vmem:[#allocation9 + $0xa8] ss:$16 sps:$4 sm:$0xff]  }
 0x26c   :  { %v5078_v32 = vpop.eup %5077  ;;  %5085 = vtanh.f32 %v872_v56  ;;  %v5876_v56 = vld [vmem:[#allocation9 + $0xac] ss:$16 sps:$4 sm:$0xff]  }
 0x26d   :  { %5087 = vrcp.f32 %v896_v13  ;;  %v885_v15 = vadd.f32 1.0, %v5078_v32  ;;  %v5888_v13 = vld [vmem:[#allocation9 + $0x8c] ss:$16 sps:$4 sm:$0xff]   ;;  %v5891_v32 = vld [vmem:[#allocation9 + $0x80] ss:$16 sps:$4 sm:$0xff]  }
 0x26e   :  { %v5080_v9 = vpop.eup %5079  ;;  %5089 = vpow2.f32 %v4204_v30  ;;  %v5885_v30 = vld [vmem:[#allocation9 + $0x84] ss:$16 sps:$4 sm:$0xff]  }
 0x26f   :  { %5091 = vrcp.f32 %v885_v15  ;;  %v897_v11 = vadd.f32 1.0, %v5080_v9  ;;  %v5082_v12 = vpop.eup %5081  ;;  %v5897_v15 = vld [vmem:[#allocation9 + $0x64] ss:$16 sps:$4 sm:$0xff]   ;;  %v5900_v9 = vld [vmem:[#allocation9 + $0x6c] ss:$16 sps:$4 sm:$0xff]  }
 0x270   :  { %5093 = vtanh.f32 %v876_v34  ;;  %v910_v14 = vadd.f32 1.0, %v5082_v12  ;;  %v5894_v34 = vld [vmem:[#allocation9 + $0x88] ss:$16 sps:$4 sm:$0xff]  }
 0x271   :  { %5095 = vrcp.f32 %v897_v11  ;;  %v5903_v11 = vld [vmem:[#allocation9 + $0x60] ss:$16 sps:$4 sm:$0xff]   ;;  %v5906_v12 = vld [vmem:[#allocation9 + $0x68] ss:$16 sps:$4 sm:$0xff]  }
 0x272   :  { %5097 = vrcp.f32 %v910_v14 }
 0x278   :  { %v5084_v20 = vpop.eup %5083 }
 0x279   :  { %v5086_v8 = vpop.eup %5085 }
 0x27a   :  { %v5088_v5 = vpop.eup %5087  ;;  %v918_v23 = vmul.f32 %v5086_v8, %v5084_v20  ;;  %v5909_v20 = vld [vmem:[#allocation9 + $0x44] ss:$16 sps:$4 sm:$0xff]   ;;  %v5912_v8 = vld [vmem:[#allocation9 + $0x4c] ss:$16 sps:$4 sm:$0xff]  }
 0x27b   :  { %v5090_v24 = vpop.eup %5089  ;;  %v916_v16 = vmul.f32 %v5088_v5, %v5797_v6  ;;  %v5925_v5 = vld [vmem:[#allocation9 + $0xe4] ss:$16 sps:$4 sm:$0xff]  }
 0x27c   :  { %v5092_v17 = vpop.eup %5091  ;;  %v911_v40 = vadd.f32 1.0, %v5090_v24 }
 0x27d   :  { %v5094_v18 = vpop.eup %5093  ;;  %v5846_v38 = vadd.f32 %v918_v23, %v916_v16 }
 0x27e   :  { %v5096_v39 = vpop.eup %5095  ;;  %v919_v41 = vmul.f32 %v5094_v18, %v5092_v17 }
 0x27f   :  { %v917_v42 = vmul.f32 %v5096_v39, %v5800_v33  ;;  %5099 = vtanh.f32 %v5846_v38  ;;  %v5098_v44 = vpop.eup %5097  ;;  %v5853_v33 = vld [vmem:[#allocation9 + $0xe0] ss:$16 sps:$4 sm:$0xff]  }
 0x280   :  { %5101 = vrcp.f32 %v911_v40 }
 0x281   :  { %v5850_v43 = vadd.f32 %v919_v41, %v917_v42 }
 0x283   :  { %5103 = vtanh.f32 %v5850_v43 }
 0x28c   :  { %v5100_v45 = vpop.eup %5099 }
 0x28d   :  { %v924_v6 = vmul.f32 %v5100_v45, %v5098_v44  ;;  %v5102_v46 = vpop.eup %5101 }
 0x28f   :  { %v4493_v47 = vpack.c.bf16 %v924_v6, %v924_v6 }
 0x290   :  { %v5104_v48 = vpop.eup %5103 }
 0x291   :  { %v925_v49 = vmul.f32 %v5104_v48, %v5102_v46  ;;  %934 = vst [vmem:[#allocation2 + $0x10] sm:$0xf] %v4493_v47  ;;  %936 = vst [vmem:[#allocation2 + $0x64] sm:$0xf] %v4493_v47 }
 0x293   :  { %v926_v35 = vpack.c.bf16 %v925_v49, %v924_v6  ;;  %v4494_v36 = vpack.c.bf16 %v925_v49, %v925_v49 }
 0x295   :  { %935 = vst [vmem:[#allocation2 + $0x18] sm:$0xf] %v4494_v36  ;;  %937 = vst [vmem:[#allocation2 + $0x6c] sm:$0xf] %v4494_v36  ;;  %971 = vmatmul.mubr.bf16.vlgmr.msra.gmra.mxu0 %v926_v35  ;;  %1014 = vmatmul.mubr.bf16.vlgmr.msra.gmra.mxu1 %v926_v35 }
 0x296   :  { %1093 = vmatpush1.bf16.msra.mxu0 %v5853_v33  ;;  %1136 = vmatpush1.bf16.msra.mxu1 %v5856_v50 }
 0x297   :  { %1094 = vmatprep.subr.bf16.mxu0 %v5859_v51  ;;  %1137 = vmatprep.subr.bf16.mxu1 %v5862_v52 }
 0x298   :  { %1124 = vmatprep.mubr.bf16.mxu0 %v5512_v0  ;;  %1167 = vmatprep.mubr.bf16.mxu1 %v5512_v0 }
 0x29a   :  { %1095 = vmatpush1.bf16.msra.mxu0 %v5867_v53  ;;  %1138 = vmatpush1.bf16.msra.mxu1 %v5870_v54 }
 0x29b   :  { %1096 = vmatprep.subr.bf16.mxu0 %v5873_v55  ;;  %1139 = vmatprep.subr.bf16.mxu1 %v5876_v56 }
 0x29e   :  { %1097 = vmatpush1.bf16.msra.mxu0 %v5879_v57  ;;  %1140 = vmatpush1.bf16.msra.mxu1 %v5882_v28 }
 0x29f   :  { %1098 = vmatprep.subr.bf16.mxu0 %v5885_v30  ;;  %1141 = vmatprep.subr.bf16.mxu1 %v5888_v13 }
 0x2a2   :  { %1099 = vmatpush1.bf16.msra.mxu0 %v5891_v32  ;;  %1142 = vmatpush1.bf16.msra.mxu1 %v5894_v34 }
 0x2a3   :  { %1100 = vmatprep.subr.bf16.mxu0 %v5897_v15  ;;  %1143 = vmatprep.subr.bf16.mxu1 %v5900_v9 }
 0x2a6   :  { %1101 = vmatpush1.bf16.msra.mxu0 %v5903_v11  ;;  %1144 = vmatpush1.bf16.msra.mxu1 %v5906_v12 }
 0x2a7   :  { %1102 = vmatprep.subr.bf16.mxu0 %v5909_v20  ;;  %1145 = vmatprep.subr.bf16.mxu1 %v5912_v8 }
 0x2aa   :  { %1103 = vmatpush1.bf16.msra.mxu0 %v5688_v58  ;;  %1146 = vmatpush1.bf16.msra.mxu1 %v5690_v59  ;;  %v5928_v58 = vld [vmem:[#allocation9 + $0xec] ss:$16 sps:$4 sm:$0xff]  }
 0x2ab   :  { %1104 = vmatprep.subr.bf16.mxu0 %v5692_v60  ;;  %1147 = vmatprep.subr.bf16.mxu1 %v5694_v61 }
 0x2ae   :  { %1105 = vmatpush1.bf16.msra.mxu0 %v5700_v62  ;;  %1148 = vmatpush1.bf16.msra.mxu1 %v5702_v63 }
 0x2af   :  { %1106 = vmatprep.subr.bf16.mxu0 %v5704_v1  ;;  %1149 = vmatprep.subr.bf16.mxu1 %v5706_v2 }
 0x2b2   :  { %1107 = vmatpush1.bf16.msra.mxu0 %v5712_v3  ;;  %1150 = vmatpush1.bf16.msra.mxu1 %v5714_v4 }
 0x2b3   :  { %1246 = vmatprep.subr.bf16.mxu0 %v5925_v5  ;;  %1289 = vmatprep.subr.bf16.mxu1 %v5928_v58 }
 0x355   :  { %v972_v59 = vpop.f32.mrf.mxu0  ;;  %v1015_v61 = vpop.f32.mrf.mxu1 }
 0x356   :  { %v1024_v60 = vadd.f32 %v972_v59, %v5771_v19  ;;  %v1026_v45 = vadd.f32 %v1015_v61, %v5790_v25 }
 0x357   :  { %v974_v62 = vpop.f32.mrf.mxu0  ;;  %v1017_v4 = vpop.f32.mrf.mxu1 }
 0x358   :  { %v4207_v63 = vmul.f32 -1.442695, %v1024_v60  ;;  %v1025_v1 = vadd.f32 %v974_v62, %v5773_v22  ;;  %v1027_v39 = vadd.f32 %v1017_v4, %v5785_v26 }
 0x359   :  { %v976_v2 = vpop.f32.mrf.mxu0  ;;  %v1019_v17 = vpop.f32.mrf.mxu1 }
 0x35a   :  { %5105 = vpow2.f32 %v4207_v63  ;;  %v4209_v3 = vmul.f32 -1.442695, %v1025_v1  ;;  %v1028_v14 = vadd.f32 %v976_v2, %v5777_v27  ;;  %v4211_v41 = vmul.f32 -1.442695, %v1027_v39 }
 0x35b   :  { %v978_v24 = vpop.f32.mrf.mxu0  ;;  %v1021_v40 = vpop.f32.mrf.mxu1  ;;  %v1030_v35 = vadd.f32 %v1019_v17, %v5794_v21 }
 0x35c   :  { %5107 = vpow2.f32 %v4209_v3  ;;  %v4208_v23 = vmul.f32 -1.442695, %v1028_v14  ;;  %v1029_v16 = vadd.f32 %v978_v24, %v5780_v31  ;;  %v1031_v42 = vadd.f32 %v1021_v40, %v5788_v29 }
 0x35e   :  { %5109 = vpow2.f32 %v4208_v23  ;;  %v4210_v18 = vmul.f32 -1.442695, %v1029_v16  ;;  %v4212_v47 = vmul.f32 -1.442695, %v1031_v42 }
 0x360   :  { %5111 = vpow2.f32 %v4210_v18 }
 0x361   :  { %5113 = vpow2.f32 %v4211_v41 }
 0x367   :  { %v5106_v44 = vpop.eup %5105 }
 0x368   :  { %v1038_v6 = vadd.f32 1.0, %v5106_v44 }
 0x369   :  { %v5108_v46 = vpop.eup %5107 }
 0x36a   :  { %5115 = vrcp.f32 %v1038_v6  ;;  %v1050_v48 = vadd.f32 1.0, %v5108_v46 }
 0x36b   :  { %v5110_v49 = vpop.eup %5109  ;;  %5117 = vtanh.f32 %v1026_v45 }
 0x36c   :  { %5119 = vrcp.f32 %v1050_v48  ;;  %v1039_v36 = vadd.f32 1.0, %v5110_v49 }
 0x36d   :  { %v5112_v59 = vpop.eup %5111  ;;  %5121 = vpow2.f32 %v4212_v47 }
 0x36e   :  { %5123 = vrcp.f32 %v1039_v36  ;;  %v1051_v60 = vadd.f32 1.0, %v5112_v59  ;;  %v5114_v62 = vpop.eup %5113  ;;  %v5975_v36 = vld [vmem:[#allocation9 + $0x24] ss:$16 sps:$4 sm:$0xff]   ;;  %v5978_v59 = vld [vmem:[#allocation9 + $0x2c] ss:$16 sps:$4 sm:$0xff]  }
 0x36f   :  { %5125 = vtanh.f32 %v1030_v35  ;;  %v1064_v2 = vadd.f32 1.0, %v5114_v62  ;;  %v5972_v35 = vld [vmem:[#allocation9 + $0x48] ss:$16 sps:$4 sm:$0xff]  }
 0x370   :  { %5127 = vrcp.f32 %v1051_v60  ;;  %v5981_v60 = vld [vmem:[#allocation9 + $0x20] ss:$16 sps:$4 sm:$0xff]   ;;  %v5984_v62 = vld [vmem:[#allocation9 + $0x28] ss:$16 sps:$4 sm:$0xff]  }
 0x371   :  { %5129 = vrcp.f32 %v1064_v2  ;;  %v5996_v2 = vld [vmem:[#allocation9 + $0x8] ss:$16 sps:$4 sm:$0xff]  }
 0x377   :  { %v5116_v61 = vpop.eup %5115 }
 0x378   :  { %v5118_v63 = vpop.eup %5117 }
 0x379   :  { %v5120_v1 = vpop.eup %5119  ;;  %v1072_v4 = vmul.f32 %v5118_v63, %v5116_v61  ;;  %v5987_v61 = vld [vmem:[#allocation9 + $0x4] ss:$16 sps:$4 sm:$0xff]   ;;  %v5990_v63 = vld [vmem:[#allocation9 + $0xc] ss:$16 sps:$4 sm:$0xff]  }
 0x37a   :  { %v5122_v3 = vpop.eup %5121  ;;  %v1070_v14 = vmul.f32 %v5120_v1, %v5846_v38  ;;  %v5993_v1 = vld [vmem:[#allocation9] ss:$16 sps:$4 sm:$0xff]  }
 0x37b   :  { %v5124_v24 = vpop.eup %5123  ;;  %v1065_v18 = vadd.f32 1.0, %v5122_v3 }
 0x37c   :  { %v5126_v23 = vpop.eup %5125  ;;  %v5940_v16 = vadd.f32 %v1072_v4, %v1070_v14 }
 0x37d   :  { %v5128_v17 = vpop.eup %5127  ;;  %v1073_v39 = vmul.f32 %v5126_v23, %v5124_v24 }
 0x37e   :  { %v1071_v40 = vmul.f32 %v5128_v17, %v5850_v43  ;;  %5131 = vtanh.f32 %v5940_v16  ;;  %v5130_v42 = vpop.eup %5129  ;;  %v5969_v43 = vld [vmem:[#allocation9 + $0x40] ss:$16 sps:$4 sm:$0xff]  }
 0x37f   :  { %5133 = vrcp.f32 %v1065_v18 }
 0x380   :  { %v5944_v41 = vadd.f32 %v1073_v39, %v1071_v40 }
 0x382   :  { %5135 = vtanh.f32 %v5944_v41 }
 0x38b   :  { %v5132_v44 = vpop.eup %5131 }
 0x38c   :  { %v1078_v38 = vmul.f32 %v5132_v44, %v5130_v42  ;;  %v5134_v45 = vpop.eup %5133 }
 0x38e   :  { %v4495_v6 = vpack.c.bf16 %v1078_v38, %v1078_v38 }
 0x38f   :  { %v5136_v46 = vpop.eup %5135 }
 0x390   :  { %v1079_v47 = vmul.f32 %v5136_v46, %v5134_v45  ;;  %1088 = vst [vmem:[#allocation2 + $0x20] sm:$0xf] %v4495_v6  ;;  %1090 = vst [vmem:[#allocation2 + $0x54] sm:$0xf] %v4495_v6 }
 0x392   :  { %v1080_v48 = vpack.c.bf16 %v1079_v47, %v1078_v38  ;;  %v4496_v49 = vpack.c.bf16 %v1079_v47, %v1079_v47 }
 0x394   :  { %1089 = vst [vmem:[#allocation2 + $0x28] sm:$0xf] %v4496_v49  ;;  %1091 = vst [vmem:[#allocation2 + $0x5c] sm:$0xf] %v4496_v49  ;;  %1125 = vmatmul.mubr.bf16.vlgmr.msra.gmra.mxu0 %v1080_v48  ;;  %1168 = vmatmul.mubr.bf16.vlgmr.msra.gmra.mxu1 %v1080_v48 }
 0x395   :  { %1247 = vmatpush1.bf16.msra.mxu0 %v5853_v33  ;;  %1290 = vmatpush1.bf16.msra.mxu1 %v5856_v50 }
 0x396   :  { %1248 = vmatprep.subr.bf16.mxu0 %v5859_v51  ;;  %1291 = vmatprep.subr.bf16.mxu1 %v5862_v52 }
 0x397   :  { %1278 = vmatprep.mubr.bf16.mxu0 %v5512_v0  ;;  %1321 = vmatprep.mubr.bf16.mxu1 %v5512_v0 }
 0x399   :  { %1249 = vmatpush1.bf16.msra.mxu0 %v5867_v53  ;;  %1292 = vmatpush1.bf16.msra.mxu1 %v5870_v54 }
 0x39a   :  { %1250 = vmatprep.subr.bf16.mxu0 %v5873_v55  ;;  %1293 = vmatprep.subr.bf16.mxu1 %v5876_v56 }
 0x39d   :  { %1251 = vmatpush1.bf16.msra.mxu0 %v5879_v57  ;;  %1294 = vmatpush1.bf16.msra.mxu1 %v5882_v28 }
 0x39e   :  { %1252 = vmatprep.subr.bf16.mxu0 %v5885_v30  ;;  %1295 = vmatprep.subr.bf16.mxu1 %v5888_v13 }
 0x3a1   :  { %1253 = vmatpush1.bf16.msra.mxu0 %v5891_v32  ;;  %1296 = vmatpush1.bf16.msra.mxu1 %v5894_v34 }
 0x3a2   :  { %1254 = vmatprep.subr.bf16.mxu0 %v5897_v15  ;;  %1297 = vmatprep.subr.bf16.mxu1 %v5900_v9 }
 0x3a5   :  { %1255 = vmatpush1.bf16.msra.mxu0 %v5903_v11  ;;  %1298 = vmatpush1.bf16.msra.mxu1 %v5906_v12 }
 0x3a6   :  { %1256 = vmatprep.subr.bf16.mxu0 %v5909_v20  ;;  %1299 = vmatprep.subr.bf16.mxu1 %v5912_v8 }
 0x3a9   :  { %1257 = vmatpush1.bf16.msra.mxu0 %v5969_v43  ;;  %1300 = vmatpush1.bf16.msra.mxu1 %v5972_v35 }
 0x3aa   :  { %1258 = vmatprep.subr.bf16.mxu0 %v5975_v36  ;;  %1301 = vmatprep.subr.bf16.mxu1 %v5978_v59 }
 0x3ad   :  { %1259 = vmatpush1.bf16.msra.mxu0 %v5981_v60  ;;  %1302 = vmatpush1.bf16.msra.mxu1 %v5984_v62 }
 0x3ae   :  { %1260 = vmatprep.subr.bf16.mxu0 %v5987_v61  ;;  %1303 = vmatprep.subr.bf16.mxu1 %v5990_v63 }
 0x3b1   :  { %1261 = vmatpush1.bf16.msra.mxu0 %v5993_v1  ;;  %1304 = vmatpush1.bf16.msra.mxu1 %v5996_v2 }
 0x3b2   :  { %1400 = vmatprep.subr.bf16.mxu0 %v5925_v5  ;;  %1443 = vmatprep.subr.bf16.mxu1 %v5928_v58 }
 0x454   :  { %v1126_v3 = vpop.f32.mrf.mxu0  ;;  %v1169_v14 = vpop.f32.mrf.mxu1 }
 0x455   :  { %v1178_v4 = vadd.f32 %v1126_v3, %v5771_v19 }
 0x456   :  { %v1128_v24 = vpop.f32.mrf.mxu0  ;;  %v1171_v40 = vpop.f32.mrf.mxu1 }
 0x457   :  { %v4215_v23 = vmul.f32 -1.442695, %v1178_v4  ;;  %v1179_v17 = vadd.f32 %v1128_v24, %v5773_v22  ;;  %v1181_v47 = vadd.f32 %v1171_v40, %v5785_v26  ;;  %v1180_v24 = vadd.f32 %v1169_v14, %v5790_v25 }
 0x458   :  { %v1130_v18 = vpop.f32.mrf.mxu0  ;;  %v1173_v6 = vpop.f32.mrf.mxu1 }
 0x459   :  { %5137 = vpow2.f32 %v4215_v23  ;;  %v4217_v39 = vmul.f32 -1.442695, %v1179_v17  ;;  %v1182_v42 = vadd.f32 %v1130_v18, %v5777_v27  ;;  %v4219_v49 = vmul.f32 -1.442695, %v1181_v47 }
 0x45a   :  { %v1132_v44 = vpop.f32.mrf.mxu0  ;;  %v1175_v48 = vpop.f32.mrf.mxu1 }
 0x45b   :  { %5139 = vpow2.f32 %v4217_v39  ;;  %v4216_v38 = vmul.f32 -1.442695, %v1182_v42  ;;  %v1183_v45 = vadd.f32 %v1132_v44, %v5780_v31  ;;  %v1185_v3 = vadd.f32 %v1175_v48, %v5788_v29 }
 0x45c   :  { %v1184_v44 = vadd.f32 %v1173_v6, %v5794_v21 }
 0x45d   :  { %5141 = vpow2.f32 %v4216_v38  ;;  %v4218_v46 = vmul.f32 -1.442695, %v1183_v45  ;;  %v4220_v18 = vmul.f32 -1.442695, %v1185_v3 }
 0x45f   :  { %5143 = vpow2.f32 %v4218_v46 }
 0x460   :  { %5145 = vpow2.f32 %v4219_v49 }
 0x466   :  { %v5138_v4 = vpop.eup %5137 }
 0x467   :  { %v1192_v23 = vadd.f32 1.0, %v5138_v4 }
 0x468   :  { %v5140_v17 = vpop.eup %5139 }
 0x469   :  { %5147 = vrcp.f32 %v1192_v23  ;;  %v1204_v39 = vadd.f32 1.0, %v5140_v17 }
 0x46a   :  { %v5142_v42 = vpop.eup %5141  ;;  %5149 = vtanh.f32 %v1180_v24 }
 0x46b   :  { %5151 = vrcp.f32 %v1204_v39  ;;  %v1193_v38 = vadd.f32 1.0, %v5142_v42 }
 0x46c   :  { %v5144_v40 = vpop.eup %5143  ;;  %5153 = vpow2.f32 %v4220_v18 }
 0x46d   :  { %5155 = vrcp.f32 %v1193_v38  ;;  %v1205_v45 = vadd.f32 1.0, %v5144_v40  ;;  %v5146_v46 = vpop.eup %5145 }
 0x46e   :  { %5157 = vtanh.f32 %v1184_v44  ;;  %v1218_v49 = vadd.f32 1.0, %v5146_v46 }
 0x46f   :  { %5159 = vrcp.f32 %v1205_v45 }
 0x470   :  { %5161 = vrcp.f32 %v1218_v49 }
 0x476   :  { %v5148_v14 = vpop.eup %5147 }
 0x477   :  { %v5150_v47 = vpop.eup %5149 }
 0x478   :  { %v5152_v48 = vpop.eup %5151  ;;  %v1226_v4 = vmul.f32 %v5150_v47, %v5148_v14 }
 0x479   :  { %v5154_v3 = vpop.eup %5153  ;;  %v1224_v23 = vmul.f32 %v5152_v48, %v5940_v16 }
 0x47a   :  { %v5156_v24 = vpop.eup %5155  ;;  %v1219_v18 = vadd.f32 1.0, %v5154_v3 }
 0x47b   :  { %v5158_v17 = vpop.eup %5157  ;;  %v6010_v6 = vadd.f32 %v1226_v4, %v1224_v23 }
 0x47c   :  { %v5160_v39 = vpop.eup %5159  ;;  %v1227_v42 = vmul.f32 %v5158_v17, %v5156_v24 }
 0x47d   :  { %v1225_v44 = vmul.f32 %v5160_v39, %v5944_v41  ;;  %5163 = vtanh.f32 %v6010_v6  ;;  %v5162_v40 = vpop.eup %5161 }
 0x47e   :  { %5165 = vrcp.f32 %v1219_v18 }
 0x47f   :  { %v6014_v38 = vadd.f32 %v1227_v42, %v1225_v44 }
 0x481   :  { %5167 = vtanh.f32 %v6014_v38 }
 0x48a   :  { %v5164_v45 = vpop.eup %5163 }
 0x48b   :  { %v1232_v16 = vmul.f32 %v5164_v45, %v5162_v40  ;;  %v5166_v46 = vpop.eup %5165 }
 0x48d   :  { %v4497_v14 = vpack.c.bf16 %v1232_v16, %v1232_v16 }
 0x48e   :  { %v5168_v47 = vpop.eup %5167 }
 0x48f   :  { %v1233_v48 = vmul.f32 %v5168_v47, %v5166_v46  ;;  %1242 = vst [vmem:[#allocation2 + $0x30] sm:$0xf] %v4497_v14  ;;  %1244 = vst [vmem:[#allocation2 + $0x44] sm:$0xf] %v4497_v14 }
 0x491   :  { %v1234_v49 = vpack.c.bf16 %v1233_v48, %v1232_v16  ;;  %v4498_v3 = vpack.c.bf16 %v1233_v48, %v1233_v48 }
 0x493   :  { %1243 = vst [vmem:[#allocation2 + $0x38] sm:$0xf] %v4498_v3  ;;  %1245 = vst [vmem:[#allocation2 + $0x4c] sm:$0xf] %v4498_v3  ;;  %1279 = vmatmul.mubr.bf16.vlgmr.msra.gmra.mxu0 %v1234_v49  ;;  %1322 = vmatmul.mubr.bf16.vlgmr.msra.gmra.mxu1 %v1234_v49 }
 0x494   :  { %1401 = vmatpush1.bf16.msra.mxu0 %v5853_v33  ;;  %1444 = vmatpush1.bf16.msra.mxu1 %v5856_v50 }
 0x495   :  { %1402 = vmatprep.subr.bf16.mxu0 %v5859_v51  ;;  %1445 = vmatprep.subr.bf16.mxu1 %v5862_v52 }
 0x496   :  { %1432 = vmatprep.mubr.bf16.mxu0 %v5512_v0  ;;  %1475 = vmatprep.mubr.bf16.mxu1 %v5512_v0 }
 0x498   :  { %1403 = vmatpush1.bf16.msra.mxu0 %v5867_v53  ;;  %1446 = vmatpush1.bf16.msra.mxu1 %v5870_v54 }
 0x499   :  { %1404 = vmatprep.subr.bf16.mxu0 %v5873_v55  ;;  %1447 = vmatprep.subr.bf16.mxu1 %v5876_v56 }
 0x49c   :  { %1405 = vmatpush1.bf16.msra.mxu0 %v5879_v57  ;;  %1448 = vmatpush1.bf16.msra.mxu1 %v5882_v28 }
 0x49d   :  { %1406 = vmatprep.subr.bf16.mxu0 %v5885_v30  ;;  %1449 = vmatprep.subr.bf16.mxu1 %v5888_v13 }
 0x4a0   :  { %1407 = vmatpush1.bf16.msra.mxu0 %v5891_v32  ;;  %1450 = vmatpush1.bf16.msra.mxu1 %v5894_v34 }
 0x4a1   :  { %1408 = vmatprep.subr.bf16.mxu0 %v5897_v15  ;;  %1451 = vmatprep.subr.bf16.mxu1 %v5900_v9 }
 0x4a4   :  { %1409 = vmatpush1.bf16.msra.mxu0 %v5903_v11  ;;  %1452 = vmatpush1.bf16.msra.mxu1 %v5906_v12 }
 0x4a5   :  { %1410 = vmatprep.subr.bf16.mxu0 %v5909_v20  ;;  %1453 = vmatprep.subr.bf16.mxu1 %v5912_v8 }
 0x4a8   :  { %1411 = vmatpush1.bf16.msra.mxu0 %v5969_v43  ;;  %1454 = vmatpush1.bf16.msra.mxu1 %v5972_v35 }
 0x4a9   :  { %1412 = vmatprep.subr.bf16.mxu0 %v5975_v36  ;;  %1455 = vmatprep.subr.bf16.mxu1 %v5978_v59 }
 0x4ac   :  { %1413 = vmatpush1.bf16.msra.mxu0 %v5981_v60  ;;  %1456 = vmatpush1.bf16.msra.mxu1 %v5984_v62 }
 0x4ad   :  { %1414 = vmatprep.subr.bf16.mxu0 %v5987_v61  ;;  %1457 = vmatprep.subr.bf16.mxu1 %v5990_v63 }
 0x4b0   :  { %1415 = vmatpush1.bf16.msra.mxu0 %v5993_v1  ;;  %1458 = vmatpush1.bf16.msra.mxu1 %v5996_v2 }
 0x4b1   :  { %1554 = vmatprep.subr.bf16.mxu0 %v5925_v5  ;;  %1597 = vmatprep.subr.bf16.mxu1 %v5928_v58 }
 0x553   :  { %v1280_v41 = vpop.f32.mrf.mxu0  ;;  %v1323_v23 = vpop.f32.mrf.mxu1 }
 0x554   :  { %v1332_v4 = vadd.f32 %v1280_v41, %v5771_v19 }
 0x555   :  { %v1282_v24 = vpop.f32.mrf.mxu0  ;;  %v1325_v44 = vpop.f32.mrf.mxu1 }
 0x556   :  { %v4223_v17 = vmul.f32 -1.442695, %v1332_v4  ;;  %v1333_v39 = vadd.f32 %v1282_v24, %v5773_v22  ;;  %v1335_v48 = vadd.f32 %v1325_v44, %v5785_v26  ;;  %v1334_v24 = vadd.f32 %v1323_v23, %v5790_v25 }
 0x557   :  { %v1284_v18 = vpop.f32.mrf.mxu0  ;;  %v1327_v14 = vpop.f32.mrf.mxu1 }
 0x558   :  { %5169 = vpow2.f32 %v4223_v17  ;;  %v4225_v42 = vmul.f32 -1.442695, %v1333_v39  ;;  %v1336_v40 = vadd.f32 %v1284_v18, %v5777_v27  ;;  %v4227_v3 = vmul.f32 -1.442695, %v1335_v48 }
 0x559   :  { %v1286_v45 = vpop.f32.mrf.mxu0  ;;  %v1329_v49 = vpop.f32.mrf.mxu1 }
 0x55a   :  { %5171 = vpow2.f32 %v4225_v42  ;;  %v4224_v16 = vmul.f32 -1.442695, %v1336_v40  ;;  %v1337_v46 = vadd.f32 %v1286_v45, %v5780_v31  ;;  %v1339_v41 = vadd.f32 %v1329_v49, %v5788_v29 }
 0x55b   :  { %v1338_v45 = vadd.f32 %v1327_v14, %v5794_v21 }
 0x55c   :  { %5173 = vpow2.f32 %v4224_v16  ;;  %v4226_v47 = vmul.f32 -1.442695, %v1337_v46  ;;  %v4228_v18 = vmul.f32 -1.442695, %v1339_v41 }
 0x55e   :  { %5175 = vpow2.f32 %v4226_v47 }
 0x55f   :  { %5177 = vpow2.f32 %v4227_v3 }
 0x565   :  { %v5170_v4 = vpop.eup %5169 }
 0x566   :  { %v1346_v17 = vadd.f32 1.0, %v5170_v4 }
 0x567   :  { %v5172_v39 = vpop.eup %5171 }
 0x568   :  { %5179 = vrcp.f32 %v1346_v17  ;;  %v1358_v42 = vadd.f32 1.0, %v5172_v39 }
 0x569   :  { %v5174_v40 = vpop.eup %5173  ;;  %5181 = vtanh.f32 %v1334_v24 }
 0x56a   :  { %5183 = vrcp.f32 %v1358_v42  ;;  %v1347_v16 = vadd.f32 1.0, %v5174_v40 }
 0x56b   :  { %v5176_v44 = vpop.eup %5175  ;;  %5185 = vpow2.f32 %v4228_v18 }
 0x56c   :  { %5187 = vrcp.f32 %v1347_v16  ;;  %v1359_v46 = vadd.f32 1.0, %v5176_v44  ;;  %v5178_v47 = vpop.eup %5177 }
 0x56d   :  { %5189 = vtanh.f32 %v1338_v45  ;;  %v1372_v3 = vadd.f32 1.0, %v5178_v47 }
 0x56e   :  { %5191 = vrcp.f32 %v1359_v46 }
 0x56f   :  { %5193 = vrcp.f32 %v1372_v3 }
 0x575   :  { %v5180_v23 = vpop.eup %5179 }
 0x576   :  { %v5182_v48 = vpop.eup %5181 }
 0x577   :  { %v5184_v49 = vpop.eup %5183  ;;  %v1380_v4 = vmul.f32 %v5182_v48, %v5180_v23 }
 0x578   :  { %v5186_v41 = vpop.eup %5185  ;;  %v1378_v17 = vmul.f32 %v5184_v49, %v6010_v6 }
 0x579   :  { %v5188_v24 = vpop.eup %5187  ;;  %v1373_v18 = vadd.f32 1.0, %v5186_v41 }
 0x57a   :  { %v5190_v39 = vpop.eup %5189  ;;  %v6060_v14 = vadd.f32 %v1380_v4, %v1378_v17 }
 0x57b   :  { %v5192_v42 = vpop.eup %5191  ;;  %v1381_v40 = vmul.f32 %v5190_v39, %v5188_v24 }
 0x57c   :  { %v1379_v45 = vmul.f32 %v5192_v42, %v6014_v38  ;;  %5195 = vtanh.f32 %v6060_v14  ;;  %v5194_v44 = vpop.eup %5193 }
 0x57d   :  { %5197 = vrcp.f32 %v1373_v18 }
 0x57e   :  { %v6064_v16 = vadd.f32 %v1381_v40, %v1379_v45 }
 0x580   :  { %5199 = vtanh.f32 %v6064_v16 }
 0x589   :  { %v5196_v46 = vpop.eup %5195 }
 0x58a   :  { %v1386_v6 = vmul.f32 %v5196_v46, %v5194_v44  ;;  %v5198_v47 = vpop.eup %5197 }
 0x58c   :  { %v4499_v23 = vpack.c.bf16 %v1386_v6, %v1386_v6 }
 0x58d   :  { %v5200_v48 = vpop.eup %5199 }
 0x58e   :  { %v1387_v49 = vmul.f32 %v5200_v48, %v5198_v47  ;;  %1396 = vst [vmem:[#allocation2 + $0x40] sm:$0xf] %v4499_v23  ;;  %1398 = vst [vmem:[#allocation2 + $0x34] sm:$0xf] %v4499_v23 }
 0x590   :  { %v1388_v3 = vpack.c.bf16 %v1387_v49, %v1386_v6  ;;  %v4500_v41 = vpack.c.bf16 %v1387_v49, %v1387_v49 }
 0x592   :  { %1397 = vst [vmem:[#allocation2 + $0x48] sm:$0xf] %v4500_v41  ;;  %1399 = vst [vmem:[#allocation2 + $0x3c] sm:$0xf] %v4500_v41  ;;  %1433 = vmatmul.mubr.bf16.vlgmr.msra.gmra.mxu0 %v1388_v3  ;;  %1476 = vmatmul.mubr.bf16.vlgmr.msra.gmra.mxu1 %v1388_v3 }
 0x593   :  { %1555 = vmatpush1.bf16.msra.mxu0 %v5853_v33  ;;  %1598 = vmatpush1.bf16.msra.mxu1 %v5856_v50 }
 0x594   :  { %1556 = vmatprep.subr.bf16.mxu0 %v5859_v51  ;;  %1599 = vmatprep.subr.bf16.mxu1 %v5862_v52 }
 0x595   :  { %1586 = vmatprep.mubr.bf16.mxu0 %v5512_v0  ;;  %1629 = vmatprep.mubr.bf16.mxu1 %v5512_v0 }
 0x597   :  { %1557 = vmatpush1.bf16.msra.mxu0 %v5867_v53  ;;  %1600 = vmatpush1.bf16.msra.mxu1 %v5870_v54 }
 0x598   :  { %1558 = vmatprep.subr.bf16.mxu0 %v5873_v55  ;;  %1601 = vmatprep.subr.bf16.mxu1 %v5876_v56 }
 0x59b   :  { %1559 = vmatpush1.bf16.msra.mxu0 %v5879_v57  ;;  %1602 = vmatpush1.bf16.msra.mxu1 %v5882_v28 }
 0x59c   :  { %1560 = vmatprep.subr.bf16.mxu0 %v5885_v30  ;;  %1603 = vmatprep.subr.bf16.mxu1 %v5888_v13 }
 0x59f   :  { %1561 = vmatpush1.bf16.msra.mxu0 %v5891_v32  ;;  %1604 = vmatpush1.bf16.msra.mxu1 %v5894_v34 }
 0x5a0   :  { %1562 = vmatprep.subr.bf16.mxu0 %v5897_v15  ;;  %1605 = vmatprep.subr.bf16.mxu1 %v5900_v9 }
 0x5a3   :  { %1563 = vmatpush1.bf16.msra.mxu0 %v5903_v11  ;;  %1606 = vmatpush1.bf16.msra.mxu1 %v5906_v12 }
 0x5a4   :  { %1564 = vmatprep.subr.bf16.mxu0 %v5909_v20  ;;  %1607 = vmatprep.subr.bf16.mxu1 %v5912_v8 }
 0x5a7   :  { %1565 = vmatpush1.bf16.msra.mxu0 %v5969_v43  ;;  %1608 = vmatpush1.bf16.msra.mxu1 %v5972_v35 }
 0x5a8   :  { %1566 = vmatprep.subr.bf16.mxu0 %v5975_v36  ;;  %1609 = vmatprep.subr.bf16.mxu1 %v5978_v59 }
 0x5ab   :  { %1567 = vmatpush1.bf16.msra.mxu0 %v5981_v60  ;;  %1610 = vmatpush1.bf16.msra.mxu1 %v5984_v62 }
 0x5ac   :  { %1568 = vmatprep.subr.bf16.mxu0 %v5987_v61  ;;  %1611 = vmatprep.subr.bf16.mxu1 %v5990_v63 }
 0x5af   :  { %1569 = vmatpush1.bf16.msra.mxu0 %v5993_v1  ;;  %1612 = vmatpush1.bf16.msra.mxu1 %v5996_v2 }
 0x5b0   :  { %1708 = vmatprep.subr.bf16.mxu0 %v5925_v5  ;;  %1751 = vmatprep.subr.bf16.mxu1 %v5928_v58 }
 0x652   :  { %v1434_v38 = vpop.f32.mrf.mxu0  ;;  %v1477_v17 = vpop.f32.mrf.mxu1 }
 0x653   :  { %v1486_v4 = vadd.f32 %v1434_v38, %v5771_v19  ;;  %v1488_v38 = vadd.f32 %v1477_v17, %v5790_v25 }
 0x654   :  { %v1436_v24 = vpop.f32.mrf.mxu0  ;;  %v1479_v45 = vpop.f32.mrf.mxu1 }
 0x655   :  { %v4231_v39 = vmul.f32 -1.442695, %v1486_v4  ;;  %v1487_v42 = vadd.f32 %v1436_v24, %v5773_v22  ;;  %v1489_v23 = vadd.f32 %v1479_v45, %v5785_v26 }
 0x656   :  { %v1438_v18 = vpop.f32.mrf.mxu0  ;;  %v1481_v58 = vpop.f32.mrf.mxu1 }
 0x657   :  { %5201 = vpow2.f32 %v4231_v39  ;;  %v4233_v40 = vmul.f32 -1.442695, %v1487_v42  ;;  %v1490_v44 = vadd.f32 %v1438_v18, %v5777_v27  ;;  %v4235_v49 = vmul.f32 -1.442695, %v1489_v23 }
 0x658   :  { %v1440_v46 = vpop.f32.mrf.mxu0  ;;  %v1483_v48 = vpop.f32.mrf.mxu1 }
 0x659   :  { %5203 = vpow2.f32 %v4233_v40  ;;  %v4232_v6 = vmul.f32 -1.442695, %v1490_v44  ;;  %v1491_v5 = vadd.f32 %v1440_v46, %v5780_v31  ;;  %v1493_v3 = vadd.f32 %v1483_v48, %v5788_v29 }
 0x65a   :  { %v1492_v40 = vadd.f32 %v1481_v58, %v5794_v21 }
 0x65b   :  { %5205 = vpow2.f32 %v4232_v6  ;;  %v4234_v47 = vmul.f32 -1.442695, %v1491_v5  ;;  %v4236_v39 = vmul.f32 -1.442695, %v1493_v3 }
 0x65d   :  { %5207 = vpow2.f32 %v4234_v47 }
 0x65e   :  { %5209 = vpow2.f32 %v4235_v49 }
 0x664   :  { %v5202_v41 = vpop.eup %5201 }
 0x665   :  { %v1500_v4 = vadd.f32 1.0, %v5202_v41 }
 0x666   :  { %v5204_v24 = vpop.eup %5203 }
 0x667   :  { %5211 = vrcp.f32 %v1500_v4  ;;  %v1512_v42 = vadd.f32 1.0, %v5204_v24 }
 0x668   :  { %v5206_v18 = vpop.eup %5205  ;;  %5213 = vtanh.f32 %v1488_v38 }
 0x669   :  { %5215 = vrcp.f32 %v1512_v42  ;;  %v1501_v44 = vadd.f32 1.0, %v5206_v18 }
 0x66a   :  { %v5208_v45 = vpop.eup %5207  ;;  %5217 = vpow2.f32 %v4236_v39 }
 0x66b   :  { %5219 = vrcp.f32 %v1501_v44  ;;  %v1513_v46 = vadd.f32 1.0, %v5208_v45  ;;  %v5210_v6 = vpop.eup %5209 }
 0x66c   :  { %5221 = vtanh.f32 %v1492_v40  ;;  %v1526_v23 = vadd.f32 1.0, %v5210_v6 }
 0x66d   :  { %5223 = vrcp.f32 %v1513_v46 }
 0x66e   :  { %5225 = vrcp.f32 %v1526_v23 }
 0x674   :  { %v5212_v17 = vpop.eup %5211 }
 0x675   :  { %v5214_v5 = vpop.eup %5213 }
 0x676   :  { %v5216_v47 = vpop.eup %5215  ;;  %v1534_v49 = vmul.f32 %v5214_v5, %v5212_v17 }
 0x677   :  { %v5218_v48 = vpop.eup %5217  ;;  %v1532_v3 = vmul.f32 %v5216_v47, %v6060_v14 }
 0x678   :  { %v5220_v41 = vpop.eup %5219  ;;  %v1527_v24 = vadd.f32 1.0, %v5218_v48 }
 0x679   :  { %v5222_v38 = vpop.eup %5221  ;;  %v6110_v58 = vadd.f32 %v1534_v49, %v1532_v3 }
 0x67a   :  { %v5224_v4 = vpop.eup %5223  ;;  %v1535_v39 = vmul.f32 %v5222_v38, %v5220_v41 }
 0x67b   :  { %v1533_v42 = vmul.f32 %v5224_v4, %v6064_v16  ;;  %5227 = vtanh.f32 %v6110_v58  ;;  %v5226_v40 = vpop.eup %5225 }
 0x67c   :  { %5229 = vrcp.f32 %v1527_v24 }
 0x67d   :  { %v6114_v18 = vadd.f32 %v1535_v39, %v1533_v42 }
 0x67f   :  { %5231 = vtanh.f32 %v6114_v18 }
 0x688   :  { %v5228_v44 = vpop.eup %5227 }
 0x689   :  { %v1540_v14 = vmul.f32 %v5228_v44, %v5226_v40  ;;  %v5230_v45 = vpop.eup %5229 }
 0x68b   :  { %v4501_v46 = vpack.c.bf16 %v1540_v14, %v1540_v14 }
 0x68c   :  { %v5232_v6 = vpop.eup %5231 }
 0x68d   :  { %v1541_v17 = vmul.f32 %v5232_v6, %v5230_v45  ;;  %1550 = vst [vmem:[#allocation2 + $0x50] sm:$0xf] %v4501_v46  ;;  %1552 = vst [vmem:[#allocation2 + $0x24] sm:$0xf] %v4501_v46 }
 0x68f   :  { %v1542_v5 = vpack.c.bf16 %v1541_v17, %v1540_v14  ;;  %v4502_v47 = vpack.c.bf16 %v1541_v17, %v1541_v17 }
 0x691   :  { %1551 = vst [vmem:[#allocation2 + $0x58] sm:$0xf] %v4502_v47  ;;  %1553 = vst [vmem:[#allocation2 + $0x2c] sm:$0xf] %v4502_v47  ;;  %1587 = vmatmul.mubr.bf16.vlgmr.msra.gmra.mxu0 %v1542_v5  ;;  %1630 = vmatmul.mubr.bf16.vlgmr.msra.gmra.mxu1 %v1542_v5 }
 0x692   :  { %1709 = vmatpush1.bf16.msra.mxu0 %v5853_v33  ;;  %1752 = vmatpush1.bf16.msra.mxu1 %v5856_v50  ;;  %v4795_v33 = vld [vmem:[#allocation10 + $0x74] ss:$8 sps:$4 sm:$0xff]  }
 0x693   :  { %1710 = vmatprep.subr.bf16.mxu0 %v5859_v51  ;;  %1753 = vmatprep.subr.bf16.mxu1 %v5862_v52 }
 0x694   :  { %1740 = vmatprep.mubr.bf16.mxu0 %v5512_v0  ;;  %1783 = vmatprep.mubr.bf16.mxu1 %v5512_v0 }
 0x696   :  { %1711 = vmatpush1.bf16.msra.mxu0 %v5867_v53  ;;  %1754 = vmatpush1.bf16.msra.mxu1 %v5870_v54 }
 0x697   :  { %1712 = vmatprep.subr.bf16.mxu0 %v5873_v55  ;;  %1755 = vmatprep.subr.bf16.mxu1 %v5876_v56 }
 0x69a   :  { %1713 = vmatpush1.bf16.msra.mxu0 %v5879_v57  ;;  %1756 = vmatpush1.bf16.msra.mxu1 %v5882_v28 }
 0x69b   :  { %1714 = vmatprep.subr.bf16.mxu0 %v5885_v30  ;;  %1757 = vmatprep.subr.bf16.mxu1 %v5888_v13 }
 0x69e   :  { %1715 = vmatpush1.bf16.msra.mxu0 %v5891_v32  ;;  %1758 = vmatpush1.bf16.msra.mxu1 %v5894_v34 }
 0x69f   :  { %1716 = vmatprep.subr.bf16.mxu0 %v5897_v15  ;;  %1759 = vmatprep.subr.bf16.mxu1 %v5900_v9 }
 0x6a2   :  { %1717 = vmatpush1.bf16.msra.mxu0 %v5903_v11  ;;  %1760 = vmatpush1.bf16.msra.mxu1 %v5906_v12 }
 0x6a3   :  { %1718 = vmatprep.subr.bf16.mxu0 %v5909_v20  ;;  %1761 = vmatprep.subr.bf16.mxu1 %v5912_v8 }
 0x6a6   :  { %1719 = vmatpush1.bf16.msra.mxu0 %v5969_v43  ;;  %1762 = vmatpush1.bf16.msra.mxu1 %v5972_v35 }
 0x6a7   :  { %1720 = vmatprep.subr.bf16.mxu0 %v5975_v36  ;;  %1763 = vmatprep.subr.bf16.mxu1 %v5978_v59 }
 0x6aa   :  { %1721 = vmatpush1.bf16.msra.mxu0 %v5981_v60  ;;  %1764 = vmatpush1.bf16.msra.mxu1 %v5984_v62 }
 0x6ab   :  { %1722 = vmatprep.subr.bf16.mxu0 %v5987_v61  ;;  %1765 = vmatprep.subr.bf16.mxu1 %v5990_v63 }
 0x6ae   :  { %1723 = vmatpush1.bf16.msra.mxu0 %v5993_v1  ;;  %1766 = vmatpush1.bf16.msra.mxu1 %v5996_v2 }
 0x6af   :  { %1970 = vmatprep.subr.bf16.mxu0 %v4795_v33 }
 0x751   :  { %v1588_v50 = vpop.f32.mrf.mxu0  ;;  %v1631_v52 = vpop.f32.mrf.mxu1 }
 0x752   :  { %v1640_v51 = vadd.f32 %v1588_v50, %v5771_v19  ;;  %v1642_v35 = vadd.f32 %v1631_v52, %v5790_v25  ;;  %v4793_v52 = vld [vmem:[#allocation10 + $0x70] ss:$8 sps:$4 sm:$0xff]  }
 0x753   :  { %v1590_v53 = vpop.f32.mrf.mxu0  ;;  %v1633_v28 = vpop.f32.mrf.mxu1 }
 0x754   :  { %v4239_v54 = vmul.f32 -1.442695, %v1640_v51  ;;  %v1641_v55 = vadd.f32 %v1590_v53, %v5773_v22  ;;  %v1643_v11 = vadd.f32 %v1633_v28, %v5785_v26  ;;  %v4804_v28 = vld [vmem:[#allocation10 + $0x44] ss:$8 sps:$4 sm:$0xff]  }
 0x755   :  { %v1592_v56 = vpop.f32.mrf.mxu0  ;;  %v1635_v15 = vpop.f32.mrf.mxu1 }
 0x756   :  { %5233 = vpow2.f32 %v4239_v54  ;;  %v4241_v57 = vmul.f32 -1.442695, %v1641_v55  ;;  %v1644_v30 = vadd.f32 %v1592_v56, %v5777_v27  ;;  %v4243_v20 = vmul.f32 -1.442695, %v1643_v11  ;;  %v4796_v55 = vld [vmem:[#allocation10 + $0x60] ss:$8 sps:$4 sm:$0xff]  }
 0x757   :  { %v1594_v13 = vpop.f32.mrf.mxu0  ;;  %v1637_v12 = vpop.f32.mrf.mxu1  ;;  %v1646_v63 = vadd.f32 %v1635_v15, %v5794_v21  ;;  %v4801_v56 = vld [vmem:[#allocation10 + $0x54] ss:$8 sps:$4 sm:$0xff]   ;;  %v4808_v15 = vld [vmem:[#allocation10 + $0x20] ss:$8 sps:$4 sm:$0xff]   ;;  %v4816_v11 = vld [vmem:[#allocation10 + $0x4] ss:$8 sps:$4 sm:$0xff]  }
 0x758   :  { %5235 = vpow2.f32 %v4241_v57  ;;  %v4240_v32 = vmul.f32 -1.442695, %v1644_v30  ;;  %v1645_v34 = vadd.f32 %v1594_v13, %v5780_v31  ;;  %v1647_v8 = vadd.f32 %v1637_v12, %v5788_v29  ;;  %v4799_v57 = vld [vmem:[#allocation10 + $0x50] ss:$8 sps:$4 sm:$0xff]   ;;  %v4802_v30 = vld [vmem:[#allocation10 + $0x40] ss:$8 sps:$4 sm:$0xff]  }
 0x759   :  { %v4807_v13 = vld [vmem:[#allocation10 + $0x34] ss:$8 sps:$4 sm:$0xff]   ;;  %v4814_v12 = vld [vmem:[#allocation10] ss:$8 sps:$4 sm:$0xff]  }
 0x75a   :  { %5237 = vpow2.f32 %v4240_v32  ;;  %v4242_v9 = vmul.f32 -1.442695, %v1645_v34  ;;  %v4244_v60 = vmul.f32 -1.442695, %v1647_v8  ;;  %v4805_v32 = vld [vmem:[#allocation10 + $0x30] ss:$8 sps:$4 sm:$0xff]  }
 0x75b   :  { %v4810_v34 = vld [vmem:[#allocation10 + $0x24] ss:$8 sps:$4 sm:$0xff]   ;;  %v4817_v8 = vld [vmem:[#allocation12 + $0x170] ss:$8 sps:$4 sm:$0xff]  }
 0x75c   :  { %5239 = vpow2.f32 %v4242_v9  ;;  %v4813_v9 = vld [vmem:[#allocation10 + $0x14] ss:$8 sps:$4 sm:$0xff]  }
 0x75d   :  { %5241 = vpow2.f32 %v4243_v20  ;;  %v4819_v20 = vld [vmem:[#allocation12 + $0x174] ss:$8 sps:$4 sm:$0xff]  }
 0x763   :  { %v5234_v43 = vpop.eup %5233 }
 0x764   :  { %v1654_v36 = vadd.f32 1.0, %v5234_v43  ;;  %v4825_v43 = vld [vmem:[#allocation12 + $0x164] ss:$8 sps:$4 sm:$0xff]  }
 0x765   :  { %v5236_v59 = vpop.eup %5235 }
 0x766   :  { %5243 = vrcp.f32 %v1654_v36  ;;  %v1666_v62 = vadd.f32 1.0, %v5236_v59  ;;  %v4823_v36 = vld [vmem:[#allocation12 + $0x160] ss:$8 sps:$4 sm:$0xff]   ;;  %v4828_v59 = vld [vmem:[#allocation12 + $0x154] ss:$8 sps:$4 sm:$0xff]  }
 0x767   :  { %v5238_v61 = vpop.eup %5237  ;;  %5245 = vtanh.f32 %v1642_v35 }
 0x768   :  { %5247 = vrcp.f32 %v1666_v62  ;;  %v1655_v1 = vadd.f32 1.0, %v5238_v61  ;;  %v4831_v62 = vld [vmem:[#allocation12 + $0x144] ss:$8 sps:$4 sm:$0xff]   ;;  %v4829_v61 = vld [vmem:[#allocation12 + $0x140] ss:$8 sps:$4 sm:$0xff]  }
 0x769   :  { %v5240_v2 = vpop.eup %5239  ;;  %5249 = vpow2.f32 %v4244_v60  ;;  %v4826_v60 = vld [vmem:[#allocation12 + $0x150] ss:$8 sps:$4 sm:$0xff]  }
 0x76a   :  { %5251 = vrcp.f32 %v1655_v1  ;;  %v1667_v16 = vadd.f32 1.0, %v5240_v2  ;;  %v5242_v23 = vpop.eup %5241  ;;  %v4832_v1 = vld [vmem:[#allocation12 + $0x130] ss:$8 sps:$4 sm:$0xff]   ;;  %v4837_v2 = vld [vmem:[#allocation12 + $0x124] ss:$8 sps:$4 sm:$0xff]  }
 0x76b   :  { %5253 = vtanh.f32 %v1646_v63  ;;  %v1680_v41 = vadd.f32 1.0, %v5242_v23  ;;  %v4834_v63 = vld [vmem:[#allocation12 + $0x134] ss:$8 sps:$4 sm:$0xff]   ;;  %v4838_v23 = vld [vmem:[#allocation12 + $0x110] ss:$8 sps:$4 sm:$0xff]  }
 0x76c   :  { %5255 = vrcp.f32 %v1667_v16  ;;  %v4840_v16 = vld [vmem:[#allocation12 + $0x114] ss:$8 sps:$4 sm:$0xff]  }
 0x76d   :  { %5257 = vrcp.f32 %v1680_v41  ;;  %v4844_v41 = vld [vmem:[#allocation12 + $0x1f0] ss:$8 sps:$4 sm:$0xff]  }
 0x773   :  { %v5244_v48 = vpop.eup %5243 }
 0x774   :  { %v5246_v49 = vpop.eup %5245 }
 0x775   :  { %v5248_v3 = vpop.eup %5247  ;;  %v1688_v4 = vmul.f32 %v5246_v49, %v5244_v48  ;;  %v4843_v48 = vld [vmem:[#allocation12 + $0x104] ss:$8 sps:$4 sm:$0xff]   ;;  %v4841_v49 = vld [vmem:[#allocation12 + $0x100] ss:$8 sps:$4 sm:$0xff]  }
 0x776   :  { %v5250_v38 = vpop.eup %5249  ;;  %v1686_v24 = vmul.f32 %v5248_v3, %v6110_v58  ;;  %v4846_v3 = vld [vmem:[#allocation12 + $0x1f4] ss:$8 sps:$4 sm:$0xff]  }
 0x777   :  { %v5252_v39 = vpop.eup %5251  ;;  %v1681_v14 = vadd.f32 1.0, %v5250_v38  ;;  %v4849_v38 = vld [vmem:[#allocation12 + $0x1e4] ss:$8 sps:$4 sm:$0xff]  }
 0x778   :  { %v5254_v42 = vpop.eup %5253  ;;  %v6158_v40 = vadd.f32 %v1688_v4, %v1686_v24  ;;  %v4847_v4 = vld [vmem:[#allocation12 + $0x1e0] ss:$8 sps:$4 sm:$0xff]   ;;  %v4852_v24 = vld [vmem:[#allocation12 + $0x1d4] ss:$8 sps:$4 sm:$0xff]  }
 0x779   :  { %v5256_v44 = vpop.eup %5255  ;;  %v1689_v45 = vmul.f32 %v5254_v42, %v5252_v39  ;;  %v4850_v39 = vld [vmem:[#allocation12 + $0x1d0] ss:$8 sps:$4 sm:$0xff]   ;;  %v4855_v42 = vld [vmem:[#allocation12 + $0x1c4] ss:$8 sps:$4 sm:$0xff]  }
 0x77a   :  { %v1687_v46 = vmul.f32 %v5256_v44, %v6114_v18  ;;  %5259 = vtanh.f32 %v6158_v40  ;;  %v5258_v17 = vpop.eup %5257  ;;  %v4798_v18 = vld [vmem:[#allocation10 + $0x64] ss:$8 sps:$4 sm:$0xff]   ;;  %v4853_v44 = vld [vmem:[#allocation12 + $0x1c0] ss:$8 sps:$4 sm:$0xff]  }
 0x77b   :  { %5261 = vrcp.f32 %v1681_v14  ;;  %v4885_v14 = vld [vmem:[#allocation12 + $0x74] ss:$8 sps:$4 sm:$0xff]  }
 0x77c   :  { %v6162_v6 = vadd.f32 %v1689_v45, %v1687_v46  ;;  %v4858_v45 = vld [vmem:[#allocation12 + $0x1b4] ss:$8 sps:$4 sm:$0xff]   ;;  %v4883_v46 = vld [vmem:[#allocation12 + $0x70] ss:$8 sps:$4 sm:$0xff]   ;;  %2277 = vmatprep.subr.bf16.mxu1 %v4885_v14 }
 0x77d   :  { %v4936_v14 = vld [vmem:[#allocation12 + $0x274] ss:$8 sps:$4 sm:$0xff]  }
 0x77e   :  { %5263 = vtanh.f32 %v6162_v6 }
 0x787   :  { %v5260_v5 = vpop.eup %5259 }
 0x788   :  { %v1694_v58 = vmul.f32 %v5260_v5, %v5258_v17  ;;  %v5262_v47 = vpop.eup %5261  ;;  %v4856_v17 = vld [vmem:[#allocation12 + $0x1b0] ss:$8 sps:$4 sm:$0xff]   ;;  %v4888_v5 = vld [vmem:[#allocation12 + $0x64] ss:$8 sps:$4 sm:$0xff]  }
 0x78a   :  { %v4503_v33 = vpack.c.bf16 %v1694_v58, %v1694_v58 }
 0x78b   :  { %v5264_v50 = vpop.eup %5263 }
 0x78c   :  { %v1695_v51 = vmul.f32 %v5264_v50, %v5262_v47  ;;  %1704 = vst [vmem:[#allocation2 + $0x60] sm:$0xf] %v4503_v33  ;;  %1706 = vst [vmem:[#allocation2 + $0x14] sm:$0xf] %v4503_v33  ;;  %v4886_v47 = vld [vmem:[#allocation12 + $0x60] ss:$8 sps:$4 sm:$0xff]  }
 0x78d   :  { %v4859_v33 = vld [vmem:[#allocation12 + $0x1a0] ss:$8 sps:$4 sm:$0xff]   ;;  %v4891_v50 = vld [vmem:[#allocation12 + $0x54] ss:$8 sps:$4 sm:$0xff]  }
 0x78e   :  { %v1696_v53 = vpack.c.bf16 %v1695_v51, %v1694_v58  ;;  %v4504_v54 = vpack.c.bf16 %v1695_v51, %v1695_v51  ;;  %v4861_v58 = vld [vmem:[#allocation12 + $0x1a4] ss:$8 sps:$4 sm:$0xff]   ;;  %v4864_v51 = vld [vmem:[#allocation12 + $0x194] ss:$8 sps:$4 sm:$0xff]  }
 0x790   :  { %1705 = vst [vmem:[#allocation2 + $0x68] sm:$0xf] %v4504_v54  ;;  %1707 = vst [vmem:[#allocation2 + $0x1c] sm:$0xf] %v4504_v54  ;;  %1741 = vmatmul.mubr.bf16.vlgmr.msra.gmra.mxu0 %v1696_v53  ;;  %1784 = vmatmul.mubr.bf16.vlgmr.msra.gmra.mxu1 %v1696_v53  ;;  %v4862_v53 = vld [vmem:[#allocation12 + $0x190] ss:$8 sps:$4 sm:$0xff]  }
 0x791   :  { %1971 = vmatpush1.bf16.msra.mxu0 %v4793_v52  ;;  %2002 = vmatprep.mubr.bf16.mxu0 %v5512_v0  ;;  %v4811_v0 = vld [vmem:[#allocation10 + $0x10] ss:$8 sps:$4 sm:$0xff]   ;;  %v4894_v54 = vld [vmem:[#allocation12 + $0x44] ss:$8 sps:$4 sm:$0xff]  }
 0x792   :  { %1972 = vmatprep.subr.bf16.mxu0 %v4798_v18  ;;  %2278 = vmatpush1.bf16.msra.mxu1 %v4883_v46  ;;  %v4889_v52 = vld [vmem:[#allocation12 + $0x50] ss:$8 sps:$4 sm:$0xff]   ;;  %v4867_v18 = vld [vmem:[#allocation12 + $0x184] ss:$8 sps:$4 sm:$0xff]  }
 0x793   :  { %2279 = vmatprep.subr.bf16.mxu1 %v4888_v5 }
 0x795   :  { %1973 = vmatpush1.bf16.msra.mxu0 %v4796_v55  ;;  %v4892_v55 = vld [vmem:[#allocation12 + $0x40] ss:$8 sps:$4 sm:$0xff]  }
 0x796   :  { %1974 = vmatprep.subr.bf16.mxu0 %v4801_v56  ;;  %2280 = vmatpush1.bf16.msra.mxu1 %v4886_v47  ;;  %v4865_v56 = vld [vmem:[#allocation12 + $0x180] ss:$8 sps:$4 sm:$0xff]  }
 0x797   :  { %v6166_v35 = vld [vmem:[#allocation2 + $0x14] ss:$8 sps:$4 sm:$0xff]   ;;  %2281 = vmatprep.subr.bf16.mxu1 %v4891_v50 }
 0x799   :  { %1975 = vmatpush1.bf16.msra.mxu0 %v4799_v57  ;;  %v4897_v57 = vld [vmem:[#allocation12 + $0x34] ss:$8 sps:$4 sm:$0xff]  }
 0x79a   :  { %1976 = vmatprep.subr.bf16.mxu0 %v4804_v28  ;;  %2282 = vmatpush1.bf16.msra.mxu1 %v4889_v52  ;;  %v4895_v28 = vld [vmem:[#allocation12 + $0x30] ss:$8 sps:$4 sm:$0xff]  }
 0x79b   :  { %2283 = vmatprep.subr.bf16.mxu1 %v4894_v54 }
 0x79d   :  { %1977 = vmatpush1.bf16.msra.mxu0 %v4802_v30  ;;  %v4900_v30 = vld [vmem:[#allocation12 + $0x24] ss:$8 sps:$4 sm:$0xff]  }
 0x79e   :  { %1978 = vmatprep.subr.bf16.mxu0 %v4807_v13  ;;  %2284 = vmatpush1.bf16.msra.mxu1 %v4892_v55  ;;  %v6170_v13 = vld [vmem:[#allocation2 + $0x10] ss:$8 sps:$4 sm:$0xff]  }
 0x79f   :  { %2285 = vmatprep.subr.bf16.mxu1 %v4897_v57 }
 0x7a1   :  { %1979 = vmatpush1.bf16.msra.mxu0 %v4805_v32  ;;  %v4898_v32 = vld [vmem:[#allocation12 + $0x20] ss:$8 sps:$4 sm:$0xff]  }
 0x7a2   :  { %1980 = vmatprep.subr.bf16.mxu0 %v4810_v34  ;;  %2286 = vmatpush1.bf16.msra.mxu1 %v4895_v28  ;;  %v6172_v34 = vld [vmem:[#allocation2 + $0x24] ss:$8 sps:$4 sm:$0xff]  }
 0x7a3   :  { %2287 = vmatprep.subr.bf16.mxu1 %v4900_v30 }
 0x7a5   :  { %1981 = vmatpush1.bf16.msra.mxu0 %v4808_v15  ;;  %v4903_v15 = vld [vmem:[#allocation12 + $0x14] ss:$8 sps:$4 sm:$0xff]  }
 0x7a6   :  { %1982 = vmatprep.subr.bf16.mxu0 %v4813_v9  ;;  %2288 = vmatpush1.bf16.msra.mxu1 %v4898_v32  ;;  %v4901_v9 = vld [vmem:[#allocation12 + $0x10] ss:$8 sps:$4 sm:$0xff]  }
 0x7a7   :  { %2289 = vmatprep.subr.bf16.mxu1 %v4903_v15 }
 0x7a9   :  { %1983 = vmatpush1.bf16.msra.mxu0 %v4811_v0  ;;  %v4906_v0 = vld [vmem:[#allocation12 + $0x4] ss:$8 sps:$4 sm:$0xff]  }
 0x7aa   :  { %1984 = vmatprep.subr.bf16.mxu0 %v4816_v11  ;;  %2290 = vmatpush1.bf16.msra.mxu1 %v4901_v9  ;;  %v6176_v11 = vld [vmem:[#allocation2 + $0x20] ss:$8 sps:$4 sm:$0xff]  }
 0x7ab   :  { %2291 = vmatprep.subr.bf16.mxu1 %v4906_v0 }
 0x7ad   :  { %1985 = vmatpush1.bf16.msra.mxu0 %v4814_v12  ;;  %v4904_v12 = vld [vmem:[#allocation12] ss:$8 sps:$4 sm:$0xff]  }
 0x7ae   :  { %2659 = vmatprep.subr.bf16.mxu0 %v4819_v20  ;;  %v6178_v20 = vld [vmem:[#allocation2 + $0x34] ss:$8 sps:$4 sm:$0xff]   ;;  %2292 = vmatpush1.bf16.msra.mxu1 %v4904_v12 }
 0x7b0   :  { %2003 = vmatmul.mubr.bf16.vlgmr.msra.gmra.mxu0 %v5624_v37  ;;  %v4835_v37 = vld [vmem:[#allocation12 + $0x120] ss:$8 sps:$4 sm:$0xff]  }
 0x7b1   :  { %2660 = vmatpush1.bf16.msra.mxu0 %v4817_v8  ;;  %2691 = vmatprep.mubr.bf16.mxu0 %v6166_v35  ;;  %v4909_v8 = vld [vmem:[#allocation12 + $0xf4] ss:$8 sps:$4 sm:$0xff]  }
 0x7b2   :  { %2661 = vmatprep.subr.bf16.mxu0 %v4825_v43  ;;  %v4907_v43 = vld [vmem:[#allocation12 + $0xf0] ss:$8 sps:$4 sm:$0xff]   ;;  %2293 = vmatprep.subr.bf16.mxu1 %v4909_v8 }
 0x7b3   :  { %2294 = vmatpush2.bf16.msra.mxu1 %v4907_v43 }
 0x7b5   :  { %2662 = vmatpush1.bf16.msra.mxu0 %v4823_v36  ;;  %v4912_v36 = vld [vmem:[#allocation12 + $0xe4] ss:$8 sps:$4 sm:$0xff]  }
 0x7b6   :  { %2663 = vmatprep.subr.bf16.mxu0 %v4828_v59  ;;  %v6182_v59 = vld [vmem:[#allocation2 + $0x30] ss:$8 sps:$4 sm:$0xff]   ;;  %2295 = vmatprep.subr.bf16.mxu1 %v4912_v36 }
 0x7b9   :  { %2664 = vmatpush1.bf16.msra.mxu0 %v4826_v60  ;;  %v4910_v60 = vld [vmem:[#allocation12 + $0xe0] ss:$8 sps:$4 sm:$0xff]  }
 0x7ba   :  { %2665 = vmatprep.subr.bf16.mxu0 %v4831_v62  ;;  %v6184_v62 = vld [vmem:[#allocation2 + $0x44] ss:$8 sps:$4 sm:$0xff]   ;;  %2296 = vmatpush2.bf16.msra.mxu1 %v4910_v60 }
 0x7bd   :  { %2666 = vmatpush1.bf16.msra.mxu0 %v4829_v61  ;;  %v4915_v61 = vld [vmem:[#allocation12 + $0xd4] ss:$8 sps:$4 sm:$0xff]  }
 0x7be   :  { %2667 = vmatprep.subr.bf16.mxu0 %v4834_v63  ;;  %v4913_v63 = vld [vmem:[#allocation12 + $0xd0] ss:$8 sps:$4 sm:$0xff]   ;;  %2297 = vmatprep.subr.bf16.mxu1 %v4915_v61 }
 0x7bf   :  { %2298 = vmatpush2.bf16.msra.mxu1 %v4913_v63 }
 0x7c1   :  { %2668 = vmatpush1.bf16.msra.mxu0 %v4832_v1  ;;  %v4918_v1 = vld [vmem:[#allocation12 + $0xc4] ss:$8 sps:$4 sm:$0xff]  }
 0x7c2   :  { %2669 = vmatprep.subr.bf16.mxu0 %v4837_v2  ;;  %v6188_v2 = vld [vmem:[#allocation2 + $0x40] ss:$8 sps:$4 sm:$0xff]   ;;  %2299 = vmatprep.subr.bf16.mxu1 %v4918_v1 }
 0x7c5   :  { %2670 = vmatpush1.bf16.msra.mxu0 %v4835_v37  ;;  %v4916_v37 = vld [vmem:[#allocation12 + $0xc0] ss:$8 sps:$4 sm:$0xff]  }
 0x7c6   :  { %2671 = vmatprep.subr.bf16.mxu0 %v4840_v16  ;;  %v6190_v16 = vld [vmem:[#allocation2 + $0x54] ss:$8 sps:$4 sm:$0xff]   ;;  %2300 = vmatpush2.bf16.msra.mxu1 %v4916_v37 }
 0x7c9   :  { %2672 = vmatpush1.bf16.msra.mxu0 %v4838_v23  ;;  %v4921_v23 = vld [vmem:[#allocation12 + $0xb4] ss:$8 sps:$4 sm:$0xff]  }
 0x7ca   :  { %2673 = vmatprep.subr.bf16.mxu0 %v4843_v48  ;;  %v4919_v48 = vld [vmem:[#allocation12 + $0xb0] ss:$8 sps:$4 sm:$0xff]   ;;  %2301 = vmatprep.subr.bf16.mxu1 %v4921_v23 }
 0x7cb   :  { %2302 = vmatpush2.bf16.msra.mxu1 %v4919_v48 }
 0x7cd   :  { %2674 = vmatpush1.bf16.msra.mxu0 %v4841_v49  ;;  %v4924_v49 = vld [vmem:[#allocation12 + $0xa4] ss:$8 sps:$4 sm:$0xff]  }
 0x7ce   :  { %2675 = vmatprep.subr.bf16.mxu0 %v4846_v3  ;;  %v6194_v3 = vld [vmem:[#allocation2 + $0x50] ss:$8 sps:$4 sm:$0xff]   ;;  %2303 = vmatprep.subr.bf16.mxu1 %v4924_v49 }
 0x7d1   :  { %2676 = vmatpush2.bf16.msra.mxu0 %v4844_v41  ;;  %v4922_v41 = vld [vmem:[#allocation12 + $0xa0] ss:$8 sps:$4 sm:$0xff]  }
 0x7d2   :  { %2677 = vmatprep.subr.bf16.mxu0 %v4849_v38  ;;  %v6196_v38 = vld [vmem:[#allocation2 + $0x64] ss:$8 sps:$4 sm:$0xff]   ;;  %2304 = vmatpush2.bf16.msra.mxu1 %v4922_v41 }
 0x7d5   :  { %2678 = vmatpush2.bf16.msra.mxu0 %v4847_v4  ;;  %v4927_v4 = vld [vmem:[#allocation12 + $0x94] ss:$8 sps:$4 sm:$0xff]  }
 0x7d6   :  { %2679 = vmatprep.subr.bf16.mxu0 %v4852_v24  ;;  %v4925_v24 = vld [vmem:[#allocation12 + $0x90] ss:$8 sps:$4 sm:$0xff]   ;;  %2305 = vmatprep.subr.bf16.mxu1 %v4927_v4 }
 0x7d7   :  { %2306 = vmatpush2.bf16.msra.mxu1 %v4925_v24 }
 0x7d9   :  { %2680 = vmatpush2.bf16.msra.mxu0 %v4850_v39  ;;  %v4930_v39 = vld [vmem:[#allocation12 + $0x84] ss:$8 sps:$4 sm:$0xff]  }
 0x7da   :  { %2681 = vmatprep.subr.bf16.mxu0 %v4855_v42  ;;  %v4928_v42 = vld [vmem:[#allocation12 + $0x80] ss:$8 sps:$4 sm:$0xff]   ;;  %2307 = vmatprep.subr.bf16.mxu1 %v4930_v39 }
 0x7db   :  { %2308 = vmatpush2.bf16.msra.mxu1 %v4928_v42 }
 0x7dc   :  { %3041 = vmatprep.subr.bf16.mxu1 %v4936_v14 }
 0x7dd   :  { %2682 = vmatpush2.bf16.msra.mxu0 %v4853_v44  ;;  %v6200_v44 = vld [vmem:[#allocation2 + $0x60] ss:$8 sps:$4 sm:$0xff]  }
 0x7de   :  { %2683 = vmatprep.subr.bf16.mxu0 %v4858_v45 }
 0x7e1   :  { %2684 = vmatpush2.bf16.msra.mxu0 %v4856_v17 }
 0x7e2   :  { %2685 = vmatprep.subr.bf16.mxu0 %v4861_v58 }
 0x7e5   :  { %2686 = vmatpush2.bf16.msra.mxu0 %v4859_v33 }
 0x7e6   :  { %2687 = vmatprep.subr.bf16.mxu0 %v4864_v51 }
 0x7e9   :  { %2688 = vmatpush2.bf16.msra.mxu0 %v4862_v53 }
 0x7ea   :  { %2689 = vmatprep.subr.bf16.mxu0 %v4867_v18 }
 0x7ed   :  { %2690 = vmatpush2.bf16.msra.mxu0 %v4865_v56 }
 0x7f0   :  { %2692 = vmatmul.mubr.bf16.vlgmr.msra.gmra.mxu0 %v6170_v13 }
 0x7f1   :  { %2701 = vmatprep.mubr.bf16.mxu0 %v6172_v34 }
 0x7f8   :  { %2702 = vmatmul.mubr.bf16.gmra.mxu0 %v6176_v11 }
 0x7f9   :  { %2711 = vmatprep.mubr.bf16.mxu0 %v6178_v20 }
 0x800   :  { %2712 = vmatmul.mubr.bf16.gmra.mxu0 %v6182_v59 }
 0x801   :  { %2721 = vmatprep.mubr.bf16.mxu0 %v6184_v62 }
 0x808   :  { %2722 = vmatmul.mubr.bf16.gmra.mxu0 %v6188_v2 }
 0x809   :  { %2731 = vmatprep.mubr.bf16.mxu0 %v6190_v16 }
 0x810   :  { %2732 = vmatmul.mubr.bf16.gmra.mxu0 %v6194_v3 }
 0x811   :  { %2741 = vmatprep.mubr.bf16.mxu0 %v6196_v38 }
 0x818   :  { %2742 = vmatmul.mubr.bf16.gmra.mxu0 %v6200_v44 }
 0x850   :  { %v1742_v45 = vpop.f32.mrf.mxu0  ;;  %v1785_v17 = vpop.f32.mrf.mxu1 }
 0x851   :  { %v1794_v46 = vadd.f32 %v1742_v45, %v5771_v19  ;;  %v1796_v32 = vadd.f32 %v1785_v17, %v5790_v25 }
 0x852   :  { %v1744_v5 = vpop.f32.mrf.mxu0  ;;  %v1787_v51 = vpop.f32.mrf.mxu1 }
 0x853   :  { %v4247_v58 = vmul.f32 -1.442695, %v1794_v46  ;;  %v1795_v47 = vadd.f32 %v1744_v5, %v5773_v22  ;;  %v1797_v19 = vadd.f32 %v1787_v51, %v5785_v26  ;;  %v4939_v51 = vld [vmem:[#allocation12 + $0x264] ss:$8 sps:$4 sm:$0xff]  }
 0x854   :  { %v1746_v33 = vpop.f32.mrf.mxu0  ;;  %v1789_v55 = vpop.f32.mrf.mxu1 }
 0x855   :  { %5265 = vpow2.f32 %v4247_v58  ;;  %v4249_v50 = vmul.f32 -1.442695, %v1795_v47  ;;  %v1798_v52 = vadd.f32 %v1746_v33, %v5777_v27  ;;  %v4251_v28 = vmul.f32 -1.442695, %v1797_v19  ;;  %v4934_v47 = vld [vmem:[#allocation12 + $0x270] ss:$8 sps:$4 sm:$0xff]  }
 0x856   :  { %v1748_v53 = vpop.f32.mrf.mxu0  ;;  %v1791_v57 = vpop.f32.mrf.mxu1  ;;  %v1800_v12 = vadd.f32 %v1789_v55, %v5794_v21  ;;  %v4931_v33 = vld [vmem:[#allocation2] ss:$8 sps:$4 sm:$0xff]   ;;  %v4948_v55 = vld [vmem:[#allocation12 + $0x234] ss:$8 sps:$4 sm:$0xff]   ;;  %v4951_v19 = vld [vmem:[#allocation12 + $0x224] ss:$8 sps:$4 sm:$0xff]  }
 0x857   :  { %5267 = vpow2.f32 %v4249_v50  ;;  %v4248_v54 = vmul.f32 -1.442695, %v1798_v52  ;;  %v1799_v18 = vadd.f32 %v1748_v53, %v5780_v31  ;;  %v1801_v22 = vadd.f32 %v1791_v57, %v5788_v29  ;;  %v4942_v52 = vld [vmem:[#allocation12 + $0x254] ss:$8 sps:$4 sm:$0xff]   ;;  %v4940_v53 = vld [vmem:[#allocation12 + $0x250] ss:$8 sps:$4 sm:$0xff]  }
 0x858   :  { %v4954_v57 = vld [vmem:[#allocation12 + $0x214] ss:$8 sps:$4 sm:$0xff]  }
 0x859   :  { %5269 = vpow2.f32 %v4248_v54  ;;  %v4250_v56 = vmul.f32 -1.442695, %v1799_v18  ;;  %v4252_v9 = vmul.f32 -1.442695, %v1801_v22  ;;  %v4945_v54 = vld [vmem:[#allocation12 + $0x244] ss:$8 sps:$4 sm:$0xff]  }
 0x85a   :  { %v4943_v18 = vld [vmem:[#allocation12 + $0x240] ss:$8 sps:$4 sm:$0xff]  }
 0x85b   :  { %5271 = vpow2.f32 %v4250_v56  ;;  %v4946_v56 = vld [vmem:[#allocation12 + $0x230] ss:$8 sps:$4 sm:$0xff]   ;;  %v4955_v22 = vld [vmem:[#allocation12 + $0x200] ss:$8 sps:$4 sm:$0xff]  }
 0x85c   :  { %5273 = vpow2.f32 %v4251_v28  ;;  %v4957_v28 = vld [vmem:[#allocation12 + $0x204] ss:$8 sps:$4 sm:$0xff]  }
 0x862   :  { %v5266_v30 = vpop.eup %5265 }
 0x863   :  { %v1808_v15 = vadd.f32 1.0, %v5266_v30  ;;  %v4960_v30 = vld [vmem:[#allocation12 + $0x2f4] ss:$8 sps:$4 sm:$0xff]  }
 0x864   :  { %v5268_v27 = vpop.eup %5267 }
 0x865   :  { %5275 = vrcp.f32 %v1808_v15  ;;  %v1820_v0 = vadd.f32 1.0, %v5268_v27  ;;  %v4963_v15 = vld [vmem:[#allocation12 + $0x2e4] ss:$8 sps:$4 sm:$0xff]   ;;  %v4961_v27 = vld [vmem:[#allocation12 + $0x2e0] ss:$8 sps:$4 sm:$0xff]  }
 0x866   :  { %v5270_v31 = vpop.eup %5269  ;;  %5277 = vtanh.f32 %v1796_v32  ;;  %v4958_v32 = vld [vmem:[#allocation12 + $0x2f0] ss:$8 sps:$4 sm:$0xff]  }
 0x867   :  { %5279 = vrcp.f32 %v1820_v0  ;;  %v1809_v8 = vadd.f32 1.0, %v5270_v31  ;;  %v4964_v0 = vld [vmem:[#allocation12 + $0x2d0] ss:$8 sps:$4 sm:$0xff]   ;;  %v4969_v31 = vld [vmem:[#allocation12 + $0x2c4] ss:$8 sps:$4 sm:$0xff]  }
 0x868   :  { %v5272_v26 = vpop.eup %5271  ;;  %5281 = vpow2.f32 %v4252_v9  ;;  %v4966_v9 = vld [vmem:[#allocation12 + $0x2d4] ss:$8 sps:$4 sm:$0xff]  }
 0x869   :  { %5283 = vrcp.f32 %v1809_v8  ;;  %v1821_v43 = vadd.f32 1.0, %v5272_v26  ;;  %v5274_v29 = vpop.eup %5273  ;;  %v4972_v8 = vld [vmem:[#allocation12 + $0x2b4] ss:$8 sps:$4 sm:$0xff]   ;;  %v4970_v26 = vld [vmem:[#allocation12 + $0x2b0] ss:$8 sps:$4 sm:$0xff]  }
 0x86a   :  { %5285 = vtanh.f32 %v1800_v12  ;;  %v1834_v61 = vadd.f32 1.0, %v5274_v29  ;;  %v4967_v12 = vld [vmem:[#allocation12 + $0x2c0] ss:$8 sps:$4 sm:$0xff]  }
 0x86b   :  { %5287 = vrcp.f32 %v1821_v43  ;;  %v4975_v43 = vld [vmem:[#allocation12 + $0x2a4] ss:$8 sps:$4 sm:$0xff]   ;;  %v4973_v29 = vld [vmem:[#allocation12 + $0x2a0] ss:$8 sps:$4 sm:$0xff]  }
 0x86c   :  { %5289 = vrcp.f32 %v1834_v61  ;;  %v4979_v61 = vld [vmem:[#allocation12 + $0x280] ss:$8 sps:$4 sm:$0xff]  }
 0x872   :  { %v5276_v25 = vpop.eup %5275 }
 0x873   :  { %v5278_v36 = vpop.eup %5277 }
 0x874   :  { %v5280_v60 = vpop.eup %5279  ;;  %v1842_v1 = vmul.f32 %v5278_v36, %v5276_v25  ;;  %v4978_v25 = vld [vmem:[#allocation12 + $0x294] ss:$8 sps:$4 sm:$0xff]   ;;  %v4976_v36 = vld [vmem:[#allocation12 + $0x290] ss:$8 sps:$4 sm:$0xff]  }
 0x875   :  { %v5282_v63 = vpop.eup %5281  ;;  %v1840_v37 = vmul.f32 %v5280_v60, %v6158_v40  ;;  %v4981_v60 = vld [vmem:[#allocation12 + $0x284] ss:$8 sps:$4 sm:$0xff]  }
 0x876   :  { %v5284_v23 = vpop.eup %5283  ;;  %v1835_v41 = vadd.f32 1.0, %v5282_v63  ;;  %v4985_v63 = vld [vmem:[#allocation13 + $0xf8] sm:$0xff]  }
 0x877   :  { %v5286_v48 = vpop.eup %5285  ;;  %v1844_v21 = vadd.f32 %v1842_v1, %v1840_v37  ;;  %4531 = vmatprep.subr.bf16.mxu0 %v4985_v63  ;;  %v4992_v37 = vld [vmem:[#allocation13 + $0xa0] sm:$0xff]  }
 0x878   :  { %v5288_v49 = vpop.eup %5287  ;;  %v1843_v4 = vmul.f32 %v5286_v48, %v5284_v23  ;;  %v4994_v23 = vld [vmem:[#allocation13 + $0x98] sm:$0xff]   ;;  %v4997_v48 = vld [vmem:[#allocation13 + $0x170] sm:$0xff]  }
 0x879   :  { %5291 = vtanh.f32 %v1844_v21  ;;  %v1841_v24 = vmul.f32 %v5288_v49, %v6162_v6  ;;  %v5290_v42 = vpop.eup %5289  ;;  %v4937_v6 = vld [vmem:[#allocation12 + $0x260] ss:$8 sps:$4 sm:$0xff]   ;;  %v4999_v21 = vld [vmem:[#allocation13 + $0x130] sm:$0xff]  }
 0x87a   :  { %5293 = vrcp.f32 %v1835_v41  ;;  %v4998_v49 = vld [vmem:[#allocation13 + $0xd0] sm:$0xff]   ;;  %v5001_v41 = vld [vmem:[#allocation13 + $0x168] sm:$0xff]  }
 0x87b   :  { %v1845_v39 = vadd.f32 %v1843_v4, %v1841_v24  ;;  %v5002_v4 = vld [vmem:[#allocation13 + $0x128] sm:$0xff]   ;;  %v5000_v24 = vld [vmem:[#allocation13 + $0x90] sm:$0xff]  }
 0x87d   :  { %5295 = vtanh.f32 %v1845_v39  ;;  %v5005_v39 = vld [vmem:[#allocation13 + $0x160] sm:$0xff]  }
 0x886   :  { %v5292_v14 = vpop.eup %5291 }
 0x887   :  { %v1848_v45 = vmul.f32 %v5292_v14, %v5290_v42  ;;  %v5294_v46 = vpop.eup %5293  ;;  %v5003_v42 = vld [vmem:[#allocation13 + $0xc8] sm:$0xff]   ;;  %v5006_v14 = vld [vmem:[#allocation13 + $0x120] sm:$0xff]  }
 0x889   :  { %v4505_v17 = vpack.c.bf16 %v1848_v45, %v1848_v45  ;;  %v5004_v45 = vld [vmem:[#allocation13 + $0x88] sm:$0xff]  }
 0x88a   :  { %v5296_v5 = vpop.eup %5295 }
 0x88b   :  { %1858 = vst [vmem:[#allocation2 + $0x70] sm:$0xf] %v4505_v17  ;;  %1860 = vst [vmem:[#allocation2 + $0x4] sm:$0xf] %v4505_v17  ;;  %v1849_v40 = vmul.f32 %v5296_v5, %v5294_v46  ;;  %v5007_v46 = vld [vmem:[#allocation13 + $0x158] sm:$0xff]   ;;  %v5008_v5 = vld [vmem:[#allocation13 + $0xc0] sm:$0xff]  }
 0x88c   :  { %v5009_v17 = vld [vmem:[#allocation13 + $0x118] sm:$0xff]  }
 0x88d   :  { %v4506_v58 = vpack.c.bf16 %v1849_v40, %v1849_v40  ;;  %v5011_v40 = vld [vmem:[#allocation13 + $0x150] sm:$0xff]  }
 0x88f   :  { %1859 = vst [vmem:[#allocation2 + $0x78] sm:$0xf] %v4506_v58  ;;  %1861 = vst [vmem:[#allocation2 + $0xc] sm:$0xf] %v4506_v58  ;;  %v5010_v58 = vld [vmem:[#allocation13 + $0x80] sm:$0xff]  }
 0x896   :  { %v4933_v50 = vld [vmem:[#allocation2 + $0x4] ss:$8 sps:$4 sm:$0xff]   ;;  %v4984_v1 = vld [vmem:[#allocation2 + $0x70] ss:$8 sps:$4 sm:$0xff]  }
 0x897   :  { %2309 = vmatprep.mubr.bf16.mxu1 %v4933_v50  ;;  %v5015_v50 = vld [vmem:[#allocation13 + $0x148] sm:$0xff]  }
 0x898   :  { %2310 = vmatmul.mubr.bf16.vlgmr.msra.gmra.mxu1 %v4931_v33  ;;  %v5013_v33 = vld [vmem:[#allocation13 + $0x78] sm:$0xff]  }
 0x899   :  { %3042 = vmatpush1.bf16.msra.mxu1 %v4934_v47  ;;  %2319 = vmatprep.mubr.bf16.mxu1 %v6166_v35  ;;  %v4949_v35 = vld [vmem:[#allocation12 + $0x220] ss:$8 sps:$4 sm:$0xff]   ;;  %v5012_v47 = vld [vmem:[#allocation13 + $0x110] sm:$0xff]  }
 0x89a   :  { %3043 = vmatprep.subr.bf16.mxu1 %v4939_v51  ;;  %v5016_v51 = vld [vmem:[#allocation13 + $0x108] sm:$0xff]  }
 0x89d   :  { %3044 = vmatpush1.bf16.msra.mxu1 %v4937_v6  ;;  %v5019_v6 = vld [vmem:[#allocation13 + $0x140] sm:$0xff]  }
 0x89e   :  { %3045 = vmatprep.subr.bf16.mxu1 %v4942_v52  ;;  %v5020_v52 = vld [vmem:[#allocation13 + $0x100] sm:$0xff]  }
 0x8a0   :  { %2320 = vmatmul.mubr.bf16.gmra.mxu1 %v6170_v13  ;;  %v4952_v13 = vld [vmem:[#allocation12 + $0x210] ss:$8 sps:$4 sm:$0xff]  }
 0x8a1   :  { %3046 = vmatpush1.bf16.msra.mxu1 %v4940_v53  ;;  %2329 = vmatprep.mubr.bf16.mxu1 %v6172_v34  ;;  %v2004_v53 = vpop.f32.mrf.mxu0 }
 0x8a2   :  { %3047 = vmatprep.subr.bf16.mxu1 %v4945_v54 }
 0x8a5   :  { %3048 = vmatpush1.bf16.msra.mxu1 %v4943_v18 }
 0x8a6   :  { %3049 = vmatprep.subr.bf16.mxu1 %v4948_v55  ;;  %v2006_v55 = vpop.f32.mrf.mxu0 }
 0x8a8   :  { %2330 = vmatmul.mubr.bf16.gmra.mxu1 %v6176_v11 }
 0x8a9   :  { %3050 = vmatpush1.bf16.msra.mxu1 %v4946_v56  ;;  %2339 = vmatprep.mubr.bf16.mxu1 %v6178_v20 }
 0x8aa   :  { %3051 = vmatprep.subr.bf16.mxu1 %v4951_v19 }
 0x8ad   :  { %3052 = vmatpush1.bf16.msra.mxu1 %v4949_v35  ;;  %v2008_v35 = vpop.f32.mrf.mxu0 }
 0x8ae   :  { %3053 = vmatprep.subr.bf16.mxu1 %v4954_v57 }
 0x8b0   :  { %2340 = vmatmul.mubr.bf16.gmra.mxu1 %v6182_v59 }
 0x8b1   :  { %3054 = vmatpush1.bf16.msra.mxu1 %v4952_v13  ;;  %2349 = vmatprep.mubr.bf16.mxu1 %v6184_v62 }
 0x8b2   :  { %3055 = vmatprep.subr.bf16.mxu1 %v4957_v28  ;;  %v2010_v28 = vpop.f32.mrf.mxu0 }
 0x8b5   :  { %3056 = vmatpush1.bf16.msra.mxu1 %v4955_v22 }
 0x8b6   :  { %3057 = vmatprep.subr.bf16.mxu1 %v4960_v30 }
 0x8b8   :  { %2350 = vmatmul.mubr.bf16.gmra.mxu1 %v6188_v2 }
 0x8b9   :  { %3058 = vmatpush2.bf16.msra.mxu1 %v4958_v32  ;;  %2359 = vmatprep.mubr.bf16.mxu1 %v6190_v16  ;;  %v2693_v32 = vpop.f32.mrf.mxu0 }
 0x8ba   :  { %3059 = vmatprep.subr.bf16.mxu1 %v4963_v15 }
 0x8bd   :  { %3060 = vmatpush2.bf16.msra.mxu1 %v4961_v27 }
 0x8be   :  { %3061 = vmatprep.subr.bf16.mxu1 %v4966_v9  ;;  %v2695_v9 = vpop.f32.mrf.mxu0 }
 0x8c0   :  { %2360 = vmatmul.mubr.bf16.gmra.mxu1 %v6194_v3 }
 0x8c1   :  { %3062 = vmatpush2.bf16.msra.mxu1 %v4964_v0  ;;  %3073 = vmatprep.mubr.bf16.mxu1 %v6172_v34  ;;  %v4982_v34 = vld [vmem:[#allocation2 + $0x74] ss:$8 sps:$4 sm:$0xff]  }
 0x8c2   :  { %3063 = vmatprep.subr.bf16.mxu1 %v4969_v31 }
 0x8c5   :  { %3064 = vmatpush2.bf16.msra.mxu1 %v4967_v12  ;;  %v2697_v12 = vpop.f32.mrf.mxu0 }
 0x8c6   :  { %3065 = vmatprep.subr.bf16.mxu1 %v4972_v8 }
 0x8c9   :  { %3066 = vmatpush2.bf16.msra.mxu1 %v4970_v26 }
 0x8ca   :  { %3067 = vmatprep.subr.bf16.mxu1 %v4975_v43  ;;  %v2699_v43 = vpop.f32.mrf.mxu0 }
 0x8cd   :  { %3068 = vmatpush2.bf16.msra.mxu1 %v4973_v29 }
 0x8ce   :  { %3069 = vmatprep.subr.bf16.mxu1 %v4978_v25 }
 0x8d1   :  { %3070 = vmatpush2.bf16.msra.mxu1 %v4976_v36  ;;  %v2703_v36 = vpop.f32.mrf.mxu0 }
 0x8d2   :  { %3071 = vmatprep.subr.bf16.mxu1 %v4981_v60 }
 0x8d5   :  { %3072 = vmatpush2.bf16.msra.mxu1 %v4979_v61  ;;  %v2705_v61 = vpop.f32.mrf.mxu0 }
 0x8d7   :  { %v2707_v63 = vpop.f32.mrf.mxu0 }
 0x8d8   :  { %3074 = vmatmul.mubr.bf16.vlgmr.msra.gmra.mxu1 %v6176_v11  ;;  %v4986_v11 = vld [vmem:[#allocation13 + $0xb8] sm:$0xff]  }
 0x8d9   :  { %3083 = vmatprep.mubr.bf16.mxu1 %v6178_v20  ;;  %4532 = vmatpush3.bf16.msra.mxu0 %v4986_v11  ;;  %v4987_v20 = vld [vmem:[#allocation13 + $0xf0] sm:$0xff]  }
 0x8da   :  { %4533 = vmatprep.subr.bf16.mxu0 %v4987_v20 }
 0x8e0   :  { %3084 = vmatmul.mubr.bf16.gmra.mxu1 %v6182_v59  ;;  %v4988_v59 = vld [vmem:[#allocation13 + $0xb0] sm:$0xff]  }
 0x8e1   :  { %3093 = vmatprep.mubr.bf16.mxu1 %v6184_v62  ;;  %4534 = vmatpush3.bf16.msra.mxu0 %v4988_v59  ;;  %v4989_v62 = vld [vmem:[#allocation13 + $0xe8] sm:$0xff]  }
 0x8e2   :  { %4535 = vmatprep.subr.bf16.mxu0 %v4989_v62  ;;  %v1878_v62 = vld [vmem:[%s6407_s5] sm:$0x3] }
 0x8e8   :  { %3094 = vmatmul.mubr.bf16.gmra.mxu1 %v6188_v2  ;;  %v4990_v2 = vld [vmem:[#allocation13 + $0xa8] sm:$0xff]  }
 0x8e9   :  { %3103 = vmatprep.mubr.bf16.mxu1 %v6190_v16  ;;  %v4991_v16 = vld [vmem:[#allocation13 + $0xe0] sm:$0xff]   ;;  %4536 = vmatpush3.bf16.msra.mxu0 %v4990_v2 }
 0x8ea   :  { %4537 = vmatprep.subr.bf16.mxu0 %v4991_v16 }
 0x8ed   :  { %4538 = vmatpush3.bf16.msra.mxu0 %v4992_v37 }
 0x8f0   :  { %3104 = vmatmul.mubr.bf16.gmra.mxu1 %v6194_v3  ;;  %v4995_v3 = vld [vmem:[#allocation13 + $0x178] sm:$0xff]  }
 0x8f1   :  { %3113 = vmatprep.mubr.bf16.mxu1 %v6196_v38  ;;  %v4996_v38 = vld [vmem:[#allocation13 + $0x138] sm:$0xff]   ;;  %4611 = vmatprep.subr.bf16.mxu1 %v4995_v3  ;;  %v1883_v3 = vrot.slane %v1878_v62, %v174_v10 }
 0x8f2   :  { %4612 = vmatpush3.bf16.msra.mxu1 %v4996_v38 }
 0x8f3   :  { %4613 = vmatprep.subr.bf16.mxu1 %v4997_v48 }
 0x8f6   :  { %4614 = vmatpush3.bf16.msra.mxu1 %v4999_v21 }
 0x8f7   :  { %4615 = vmatprep.subr.bf16.mxu1 %v5001_v41 }
 0x8f8   :  { %3114 = vmatmul.mubr.bf16.gmra.mxu1 %v6200_v44  ;;  %v4993_v44 = vld [vmem:[#allocation13 + $0xd8] sm:$0xff]  }
 0x8f9   :  { %3123 = vmatprep.mubr.bf16.mxu1 %v4982_v34  ;;  %4539 = vmatprep.subr.bf16.mxu0 %v4993_v44  ;;  %v6274_v44 = vadd.f32 %v2004_v53, %v1883_v3 }
 0x8fa   :  { %4540 = vmatpush3.bf16.msra.mxu0 %v4994_v23  ;;  %4616 = vmatpush3.bf16.msra.mxu1 %v5002_v4  ;;  %v6415_v23 = vsub.s32 1, %v5760_v7  ;;  %v6284_v4 = vadd.f32 %v2008_v35, %v1883_v3 }
 0x8fb   :  { %4541 = vmatprep.subr.bf16.mxu0 %v4998_v49  ;;  %4617 = vmatprep.subr.bf16.mxu1 %v5005_v39 }
 0x8fc   :  { %v1887_v48 = vrot.slane %v1878_v62, %v6415_v23 }
 0x8fe   :  { %4542 = vmatpush3.bf16.msra.mxu0 %v5000_v24  ;;  %4618 = vmatpush3.bf16.msra.mxu1 %v5006_v14  ;;  %v6282_v41 = vadd.f32 %v2006_v55, %v1887_v48  ;;  %v6289_v39 = vadd.f32 %v2010_v28, %v1887_v48 }
 0x8ff   :  { %4543 = vmatprep.subr.bf16.mxu0 %v5003_v42  ;;  %4619 = vmatprep.subr.bf16.mxu1 %v5007_v46 }
 0x900   :  { %3124 = vmatmul.mubr.bf16.gmra.mxu1 %v4984_v1  ;;  %v2709_v1 = vpop.f32.mrf.mxu0 }
 0x902   :  { %4544 = vmatpush3.bf16.msra.mxu0 %v5004_v45  ;;  %4620 = vmatpush3.bf16.msra.mxu1 %v5009_v17  ;;  %v6259_v59 = vpop.f32.mrf.mxu0 }
 0x903   :  { %4545 = vmatprep.subr.bf16.mxu0 %v5008_v5  ;;  %4621 = vmatprep.subr.bf16.mxu1 %v5011_v40 }
 0x904   :  { %v6266_v16 = vpop.f32.mrf.mxu0 }
 0x906   :  { %4546 = vmatpush3.bf16.msra.mxu0 %v5010_v58  ;;  %4622 = vmatpush3.bf16.msra.mxu1 %v5012_v47  ;;  %v6272_v37 = vpop.f32.mrf.mxu0 }
 0x907   :  { %4571 = vmatprep.subr.bf16.mxu0 %v5013_v33  ;;  %4623 = vmatprep.subr.bf16.mxu1 %v5015_v50 }
 0x908   :  { %v6280_v49 = vpop.f32.mrf.mxu0 }
 0x90a   :  { %4624 = vmatpush3.bf16.msra.mxu1 %v5016_v51  ;;  %v6293_v7 = vpop.f32.mrf.mxu0 }
 0x90b   :  { %4625 = vmatprep.subr.bf16.mxu1 %v5019_v6 }
 0x90c   :  { %v6296_v33 = vpop.f32.mrf.mxu0 }
 0x90e   :  { %4626 = vmatpush3.bf16.msra.mxu1 %v5020_v52 }
 0x958   :  { %v2311_v54 = vpop.f32.mrf.mxu1 }
 0x959   :  { %v2370_v24 = vadd.f32 %v2311_v54, %v6274_v44 }
 0x95a   :  { %v2313_v18 = vpop.f32.mrf.mxu1 }
 0x95b   :  { %v2371_v42 = vadd.f32 %v2313_v18, %v6282_v41  ;;  %v2752_v17 = vadd.f32 %v2693_v32, %v2370_v24 }
 0x95c   :  { %v2315_v56 = vpop.f32.mrf.mxu1 }
 0x95d   :  { %v2372_v14 = vadd.f32 %v2315_v56, %v6284_v4  ;;  %v2753_v58 = vadd.f32 %v2695_v9, %v2371_v42 }
 0x95e   :  { %v2317_v19 = vpop.f32.mrf.mxu1 }
 0x95f   :  { %v2373_v46 = vadd.f32 %v2317_v19, %v6289_v39  ;;  %v2754_v47 = vadd.f32 %v2697_v12, %v2372_v14  ;;  %v6300_v19 = vpop.f32.mrf.mxu0 }
 0x960   :  { %v6233_v57 = vpop.f32.mrf.mxu1 }
 0x961   :  { %v2755_v52 = vadd.f32 %v2699_v43, %v2373_v46  ;;  %v2374_v28 = vadd.f32 %v6233_v57, %v6274_v44  ;;  %v6309_v48 = vpop.f32.mrf.mxu0 }
 0x962   :  { %v2323_v13 = vpop.f32.mrf.mxu1 }
 0x963   :  { %v2375_v53 = vadd.f32 %v2323_v13, %v6282_v41  ;;  %v2756_v24 = vadd.f32 %v2703_v36, %v2374_v28 }
 0x964   :  { %v2325_v22 = vpop.f32.mrf.mxu1 }
 0x965   :  { %v2376_v18 = vadd.f32 %v2325_v22, %v6284_v4  ;;  %v2757_v23 = vadd.f32 %v2705_v61, %v2375_v53  ;;  %v5014_v53 = vld [vmem:[#allocation13 + $0x38] sm:$0xff]  }
 0x966   :  { %v2327_v30 = vpop.f32.mrf.mxu1 }
 0x967   :  { %v2377_v9 = vadd.f32 %v2327_v30, %v6289_v39  ;;  %v2758_v22 = vadd.f32 %v2707_v63, %v2376_v18 }
 0x968   :  { %v6235_v15 = vpop.f32.mrf.mxu1 }
 0x969   :  { %v2759_v46 = vadd.f32 %v2709_v1, %v2377_v9  ;;  %v2378_v61 = vadd.f32 %v6235_v15, %v6274_v44 }
 0x96a   :  { %v6237_v27 = vpop.f32.mrf.mxu1 }
 0x96b   :  { %v2379_v30 = vadd.f32 %v6237_v27, %v6282_v41  ;;  %v2760_v15 = vadd.f32 %v6259_v59, %v2378_v61  ;;  %v5018_v59 = vld [vmem:[#allocation13 + $0x30] sm:$0xff]  }
 0x96c   :  { %v6239_v0 = vpop.f32.mrf.mxu1 }
 0x96d   :  { %v2761_v27 = vadd.f32 %v6266_v16, %v2379_v30 }
 0x96e   :  { %v6241_v31 = vpop.f32.mrf.mxu1 }
 0x970   :  { %v6243_v8 = vpop.f32.mrf.mxu1 }
 0x972   :  { %v6245_v26 = vpop.f32.mrf.mxu1 }
 0x973   :  { %v2383_v16 = vadd.f32 %v6245_v26, %v6282_v41 }
 0x974   :  { %v6247_v29 = vpop.f32.mrf.mxu1 }
 0x976   :  { %v6249_v25 = vpop.f32.mrf.mxu1 }
 0x978   :  { %v6251_v60 = vpop.f32.mrf.mxu1 }
 0x97a   :  { %v6253_v34 = vpop.f32.mrf.mxu1 }
 0x97c   :  { %v6255_v11 = vpop.f32.mrf.mxu1 }
 0x97e   :  { %v6257_v20 = vpop.f32.mrf.mxu1 }
 0x980   :  { %v6264_v2 = vpop.f32.mrf.mxu1 }
 0x982   :  { %v6270_v38 = vpop.f32.mrf.mxu1 }
 0x984   :  { %v6278_v21 = vpop.f32.mrf.mxu1 }
 0x986   :  { %v6287_v10 = vpop.f32.mrf.mxu1 }
 0x998   :  { %v3075_v45 = vpop.f32.mrf.mxu1 }
 0x999   :  { %v3134_v40 = vadd.f32 %v3075_v45, %v2752_v17 }
 0x99a   :  { %v3077_v5 = vpop.f32.mrf.mxu1 }
 0x99b   :  { %v3135_v51 = vadd.f32 %v3077_v5, %v2753_v58  ;;  %v3158_v55 = vmax.f32 %v3134_v40, 0.0  ;;  %v2380_v5 = vadd.f32 %v6239_v0, %v6284_v4  ;;  %v6315_v58 = vpop.f32.mrf.mxu0 }
 0x99c   :  { %v3079_v50 = vpop.f32.mrf.mxu1 }
 0x99d   :  { %v3136_v6 = vadd.f32 %v3079_v50, %v2754_v47  ;;  %v3159_v12 = vmax.f32 %v3135_v51, 0.0  ;;  %v2381_v47 = vadd.f32 %v6241_v31, %v6289_v39  ;;  %v2762_v0 = vadd.f32 %v6272_v37, %v2380_v5 }
 0x99e   :  { %v3081_v54 = vpop.f32.mrf.mxu1  ;;  %v2384_v37 = vadd.f32 %v6247_v29, %v6284_v4  ;;  %v2765_v29 = vadd.f32 %v6296_v33, %v2383_v16 }
 0x99f   :  { %v3160_v56 = vmax.f32 %v3136_v6, 0.0  ;;  %v3137_v35 = vadd.f32 %v3081_v54, %v2755_v52  ;;  %v6325_v54 = vpop.f32.mrf.mxu0  ;;  %v2763_v28 = vadd.f32 %v6280_v49, %v2381_v47  ;;  %v5021_v49 = vld [vmem:[#allocation13 + $0x68] sm:$0xff]  }
 0x9a0   :  { %v3085_v32 = vpop.f32.mrf.mxu1 }
 0x9a1   :  { %v6305_v62 = vpack.c.bf16 %v3160_v56, %v3158_v55  ;;  %v3161_v43 = vmax.f32 %v3137_v35, 0.0  ;;  %v3138_v57 = vadd.f32 %v3085_v32, %v2756_v24  ;;  %v5017_v56 = vld [vmem:[#allocation13 + $0x70] sm:$0xff]   ;;  %v2385_v24 = vadd.f32 %v6249_v25, %v6289_v39  ;;  %v5023_v25 = vld [vmem:[#allocation13 + $0x60] sm:$0xff]  }
 0x9a2   :  { %v3087_v3 = vpop.f32.mrf.mxu1 }
 0x9a3   :  { %v6307_v13 = vpack.c.bf16 %v3161_v43, %v3159_v12  ;;  %v3139_v14 = vadd.f32 %v3087_v3, %v2757_v23  ;;  %v3162_v51 = vmax.f32 %v3138_v57, 0.0  ;;  %v2737_v43 = vpop.f32.mrf.mxu0  ;;  %v2382_v3 = vadd.f32 %v6243_v8, %v6274_v44 }
 0x9a4   :  { %v3089_v42 = vpop.f32.mrf.mxu1  ;;  %v2766_v57 = vadd.f32 %v6300_v19, %v2384_v37  ;;  %v2767_v33 = vadd.f32 %v6309_v48, %v2385_v24  ;;  %v2388_v19 = vadd.f32 %v6255_v11, %v6284_v4  ;;  %v5027_v37 = vld [vmem:[#allocation13 + $0x50] sm:$0xff]   ;;  %v2390_v24 = vadd.f32 %v6264_v2, %v6274_v44 }
 0x9a5   :  { %v3140_v45 = vadd.f32 %v3089_v42, %v2758_v22  ;;  %v3163_v1 = vmax.f32 %v3139_v14, 0.0  ;;  %v2739_v8 = vpop.f32.mrf.mxu0  ;;  %v2764_v5 = vadd.f32 %v6293_v7, %v2382_v3  ;;  %v2387_v7 = vadd.f32 %v6253_v34, %v6282_v41 }
 0x9a6   :  { %v3091_v17 = vpop.f32.mrf.mxu1 }
 0x9a7   :  { %v3141_v40 = vadd.f32 %v3091_v17, %v2759_v46  ;;  %v3164_v63 = vmax.f32 %v3140_v45, 0.0  ;;  %v5022_v17 = vld [vmem:[#allocation13 + $0x28] sm:$0xff]   ;;  %v2769_v11 = vadd.f32 %v6325_v54, %v2387_v7 }
 0x9a8   :  { %v3095_v36 = vpop.f32.mrf.mxu1 }
 0x9a9   :  { %v3165_v50 = vmax.f32 %v3141_v40, 0.0  ;;  %v6327_v18 = vpack.c.bf16 %v3164_v63, %v3162_v51  ;;  %v3142_v32 = vadd.f32 %v3095_v36, %v2760_v15  ;;  %v2743_v51 = vpop.f32.mrf.mxu0 }
 0x9aa   :  { %v3097_v6 = vpop.f32.mrf.mxu1 }
 0x9ab   :  { %v6321_v52 = vpack.c.bf16 %v3165_v50, %v3163_v1  ;;  %v3143_v31 = vadd.f32 %v3097_v6, %v2761_v27  ;;  %v3166_v26 = vmax.f32 %v3142_v32, 0.0  ;;  %v5024_v50 = vld [vmem:[#allocation13 + $0x20] sm:$0xff]   ;;  %v2386_v6 = vadd.f32 %v6251_v60, %v6274_v44  ;;  %v2745_v32 = vpop.f32.mrf.mxu0 }
 0x9ac   :  { %v3099_v55 = vpop.f32.mrf.mxu1  ;;  %v5031_v44 = vld [vmem:[#allocation13 + $0x40] sm:$0xff]  }
 0x9ad   :  { %v3144_v35 = vadd.f32 %v3099_v55, %v2762_v0  ;;  %3509 = vmatprep.mubr.bf16.mxu0 %v6321_v52  ;;  %v3167_v42 = vmax.f32 %v3143_v31, 0.0  ;;  %v5025_v0 = vld [vmem:[#allocation13 + $0x58] sm:$0xff]  }
 0x9ae   :  { %v3101_v9 = vpop.f32.mrf.mxu1  ;;  %3510 = vmatmul.mubr.bf16.vlgmr.msra.gmra.mxu0 %v6327_v18 }
 0x9af   :  { %v3145_v12 = vadd.f32 %v3101_v9, %v2763_v28  ;;  %4572 = vmatpush3.bf16.msra.mxu0 %v5014_v53  ;;  %v3168_v23 = vmax.f32 %v3144_v35, 0.0  ;;  %v2389_v53 = vadd.f32 %v6257_v20, %v6289_v39  ;;  %v2770_v35 = vadd.f32 %v2737_v43, %v2388_v19  ;;  %v5026_v28 = vld [vmem:[#allocation13 + $0x18] sm:$0xff]  }
 0x9b0   :  { %v3105_v22 = vpop.f32.mrf.mxu1  ;;  %4573 = vmatprep.subr.bf16.mxu0 %v5017_v56  ;;  %v2768_v9 = vadd.f32 %v6315_v58, %v2386_v6  ;;  %v2391_v43 = vadd.f32 %v6270_v38, %v6282_v41  ;;  %v2392_v58 = vadd.f32 %v6278_v21, %v6284_v4 }
 0x9b1   :  { %v3169_v14 = vmax.f32 %v3145_v12, 0.0  ;;  %v6345_v30 = vpack.c.bf16 %v3168_v23, %v3166_v26  ;;  %v3146_v36 = vadd.f32 %v3105_v22, %v2764_v5  ;;  %v5028_v22 = vld [vmem:[#allocation13 + $0x10] sm:$0xff]   ;;  %v5029_v26 = vld [vmem:[#allocation13 + $0x48] sm:$0xff]  }
 0x9b2   :  { %v3107_v45 = vpop.f32.mrf.mxu1  ;;  %v2773_v21 = vadd.f32 %v2745_v32, %v2391_v43 }
 0x9b3   :  { %v6341_v46 = vpack.c.bf16 %v3169_v14, %v3167_v42  ;;  %4574 = vmatpush3.bf16.msra.mxu0 %v5018_v59  ;;  %v3147_v61 = vadd.f32 %v3107_v45, %v2765_v29  ;;  %v3170_v34 = vmax.f32 %v3146_v36, 0.0  ;;  %v2771_v59 = vadd.f32 %v2739_v8, %v2389_v53  ;;  %v5030_v8 = vld [vmem:[#allocation13 + $0x8] sm:$0xff]  }
 0x9b4   :  { %v3109_v40 = vpop.f32.mrf.mxu1  ;;  %4575 = vmatprep.subr.bf16.mxu0 %v5021_v49  ;;  %v2747_v49 = vpop.f32.mrf.mxu0  ;;  %v2393_v45 = vadd.f32 %v6287_v10, %v6289_v39 }
 0x9b5   :  { %v3148_v63 = vadd.f32 %v3109_v40, %v2766_v57  ;;  %3517 = vmatprep.mubr.bf16.mxu0 %v6341_v46  ;;  %3922 = vmatprep.mubr.bf16.mxu1 %v6341_v46  ;;  %v3171_v15 = vmax.f32 %v3147_v61, 0.0  ;;  %v2774_v4 = vadd.f32 %v2747_v49, %v2392_v58 }
 0x9b6   :  { %v3111_v47 = vpop.f32.mrf.mxu1  ;;  %3518 = vmatmul.mubr.bf16.gmra.mxu0 %v6345_v30  ;;  %3923 = vmatmul.mubr.bf16.vlgmr.msra.gmra.mxu1 %v6345_v30  ;;  %v2749_v5 = vpop.f32.mrf.mxu0 }
 0x9b7   :  { %v3149_v1 = vadd.f32 %v3111_v47, %v2767_v33  ;;  %4576 = vmatpush3.bf16.msra.mxu0 %v5022_v17  ;;  %v3172_v48 = vmax.f32 %v3148_v63, 0.0  ;;  %v2775_v10 = vadd.f32 %v2749_v5, %v2393_v45  ;;  %v5032_v47 = vld [vmem:[#allocation13] sm:$0xff]  }
 0x9b8   :  { %v3115_v27 = vpop.f32.mrf.mxu1  ;;  %4577 = vmatprep.subr.bf16.mxu0 %v5023_v25  ;;  %v2772_v25 = vadd.f32 %v2743_v51, %v2390_v24 }
 0x9b9   :  { %v3173_v55 = vmax.f32 %v3149_v1, 0.0  ;;  %v6364_v60 = vpack.c.bf16 %v3172_v48, %v3170_v34  ;;  %v3150_v3 = vadd.f32 %v3115_v27, %v2768_v9  ;;  %v5513_v48 = vmov 0.0   ;;  %v5034_v27 = vld [vmem:[#allocation15 + $0x30] sm:$0xff]  }
 0x9ba   :  { %v3117_v56 = vpop.f32.mrf.mxu1 }
 0x9bb   :  { %v6361_v31 = vpack.c.bf16 %v3173_v55, %v3171_v15  ;;  %4578 = vmatpush3.bf16.msra.mxu0 %v5024_v50  ;;  %v3151_v20 = vadd.f32 %v3117_v56, %v2769_v11  ;;  %v3174_v38 = vmax.f32 %v3150_v3, 0.0 }
 0x9bc   :  { %v3119_v16 = vpop.f32.mrf.mxu1  ;;  %4579 = vmatprep.subr.bf16.mxu0 %v5025_v0  ;;  %v5040_v0 = vld [vmem:[#allocation15] sm:$0xff]  }
 0x9bd   :  { %v3152_v12 = vadd.f32 %v3119_v16, %v2770_v35  ;;  %3525 = vmatprep.mubr.bf16.mxu0 %v6361_v31  ;;  %3930 = vmatprep.mubr.bf16.mxu1 %v6361_v31  ;;  %v3175_v29 = vmax.f32 %v3151_v20, 0.0 }
 0x9be   :  { %v3121_v54 = vpop.f32.mrf.mxu1  ;;  %3526 = vmatmul.mubr.bf16.gmra.mxu0 %v6364_v60  ;;  %3931 = vmatmul.mubr.bf16.gmra.mxu1 %v6364_v60 }
 0x9bf   :  { %v3153_v23 = vadd.f32 %v3121_v54, %v2771_v59  ;;  %4580 = vmatpush3.bf16.msra.mxu0 %v5026_v28  ;;  %v3176_v42 = vmax.f32 %v3152_v12, 0.0 }
 0x9c0   :  { %v3125_v14 = vpop.f32.mrf.mxu1  ;;  %4581 = vmatprep.subr.bf16.mxu0 %v5027_v37 }
 0x9c1   :  { %v3177_v57 = vmax.f32 %v3153_v23, 0.0  ;;  %v4525_v40 = vpack.c.bf16 %v3176_v42, %v3174_v38  ;;  %v3154_v39 = vadd.f32 %v3125_v14, %v2772_v25 }
 0x9c2   :  { %v3127_v41 = vpop.f32.mrf.mxu1 }
 0x9c3   :  { %v4526_v17 = vpack.c.bf16 %v3177_v57, %v3175_v29  ;;  %4582 = vmatpush3.bf16.msra.mxu0 %v5028_v22  ;;  %v3155_v61 = vadd.f32 %v3127_v41, %v2773_v21  ;;  %v3178_v50 = vmax.f32 %v3154_v39, 0.0 }
 0x9c4   :  { %v3129_v2 = vpop.f32.mrf.mxu1  ;;  %4583 = vmatprep.subr.bf16.mxu0 %v5029_v26 }
 0x9c5   :  { %v3156_v63 = vadd.f32 %v3129_v2, %v2774_v4  ;;  %3533 = vmatprep.mubr.bf16.mxu0 %v4526_v17  ;;  %3938 = vmatprep.mubr.bf16.mxu1 %v4526_v17  ;;  %v3179_v19 = vmax.f32 %v3155_v61, 0.0 }
 0x9c6   :  { %v3131_v33 = vpop.f32.mrf.mxu1  ;;  %3534 = vmatmul.mubr.bf16.gmra.mxu0 %v4525_v40  ;;  %3939 = vmatmul.mubr.bf16.gmra.mxu1 %v4525_v40 }
 0x9c7   :  { %v3157_v36 = vadd.f32 %v3131_v33, %v2775_v10  ;;  %4584 = vmatpush3.bf16.msra.mxu0 %v5030_v8  ;;  %3680 = vmatprep.mubr.bf16.mxu0 %v6307_v13  ;;  %v3180_v7 = vmax.f32 %v3156_v63, 0.0  ;;  %v5033_v13 = vld [vmem:[#allocation15 + $0x38] sm:$0xff]  }
 0x9c8   :  { %4585 = vmatprep.subr.bf16.mxu0 %v5031_v44 }
 0x9c9   :  { %v3181_v1 = vmax.f32 %v3157_v36, 0.0  ;;  %v4529_v6 = vpack.c.bf16 %v3180_v7, %v3178_v50 }
 0x9cb   :  { %v4530_v51 = vpack.c.bf16 %v3181_v1, %v3179_v19  ;;  %4586 = vmatpush3.bf16.msra.mxu0 %v5032_v47 }
 0x9cc   :  { %4660 = vmatprep.subr.bf16.mxu0 %v5513_v48 }
 0x9cd   :  { %3946 = vmatprep.mubr.bf16.mxu1 %v4530_v51 }
 0x9ce   :  { %3681 = vmatmul.mubr.bf16.vlgmr.msra.gmra.mxu0 %v6305_v62  ;;  %3947 = vmatmul.mubr.bf16.gmra.mxu1 %v4529_v6  ;;  %v5035_v62 = vld [vmem:[#allocation15 + $0x28] sm:$0xff]  }
 0x9cf   :  { %3688 = vmatprep.mubr.bf16.mxu0 %v6321_v52  ;;  %4661 = vmatpush3.bf16.msra.mxu0 %v5033_v13  ;;  %v5036_v52 = vld [vmem:[#allocation15 + $0x20] sm:$0xff]  }
 0x9d0   :  { %4662 = vmatprep.subr.bf16.mxu0 %v5513_v48 }
 0x9d3   :  { %4663 = vmatpush3.bf16.msra.mxu0 %v5034_v27 }
 0x9d4   :  { %4664 = vmatprep.subr.bf16.mxu0 %v5513_v48 }
 0x9d6   :  { %3689 = vmatmul.mubr.bf16.gmra.mxu0 %v6327_v18  ;;  %v5037_v18 = vld [vmem:[#allocation15 + $0x18] sm:$0xff]  }
 0x9d7   :  { %3696 = vmatprep.mubr.bf16.mxu0 %v6341_v46  ;;  %4665 = vmatpush3.bf16.msra.mxu0 %v5035_v62  ;;  %v5038_v46 = vld [vmem:[#allocation15 + $0x10] sm:$0xff]  }
 0x9d8   :  { %4666 = vmatprep.subr.bf16.mxu0 %v5513_v48 }
 0x9db   :  { %4667 = vmatpush3.bf16.msra.mxu0 %v5036_v52 }
 0x9dc   :  { %4668 = vmatprep.subr.bf16.mxu0 %v5513_v48 }
 0x9de   :  { %3697 = vmatmul.mubr.bf16.gmra.mxu0 %v6345_v30  ;;  %v5039_v30 = vld [vmem:[#allocation15 + $0x8] sm:$0xff]  }
 0x9df   :  { %3704 = vmatprep.mubr.bf16.mxu0 %v6361_v31  ;;  %4669 = vmatpush3.bf16.msra.mxu0 %v5037_v18 }
 0x9e0   :  { %4670 = vmatprep.subr.bf16.mxu0 %v5513_v48 }
 0x9e3   :  { %4671 = vmatpush3.bf16.msra.mxu0 %v5038_v46 }
 0x9e4   :  { %4672 = vmatprep.subr.bf16.mxu0 %v5513_v48 }
 0x9e6   :  { %3705 = vmatmul.mubr.bf16.gmra.mxu0 %v6364_v60 }
 0x9e7   :  { %4673 = vmatpush3.bf16.msra.mxu0 %v5039_v30  ;;  %4676 = vmatprep.mubr.msk.bf16.mxu0 %vm5514_vm0, %v5513_v48 }
 0x9e8   :  { %4674 = vmatprep.subr.bf16.mxu0 %v5513_v48 }
 0x9eb   :  { %4675 = vmatpush3.bf16.msra.mxu0 %v5040_v0 }
 0xa6e   :  { %v4547_v53 = vpop.f32.mrf.mxu0 }
 0xa70   :  { %v4548_v15 = vpop.f32.mrf.mxu0 }
 0xa71   :  { %v4549_v33 = vadd.f32 %v4548_v15, %v4547_v53 }
 0xa72   :  { %v4550_v55 = vpop.f32.mrf.mxu0 }
 0xa74   :  { %v4551_v34 = vpop.f32.mrf.mxu0 }
 0xa75   :  { %v4552_v36 = vadd.f32 %v4551_v34, %v4550_v55 }
 0xa76   :  { %v4553_v56 = vpop.f32.mrf.mxu0  ;;  %v4627_v31 = vpop.f32.mrf.mxu1 }
 0xa78   :  { %v4554_v11 = vpop.f32.mrf.mxu0  ;;  %v4628_v35 = vpop.f32.mrf.mxu1 }
 0xa79   :  { %v4555_v63 = vadd.f32 %v4554_v11, %v4553_v56  ;;  %v4629_v46 = vadd.f32 %v4628_v35, %v4627_v31 }
 0xa7a   :  { %v4556_v28 = vpop.f32.mrf.mxu0  ;;  %v4630_v32 = vpop.f32.mrf.mxu1 }
 0xa7c   :  { %v4557_v60 = vpop.f32.mrf.mxu0  ;;  %v4631_v9 = vpop.f32.mrf.mxu1 }
 0xa7d   :  { %v4558_v10 = vadd.f32 %v4557_v60, %v4556_v28  ;;  %v4632_v30 = vadd.f32 %v4631_v9, %v4630_v32 }
 0xa7e   :  { %v4559_v16 = vpop.f32.mrf.mxu0  ;;  %v4633_v37 = vpop.f32.mrf.mxu1 }
 0xa80   :  { %v4560_v20 = vpop.f32.mrf.mxu0  ;;  %v4634_v59 = vpop.f32.mrf.mxu1 }
 0xa81   :  { %v4561_v7 = vadd.f32 %v4560_v20, %v4559_v16  ;;  %v4635_v51 = vadd.f32 %v4634_v59, %v4633_v37  ;;  %v4481_v20 = vld [vmem:[%s6410_s8] ss:$0 sm:$0xff] }
 0xa82   :  { %v4562_v12 = vpop.f32.mrf.mxu0  ;;  %v4636_v43 = vpop.f32.mrf.mxu1 }
 0xa84   :  { %v4563_v3 = vpop.f32.mrf.mxu0  ;;  %v4637_v22 = vpop.f32.mrf.mxu1 }
 0xa85   :  { %v4564_v27 = vadd.f32 %v4563_v3, %v4562_v12  ;;  %v4638_v62 = vadd.f32 %v4637_v22, %v4636_v43 }
 0xa86   :  { %v4565_v54 = vpop.f32.mrf.mxu0  ;;  %v4639_v42 = vpop.f32.mrf.mxu1 }
 0xa88   :  { %v4566_v58 = vpop.f32.mrf.mxu0  ;;  %v4640_v45 = vpop.f32.mrf.mxu1 }
 0xa89   :  { %v4641_v0 = vadd.f32 %v4640_v45, %v4639_v42  ;;  %v4567_v37 = vadd.f32 %v4566_v58, %v4565_v54 }
 0xa8a   :  { %v6387_v23 = vpop.f32.mrf.mxu0  ;;  %v4642_v38 = vpop.f32.mrf.mxu1 }
 0xa8c   :  { %v4569_v49 = vpop.f32.mrf.mxu0  ;;  %v4643_v21 = vpop.f32.mrf.mxu1 }
 0xa8d   :  { %v4644_v11 = vadd.f32 %v4643_v21, %v4642_v38 }
 0xa8e   :  { %v4587_v24 = vpop.f32.mrf.mxu0  ;;  %v4645_v5 = vpop.f32.mrf.mxu1 }
 0xa90   :  { %v4588_v14 = vpop.f32.mrf.mxu0  ;;  %v4646_v19 = vpop.f32.mrf.mxu1 }
 0xa91   :  { %v4589_v2 = vadd.f32 %v4588_v14, %v4587_v24  ;;  %v4647_v35 = vadd.f32 %v4646_v19, %v4645_v5  ;;  %v4570_v24 = vadd.f32 %v4569_v49, %v6387_v23 }
 0xa92   :  { %v4590_v26 = vpop.f32.mrf.mxu0  ;;  %v4648_v53 = vpop.f32.mrf.mxu1 }
 0xa93   :  { %v3683_v6 = vadd.f32 %v4589_v2, %v4549_v33 }
 0xa94   :  { %v4591_v29 = vpop.f32.mrf.mxu0  ;;  %v4649_v32 = vpop.f32.mrf.mxu1 }
 0xa95   :  { %v4592_v44 = vadd.f32 %v4591_v29, %v4590_v26  ;;  %v3955_v28 = vadd.f32 %v4629_v46, %v3683_v6 }
 0xa96   :  { %v4593_v57 = vpop.f32.mrf.mxu0 }
 0xa97   :  { %v3686_v13 = vadd.f32 %v4592_v44, %v4552_v36  ;;  %v3970_v42 = vadd.f32 %v4481_v20, %v3955_v28 }
 0xa98   :  { %v4594_v41 = vpop.f32.mrf.mxu0 }
 0xa99   :  { %v4595_v40 = vadd.f32 %v4594_v41, %v4593_v57  ;;  %v3956_v60 = vadd.f32 %v4632_v30, %v3686_v13  ;;  %v4650_v57 = vadd.f32 %v4649_v32, %v4648_v53 }
 0xa9a   :  { %v4596_v17 = vpop.f32.mrf.mxu0 }
 0xa9b   :  { %v3691_v1 = vadd.f32 %v4595_v40, %v4555_v63  ;;  %v3971_v14 = vadd.f32 %v4481_v20, %v3956_v60 }
 0xa9c   :  { %v4597_v4 = vpop.f32.mrf.mxu0 }
 0xa9d   :  { %v4598_v25 = vadd.f32 %v4597_v4, %v4596_v17  ;;  %v3957_v15 = vadd.f32 %v4635_v51, %v3691_v1  ;;  %v3978_v4 = vmax.f32 %v3970_v42, 0.0 }
 0xa9e   :  { %v4599_v8 = vpop.f32.mrf.mxu0 }
 0xa9f   :  { %v3694_v50 = vadd.f32 %v4598_v25, %v4558_v10  ;;  %v3972_v9 = vadd.f32 %v4481_v20, %v3957_v15 }
 0xaa0   :  { %v4600_v61 = vpop.f32.mrf.mxu0 }
 0xaa1   :  { %v4601_v39 = vadd.f32 %v4600_v61, %v4599_v8  ;;  %v3958_v55 = vadd.f32 %v4638_v62, %v3694_v50  ;;  %v3980_v38 = vmax.f32 %v3972_v9, 0.0  ;;  %v3979_v8 = vmax.f32 %v3971_v14, 0.0 }
 0xaa2   :  { %v4602_v47 = vpop.f32.mrf.mxu0 }
 0xaa3   :  { %v3699_v52 = vadd.f32 %v4601_v39, %v4561_v7  ;;  %v3973_v43 = vadd.f32 %v4481_v20, %v3958_v55  ;;  %v3986_v2 = vmax.f32 %v3978_v4, %v3980_v38 }
 0xaa4   :  { %v4603_v48 = vpop.f32.mrf.mxu0 }
 0xaa5   :  { %v4604_v18 = vadd.f32 %v4603_v48, %v4602_v47  ;;  %v3959_v12 = vadd.f32 %v4641_v0, %v3699_v52  ;;  %v3981_v41 = vmax.f32 %v3973_v43, 0.0  ;;  %v4482_v47 = vld [vmem:[%s6412_s10] ss:$0 sm:$0xff] }
 0xaa6   :  { %v4605_v56 = vpop.f32.mrf.mxu0 }
 0xaa7   :  { %v3702_v34 = vadd.f32 %v4604_v18, %v4564_v27  ;;  %v3974_v45 = vadd.f32 %v4481_v20, %v3959_v12  ;;  %v3987_v44 = vmax.f32 %v3979_v8, %v3981_v41 }
 0xaa8   :  { %v4606_v16 = vpop.f32.mrf.mxu0 }
 0xaa9   :  { %v3960_v59 = vadd.f32 %v4644_v11, %v3702_v34  ;;  %v4607_v3 = vadd.f32 %v4606_v16, %v4605_v56  ;;  %v3982_v5 = vmax.f32 %v3974_v45, 0.0 }
 0xaaa   :  { %v4608_v31 = vpop.f32.mrf.mxu0 }
 0xaab   :  { %v3707_v22 = vadd.f32 %v4607_v3, %v4567_v37  ;;  %v3975_v54 = vadd.f32 %v4481_v20, %v3960_v59  ;;  %v3988_v61 = vmax.f32 %v3986_v2, %v3982_v5 }
 0xaac   :  { %v4609_v26 = vpop.f32.mrf.mxu0 }
 0xaad   :  { %v3961_v58 = vadd.f32 %v4647_v35, %v3707_v22  ;;  %v4610_v29 = vadd.f32 %v4609_v26, %v4608_v31  ;;  %v3983_v40 = vmax.f32 %v3975_v54, 0.0 }
 0xaaf   :  { %v3976_v17 = vadd.f32 %v4481_v20, %v3961_v58  ;;  %v3710_v21 = vadd.f32 %v4610_v29, %v4570_v24  ;;  %v3989_v63 = vmax.f32 %v3987_v44, %v3983_v40 }
 0xab1   :  { %v3962_v25 = vadd.f32 %v4650_v57, %v3710_v21  ;;  %v3984_v23 = vmax.f32 %v3976_v17, 0.0 }
 0xab3   :  { %v3977_v49 = vadd.f32 %v4481_v20, %v3962_v25  ;;  %v3990_v39 = vmax.f32 %v3988_v61, %v3984_v23 }
 0xab5   :  { %v3985_v10 = vmax.f32 %v3977_v49, 0.0 }
 0xab7   :  { %v3991_v33 = vmax.f32 %v3989_v63, %v3985_v10 }
 0xab9   :  { %v3992_v36 = vpack.c.bf16 %v3991_v33, %v3990_v39 }
 0xabb   :  { %4677 = vmatmul.mubr.bf16.vlgmr.msra.gmra.mxu0 %v3992_v36 }
 0xb7b   :  { %v4098_v7 = vpop.f32.mrf.mxu0 }
 0xb7c   :  { %v4099_v19 = vadd.f32 %v4482_v47, %v4098_v7 }
 0xb7d   :  { %v4678_v1 = vpop.f32.mrf.mxu0 }
 0xb7e   :  { %4105 = vst [vmem:[#allocation16] sm:$0xff] %v4099_v19 }
 0xb7f   :  { %v4101_v50 = vpop.f32.mrf.mxu0 }
 0xb80   :  { %v4102_v51 = vadd.f32 %v4482_v47, %v4101_v50 }
 0xb81   :  { %v4679_v6 = vpop.f32.mrf.mxu0 }
 0xb82   :  { %4106 = vst [vmem:[#allocation16 + $0x8] sm:$0xff] %v4102_v51 }
 0xb83   :  { %5480 = shalt.err (!%p5477_p11)
}
 0xb84   :  { %4118 = dma.vmem_to_hbm [thread:$0]  %s4113_s4, 256, %s6413_s11, [#allocation6], %s5504_s29, %s5504_s29, %s5505_s30  }
 0xb85   :  { %5497 = dma.done.wait [#allocation6], 256  }
 0xb86   :  { %5498 = vsyncadd [#allocation6], 4294967040 }
 0xb87   :  { %4122 = vsyncpa [#allocation5], 1 }
 0xb88   :  { %4123 = vsyncpa [#allocation8], 1 }
 0xb89   :  { %4124 = vsyncpa [#allocation11], 1 }
 0xb8a   :  { %4125 = vsyncpa [#allocation14], 1 }
 0xb8b   :  { %4126 = vsyncpa [#allocation6], 1 }

</bundles_post_ra>
